<compile_context>
chip_gen: v6e
topology: v6e:2x2x1
jax: 0.10.0
libtpu: 0.0.40
codegen_flags: <defaults>
</compile_context>

<pallas_src>
import functools

import jax
import jax.numpy as jnp
from jax.experimental import pallas as pl
from jax.experimental.pallas import tpu as pltpu

PAD = 128        # padded lane width for every layer
NUM_LAYERS = 5   # [128->128, 128->128, 128->64, 64->16, 16->1]


def _alpha_kernel(x_ref, w_ref, b_ref, o_ref):
    """One batch tile of the whole MLP + tanh head.

    x_ref: (TB, 128)        bf16  batch tile
    w_ref: (5, 128, 128)    bf16  stacked padded transposed weights (resident)
    b_ref: (5, 1, 128)      f32   stacked padded biases (resident)
    o_ref: (1, 1, TB)       f32   lane-dense packed scalar outputs for this tile
    """
    h = x_ref[...]                                    # bf16 (TB, 128)

    # Hidden layers: Linear + LeakyReLU(0.2).  f32 accumulation & activation,
    # cast back to bf16 only as MXU input for the next layer.
    for layer in range(NUM_LAYERS - 1):
        acc = jnp.dot(h, w_ref[layer], preferred_element_type=jnp.float32)
        acc = acc + b_ref[layer]                      # (TB,128) + (1,128), f32
        acc = jnp.where(acc >= 0.0, acc, 0.2 * acc)   # LeakyReLU(0.2) in f32
        h = acc.astype(jnp.bfloat16)

    # Last layer: Linear + Identity.  Only column 0 is the real scalar output.
    z = jnp.dot(h, w_ref[NUM_LAYERS - 1],
                preferred_element_type=jnp.float32) + b_ref[NUM_LAYERS - 1]
    zt = jnp.transpose(z)                             # (128, TB) — XLU transpose
    res = zt[0:1, :]                                  # (1, TB) lane-dense residual
    out = 1.0 + 0.99 * jnp.tanh(res)                  # AlphaPredictor head, f32
    o_ref[...] = out.reshape(o_ref.shape)


def init_params(key, channels):
    """PyTorch-style Linear init + weight_norm reparam (g = row-norm of v)."""
    params = []
    for i in range(1, len(channels)):
        fan_in, fan_out = channels[i - 1], channels[i]
        key, kw, kb = jax.random.split(key, 3)
        bound = 1.0 / jnp.sqrt(fan_in)
        v = jax.random.uniform(kw, (fan_out, fan_in), jnp.float32, -bound, bound)
        b = jax.random.uniform(kb, (fan_out,), jnp.float32, -bound, bound)
        # weight_norm: W_eff = g * v / ||v||_row with g initialized to ||v||_row
        # (i.e. W_eff == v right after wrapping, matching torch weight_norm).
        g = jnp.linalg.norm(v, axis=1, keepdims=True)
        w_eff = g * v / jnp.linalg.norm(v, axis=1, keepdims=True)
        params.append((w_eff, b, fan_in, fan_out))
    return params


def pack_params(params):
    """Fold params into stacked, zero-padded, transposed kernel operands."""
    assert len(params) == NUM_LAYERS
    w_stack = jnp.zeros((NUM_LAYERS, PAD, PAD), jnp.float32)
    b_stack = jnp.zeros((NUM_LAYERS, 1, PAD), jnp.float32)
    for k, (w_eff, b, fan_in, fan_out) in enumerate(params):
        w_stack = w_stack.at[k, :fan_in, :fan_out].set(w_eff.T)
        b_stack = b_stack.at[k, 0, :fan_out].set(b)
    # Weights in bf16 (MXU inputs, half the resident VMEM); biases stay f32.
    return w_stack.astype(jnp.bfloat16), b_stack


def _round_up(n, m):
    return ((n + m - 1) // m) * m


@functools.partial(jax.jit, static_argnames=("block_b",))
def alpha_predictor(x, w_stack, b_stack, *, block_b=512):
    """x: (B, 128) float32 -> (B, 1) float32."""
    B = x.shape[0]
    tb = min(block_b, _round_up(B, 8))     # batch tile, multiple of 8 sublanes
    nt = pl.cdiv(B, tb)
    bp = nt * tb

    xb = x.astype(jnp.bfloat16)            # halve the dominant HBM read
    if bp != B:
        xb = jnp.pad(xb, ((0, bp - B), (0, 0)))

    out = pl.pallas_call(
        _alpha_kernel,
        out_shape=jax.ShapeDtypeStruct((nt, 1, tb), jnp.float32),
        grid=(nt,),
        in_specs=[
            pl.BlockSpec((tb, PAD), lambda i: (i, 0)),                  # x tile
            pl.BlockSpec((NUM_LAYERS, PAD, PAD), lambda i: (0, 0, 0)),  # weights (resident)
            pl.BlockSpec((NUM_LAYERS, 1, PAD), lambda i: (0, 0, 0)),    # biases (resident)
        ],
        out_specs=pl.BlockSpec((1, 1, tb), lambda i: (i, 0, 0)),        # packed lane-dense
        compiler_params=pltpu.CompilerParams(
            dimension_semantics=("parallel",)),  # batch tiles across TCs (v7x)
    )(xb, w_stack, b_stack)

    return out.reshape(bp, 1)[:B]


def reference_f32(x, params):
    """Pure-JAX f32 reference matching the PyTorch forward."""
    h = x
    n = len(params)
    for idx, (w_eff, b, _, _) in enumerate(params):
        h = h @ w_eff.T + b
        if idx < n - 1:
            h = jnp.where(h >= 0.0, h, 0.2 * h)
    return 1.0 + 0.99 * jnp.tanh(h)


def reference_bf16(x, params):
    """Reference using the same bf16-in / f32-accumulate mixed precision as the kernel."""
    h = x.astype(jnp.bfloat16)
    n = len(params)
    for idx, (w_eff, b, _, _) in enumerate(params):
        z = jnp.dot(h, w_eff.T.astype(jnp.bfloat16),
                    preferred_element_type=jnp.float32) + b
        if idx < n - 1:
            z = jnp.where(z >= 0.0, z, 0.2 * z)
            h = z.astype(jnp.bfloat16)
        else:
            h = z
    return 1.0 + 0.99 * jnp.tanh(h)


if __name__ == "__main__":
    key = jax.random.PRNGKey(0)
    kx, kp = jax.random.split(key)

    B, input_dim = 1024, 128                      # two 512-row batch tiles
    channels = [input_dim, 128, 128, 64, 16, 1]

    x = jax.random.normal(kx, (B, input_dim), jnp.float32)
    params = init_params(kp, channels)
    w_stack, b_stack = pack_params(params)

    out = alpha_predictor(x, w_stack, b_stack)
    out = jax.block_until_ready(out)
    assert out.shape == (B, 1)

    # Tight check vs a reference with the kernel's mixed precision (bf16 MXU
    # inputs, f32 accumulation) — validates the kernel structure itself.
    ref_mp = reference_bf16(x, params)
    assert jnp.allclose(out, ref_mp, atol=1e-3, rtol=1e-3), \
        float(jnp.max(jnp.abs(out - ref_mp)))

    # Looser check vs the full-f32 PyTorch-equivalent forward (bf16 matmul
    # inputs per the perf guidance give ~1e-2-level agreement).
    ref = reference_f32(x, params)
    assert jnp.allclose(out, ref, atol=5e-2, rtol=5e-2), \
        float(jnp.max(jnp.abs(out - ref)))

    print("KERNEL_OK")
</pallas_src>

<mosaic_0001>
module attributes {stable_mosaic.version = 11 : i64} {
  func.func @_alpha_kernel(%arg0: i32, %arg1: memref<512x128xbf16, #tpu.memory_space<vmem>>, %arg2: memref<5x128x128xbf16, #tpu.memory_space<vmem>>, %arg3: memref<5x1x128xf32, #tpu.memory_space<vmem>>, %arg4: memref<1x1x512xf32, #tpu.memory_space<vmem>>) attributes {dimension_semantics = [#tpu.dimension_semantics<parallel>], iteration_bounds = array<i64: 2>, scalar_prefetch = 0 : i64, scratch_operands = 0 : i64, tpu.core_type = #tpu.core_type<tc>, window_params = [{transform_indices = @transform_0, window_bounds = array<i64: 512, 128>}, {pipeline_mode = #tpu.pipeline_mode<synchronous>, transform_indices = @transform_1, window_bounds = array<i64: 5, 128, 128>}, {pipeline_mode = #tpu.pipeline_mode<synchronous>, transform_indices = @transform_2, window_bounds = array<i64: 5, 1, 128>}, {transform_indices = @transform_3, window_bounds = array<i64: 1, 1, 512>}]} {
    %c0 = arith.constant 0 : index
    %c0_0 = arith.constant 0 : index
    %0 = vector.load %arg1[%c0, %c0_0] : memref<512x128xbf16, #tpu.memory_space<vmem>>, vector<512x128xbf16>
    %c0_1 = arith.constant 0 : index
    %c0_2 = arith.constant 0 : index
    %c0_3 = arith.constant 0 : index
    %1 = vector.load %arg2[%c0_1, %c0_2, %c0_3] : memref<5x128x128xbf16, #tpu.memory_space<vmem>>, vector<1x128x128xbf16>
    %2 = vector.shape_cast %1 : vector<1x128x128xbf16> to vector<128x128xbf16>
    %cst = arith.constant dense<0.000000e+00> : vector<512x128xf32>
    %3 = tpu.matmul %0, %2, %cst {dimension_numbers = #tpu.dot_dimension_numbers<[1], [0], [0], [1], [0, 0, 1, 1], [], []>} : vector<512x128xbf16>, vector<128x128xbf16>, vector<512x128xf32> -> vector<512x128xf32>
    %c0_4 = arith.constant 0 : index
    %c0_5 = arith.constant 0 : index
    %c0_6 = arith.constant 0 : index
    %4 = vector.load %arg3[%c0_4, %c0_5, %c0_6] : memref<5x1x128xf32, #tpu.memory_space<vmem>>, vector<1x1x128xf32>
    %5 = vector.shape_cast %4 : vector<1x1x128xf32> to vector<1x128xf32>
    %6 = vector.broadcast %5 : vector<1x128xf32> to vector<512x128xf32>
    %7 = arith.addf %3, %6 : vector<512x128xf32>
    %cst_7 = arith.constant 0.000000e+00 : f32
    %8 = vector.broadcast %cst_7 : f32 to vector<512x128xf32>
    %9 = arith.cmpf oge, %7, %8 : vector<512x128xf32>
    %cst_8 = arith.constant 2.000000e-01 : f32
    %10 = vector.broadcast %cst_8 : f32 to vector<512x128xf32>
    %11 = arith.mulf %10, %7 : vector<512x128xf32>
    %12 = arith.select %9, %7, %11 : vector<512x128xi1>, vector<512x128xf32>
    %13 = arith.truncf %12 : vector<512x128xf32> to vector<512x128xbf16>
    %c1 = arith.constant 1 : index
    %c0_9 = arith.constant 0 : index
    %c0_10 = arith.constant 0 : index
    %14 = vector.load %arg2[%c1, %c0_9, %c0_10] : memref<5x128x128xbf16, #tpu.memory_space<vmem>>, vector<1x128x128xbf16>
    %15 = vector.shape_cast %14 : vector<1x128x128xbf16> to vector<128x128xbf16>
    %cst_11 = arith.constant dense<0.000000e+00> : vector<512x128xf32>
    %16 = tpu.matmul %13, %15, %cst_11 {dimension_numbers = #tpu.dot_dimension_numbers<[1], [0], [0], [1], [0, 0, 1, 1], [], []>} : vector<512x128xbf16>, vector<128x128xbf16>, vector<512x128xf32> -> vector<512x128xf32>
    %c1_12 = arith.constant 1 : index
    %c0_13 = arith.constant 0 : index
    %c0_14 = arith.constant 0 : index
    %17 = vector.load %arg3[%c1_12, %c0_13, %c0_14] : memref<5x1x128xf32, #tpu.memory_space<vmem>>, vector<1x1x128xf32>
    %18 = vector.shape_cast %17 : vector<1x1x128xf32> to vector<1x128xf32>
    %19 = vector.broadcast %18 : vector<1x128xf32> to vector<512x128xf32>
    %20 = arith.addf %16, %19 : vector<512x128xf32>
    %cst_15 = arith.constant 0.000000e+00 : f32
    %21 = vector.broadcast %cst_15 : f32 to vector<512x128xf32>
    %22 = arith.cmpf oge, %20, %21 : vector<512x128xf32>
    %cst_16 = arith.constant 2.000000e-01 : f32
    %23 = vector.broadcast %cst_16 : f32 to vector<512x128xf32>
    %24 = arith.mulf %23, %20 : vector<512x128xf32>
    %25 = arith.select %22, %20, %24 : vector<512x128xi1>, vector<512x128xf32>
    %26 = arith.truncf %25 : vector<512x128xf32> to vector<512x128xbf16>
    %c2 = arith.constant 2 : index
    %c0_17 = arith.constant 0 : index
    %c0_18 = arith.constant 0 : index
    %27 = vector.load %arg2[%c2, %c0_17, %c0_18] : memref<5x128x128xbf16, #tpu.memory_space<vmem>>, vector<1x128x128xbf16>
    %28 = vector.shape_cast %27 : vector<1x128x128xbf16> to vector<128x128xbf16>
    %cst_19 = arith.constant dense<0.000000e+00> : vector<512x128xf32>
    %29 = tpu.matmul %26, %28, %cst_19 {dimension_numbers = #tpu.dot_dimension_numbers<[1], [0], [0], [1], [0, 0, 1, 1], [], []>} : vector<512x128xbf16>, vector<128x128xbf16>, vector<512x128xf32> -> vector<512x128xf32>
    %c2_20 = arith.constant 2 : index
    %c0_21 = arith.constant 0 : index
    %c0_22 = arith.constant 0 : index
    %30 = vector.load %arg3[%c2_20, %c0_21, %c0_22] : memref<5x1x128xf32, #tpu.memory_space<vmem>>, vector<1x1x128xf32>
    %31 = vector.shape_cast %30 : vector<1x1x128xf32> to vector<1x128xf32>
    %32 = vector.broadcast %31 : vector<1x128xf32> to vector<512x128xf32>
    %33 = arith.addf %29, %32 : vector<512x128xf32>
    %cst_23 = arith.constant 0.000000e+00 : f32
    %34 = vector.broadcast %cst_23 : f32 to vector<512x128xf32>
    %35 = arith.cmpf oge, %33, %34 : vector<512x128xf32>
    %cst_24 = arith.constant 2.000000e-01 : f32
    %36 = vector.broadcast %cst_24 : f32 to vector<512x128xf32>
    %37 = arith.mulf %36, %33 : vector<512x128xf32>
    %38 = arith.select %35, %33, %37 : vector<512x128xi1>, vector<512x128xf32>
    %39 = arith.truncf %38 : vector<512x128xf32> to vector<512x128xbf16>
    %c3 = arith.constant 3 : index
    %c0_25 = arith.constant 0 : index
    %c0_26 = arith.constant 0 : index
    %40 = vector.load %arg2[%c3, %c0_25, %c0_26] : memref<5x128x128xbf16, #tpu.memory_space<vmem>>, vector<1x128x128xbf16>
    %41 = vector.shape_cast %40 : vector<1x128x128xbf16> to vector<128x128xbf16>
    %cst_27 = arith.constant dense<0.000000e+00> : vector<512x128xf32>
    %42 = tpu.matmul %39, %41, %cst_27 {dimension_numbers = #tpu.dot_dimension_numbers<[1], [0], [0], [1], [0, 0, 1, 1], [], []>} : vector<512x128xbf16>, vector<128x128xbf16>, vector<512x128xf32> -> vector<512x128xf32>
    %c3_28 = arith.constant 3 : index
    %c0_29 = arith.constant 0 : index
    %c0_30 = arith.constant 0 : index
    %43 = vector.load %arg3[%c3_28, %c0_29, %c0_30] : memref<5x1x128xf32, #tpu.memory_space<vmem>>, vector<1x1x128xf32>
    %44 = vector.shape_cast %43 : vector<1x1x128xf32> to vector<1x128xf32>
    %45 = vector.broadcast %44 : vector<1x128xf32> to vector<512x128xf32>
    %46 = arith.addf %42, %45 : vector<512x128xf32>
    %cst_31 = arith.constant 0.000000e+00 : f32
    %47 = vector.broadcast %cst_31 : f32 to vector<512x128xf32>
    %48 = arith.cmpf oge, %46, %47 : vector<512x128xf32>
    %cst_32 = arith.constant 2.000000e-01 : f32
    %49 = vector.broadcast %cst_32 : f32 to vector<512x128xf32>
    %50 = arith.mulf %49, %46 : vector<512x128xf32>
    %51 = arith.select %48, %46, %50 : vector<512x128xi1>, vector<512x128xf32>
    %52 = arith.truncf %51 : vector<512x128xf32> to vector<512x128xbf16>
    %c4 = arith.constant 4 : index
    %c0_33 = arith.constant 0 : index
    %c0_34 = arith.constant 0 : index
    %53 = vector.load %arg2[%c4, %c0_33, %c0_34] : memref<5x128x128xbf16, #tpu.memory_space<vmem>>, vector<1x128x128xbf16>
    %54 = vector.shape_cast %53 : vector<1x128x128xbf16> to vector<128x128xbf16>
    %cst_35 = arith.constant dense<0.000000e+00> : vector<512x128xf32>
    %55 = tpu.matmul %52, %54, %cst_35 {dimension_numbers = #tpu.dot_dimension_numbers<[1], [0], [0], [1], [0, 0, 1, 1], [], []>} : vector<512x128xbf16>, vector<128x128xbf16>, vector<512x128xf32> -> vector<512x128xf32>
    %c4_36 = arith.constant 4 : index
    %c0_37 = arith.constant 0 : index
    %c0_38 = arith.constant 0 : index
    %56 = vector.load %arg3[%c4_36, %c0_37, %c0_38] : memref<5x1x128xf32, #tpu.memory_space<vmem>>, vector<1x1x128xf32>
    %57 = vector.shape_cast %56 : vector<1x1x128xf32> to vector<1x128xf32>
    %58 = vector.broadcast %57 : vector<1x128xf32> to vector<512x128xf32>
    %59 = arith.addf %55, %58 : vector<512x128xf32>
    %60 = tpu.transpose %59, [1, 0] : vector<512x128xf32> -> vector<128x512xf32>
    %61 = vector.extract_strided_slice %60 {offsets = [0, 0], sizes = [1, 512], strides = [1, 1]} : vector<128x512xf32> to vector<1x512xf32>
    %62 = math.tanh %61 : vector<1x512xf32>
    %cst_39 = arith.constant 9.900000e-01 : f32
    %63 = vector.broadcast %cst_39 : f32 to vector<1x512xf32>
    %64 = arith.mulf %63, %62 : vector<1x512xf32>
    %cst_40 = arith.constant 1.000000e+00 : f32
    %65 = vector.broadcast %cst_40 : f32 to vector<1x512xf32>
    %66 = arith.addf %65, %64 : vector<1x512xf32>
    %67 = vector.shape_cast %66 : vector<1x512xf32> to vector<1x1x512xf32>
    %c0_41 = arith.constant 0 : index
    %c0_42 = arith.constant 0 : index
    %c0_43 = arith.constant 0 : index
    %68 = vector.load %arg4[%c0_41, %c0_42, %c0_43] : memref<1x1x512xf32, #tpu.memory_space<vmem>>, vector<1x1x512xf32>
    tpu.vector_store %arg4[%c0_41, %c0_42, %c0_43], %67 {strides = array<i32>} : memref<1x1x512xf32, #tpu.memory_space<vmem>>, vector<1x1x512xf32>,
    return
  }
  func.func @transform_0(%arg0: i32) -> (i32, i32) {
    %c0_i32 = arith.constant 0 : i32
    %c0_i32_0 = arith.constant 0 : i32
    return %arg0, %c0_i32 : i32, i32
  }
  func.func @transform_1(%arg0: i32) -> (i32, i32, i32) {
    %c0_i32 = arith.constant 0 : i32
    %c0_i32_0 = arith.constant 0 : i32
    %c0_i32_1 = arith.constant 0 : i32
    %c0_i32_2 = arith.constant 0 : i32
    return %c0_i32, %c0_i32_0, %c0_i32_1 : i32, i32, i32
  }
  func.func @transform_2(%arg0: i32) -> (i32, i32, i32) {
    %c0_i32 = arith.constant 0 : i32
    %c0_i32_0 = arith.constant 0 : i32
    %c0_i32_1 = arith.constant 0 : i32
    %c0_i32_2 = arith.constant 0 : i32
    return %c0_i32, %c0_i32_0, %c0_i32_1 : i32, i32, i32
  }
  func.func @transform_3(%arg0: i32) -> (i32, i32, i32) {
    %c0_i32 = arith.constant 0 : i32
    %c0_i32_0 = arith.constant 0 : i32
    %c0_i32_1 = arith.constant 0 : i32
    return %arg0, %c0_i32, %c0_i32_0 : i32, i32, i32
  }
}

</mosaic_0001>

<bundles_post_ra>
// kernel: alpha_predictor.1
= control target key start
LH: loop header
LB: loop body
LE: loop exit
PB: predicated region body
PF: predicated region fallthrough
CT: control target
= control target key end

     0   :  { %8 = vsyncpa [#allocation3], 0  ;;  %s5019_s0 = inlined_call_operand.vmem [shape: bf16[1024,128], index: 0, kind: input, shape index: {}]   ;;  %s5020_s1 = inlined_call_operand.vmem [shape: bf16[5,128,128], index: 1, kind: input, shape index: {}]   ;;  %s5021_s2 = inlined_call_operand.vmem [shape: f32[5,1,128], index: 2, kind: input, shape index: {}]   ;;  %s5022_s3 = inlined_call_operand.hbm [shape: f32[2,1,512], index: 3, kind: output, shape index: {}]  }
   0x1   :  { %10 = vsyncpa [#allocation3 + $0x1], 0  ;;  %s4358_s12 = smov 0   ;;  %s4360_s13 = smov 0  }
   0x2   :  { %s4362_s14 = smov 0   ;;  %s4364_s15 = smov 0  }
   0x3 LB: > { %s3379_s16 = sadd.s32 4294967295, %s4334_s15   ;;  %s3380_s17 = sadd.s32 4294967294, %s4334_s15   ;;  %s4334_s15 = sphi %s4364_s15, %s5028_s15   ;;  %s4330_s14 = sphi %s4362_s14, %s5027_s14   ;;  %s4326_s13 = sphi %s4360_s13, %s5026_s13   ;;  %s4322_s12 = sphi %s4358_s12, %s5025_s12  }
   0x4   : > { %s4381_s18 = sadd.s32 1, %s4334_s15   ;;  %s91_s19 = sadd.s32 1, %s4330_s14 }
   0x5   : > { %s88_s20 = ssub.s32 %s4334_s15, %s4381_s18  ;;  %p101_p0 = scmp.ne.s32.totalorder %s4330_s14, %s4326_s13 }
   0x6   : > { %p89_p1 = scmp.eq.s32.totalorder %s88_s20, 0  ;;  %p102_p2 = scmp.eq.s32.totalorder %s3379_s16, 1 }
   0x7   : > { %p107_p3 = scmp.ne.s32.totalorder %s4326_s13, %s4322_s12  ;;  %p108_p4 = scmp.eq.s32.totalorder %s3380_s17, 1 }
   0x8   : > { %s4391_s21 = scalar_select %p89_p1, %s4330_s14, %s91_s19  }
   0x9   : > { %p4393_p5 = por %p102_p2, %p101_p0  ;;  %p4397_p6 = por %p108_p4, %p107_p3 }
   0xa   : > { %p3383_p7 = scmp.ge.s32.totalorder %s4334_s15, 1  ;;  %p141_p8 = scmp.lt.s32.totalorder %s4334_s15, 3 }
   0xc   : > { %p142_p9 = pnand %p3383_p7, %p141_p8 }
   0xd   : > { %s4406_s26 = sshll.u32 (!%p142_p9), %s3379_s16, 6  ;;  %s162_s30 = sand.u32 (!%p142_p9), 1, %s4326_s13  }
   0xe   : > { %145 = sbr.rel (%p142_p9) target bundleno = 1337 (0x539), region = 32  ;;  %p166_p10 = scmp.lt.s32.totalorder (!%p142_p9), %s4406_s26, 127 }
   0xf   : > { %s3384_s4 = sshll.u32 (!%p142_p9), %s162_s30, 2  ;;  %s3319_s10 = scalar_lea.hbm (!%p142_p9), %s5022_s3, %s4406_s26 }
  0x10   : > { %s3307_s11 = scalar_lea.sflag (!%p142_p9), [#allocation3], %s162_s30  ;;  %s4337_s17 = smov (!%p142_p9), [#allocation2]  }
  0x11   : > { %s4278_s19 = sshll.u32 (!%p142_p9), %s4337_s17, 4  ;;  %s4279_s19 = int_to_ptr.vmem [resolvable:$false] %s4278_s19 }
  0x12   : > { %s4280_s20 = scalar_lea.vmem (!%p142_p9), %s4279_s19, 128 }
  0x13   : > { %v4194_v0 = vld [vmem:[%s5020_s1 + $0x38] sm:$0xff]   ;;  %v4195_v1 = vld [vmem:[%s5020_s1 + $0x30] sm:$0xff]   ;;  %s167_s29 = scalar_select %p166_p10, %s4406_s26, 127  ;;  %v4196_v2 = vld [vmem:[%s5020_s1 + $0x28] sm:$0xff]  }
  0x14   : > { %3738 = vmatprep.subr.bf16.mxu0 %v4194_v0  ;;  %4138 = vmatprep.subr.bf16.mxu1 %v4194_v0  ;;  %v4197_v3 = vld [vmem:[%s5020_s1 + $0x20] sm:$0xff]   ;;  %v4198_v5 = vld [vmem:[%s5020_s1 + $0x18] sm:$0xff]   ;;  %v4199_v6 = vld [vmem:[%s5020_s1 + $0x10] sm:$0xff]  }
  0x15   : > { %3739 = vmatpush3.bf16.msra.mxu0 %v4194_v0  ;;  %4146 = vmatpush3.bf16.msra.mxu1 %v4194_v0  ;;  %s3386_s5 = sshll.u32 %s167_s29, 2  ;;  %v4200_v7 = vld [vmem:[%s5020_s1 + $0x8] sm:$0xff]   ;;  %v4201_v9 = vld [vmem:[%s5020_s1] sm:$0xff]   ;;  %v4234_v18 = vld [vmem:[%s5020_s1 + $0x78] sm:$0xff]  }
  0x16   : > { %3740 = vmatprep.subr.bf16.mxu0 %v4195_v1  ;;  %4139 = vmatprep.subr.bf16.mxu1 %v4195_v1  ;;  %s4419_s8 = scalar_lea.vmem %s5019_s0, %s3386_s5  ;;  %v4235_v19 = vld [vmem:[%s5020_s1 + $0x70] sm:$0xff]   ;;  %v4236_v24 = vld [vmem:[%s5020_s1 + $0x68] sm:$0xff]   ;;  %v4237_v25 = vld [vmem:[%s5020_s1 + $0x60] sm:$0xff]   ;;  %s164_s5 = scalar_lea.vmem [#allocation2], %s3384_s4 }
  0x17   : > { %v4202_v4 = vld [vmem:[%s4419_s8] sm:$0xff]   ;;  %v4203_v10 = vld [vmem:[%s4419_s8 + $0x8] sm:$0xff]   ;;  %v4204_v11 = vld [vmem:[%s4419_s8 + $0x10] sm:$0xff]   ;;  %s3321_s6 = sshll.u32 %s164_s5, 4  ;;  %s3322_s6 = int_to_ptr.vmem [resolvable:$true] %s3321_s6 }
  0x18   : > { %3754 = vmatprep.mubr.bf16.mxu0 %v4202_v4  ;;  %v4217_v8 = vld [vmem:[%s4419_s8 + $0x80] sm:$0xff]   ;;  %v4219_v12 = vld [vmem:[%s4419_s8 + $0x88] sm:$0xff]   ;;  %v4220_v13 = vld [vmem:[%s4419_s8 + $0x90] sm:$0xff]   ;;  %s4274_s16 = scalar_lea.vmem %s3322_s6, 64  ;;  %p4281_p0 = scmp.lt.s32.totalorder %s3322_s6, %s4279_s19 }
  0x19   : > { %3741 = vmatpush3.bf16.msra.mxu0 %v4195_v1  ;;  %4147 = vmatpush3.bf16.msra.mxu1 %v4195_v1  ;;  %v4205_v14 = vld [vmem:[%s4419_s8 + $0x18] sm:$0xff]   ;;  %v4206_v15 = vld [vmem:[%s4419_s8 + $0x20] sm:$0xff]   ;;  %v4207_v20 = vld [vmem:[%s4419_s8 + $0x28] sm:$0xff]   ;;  %p4275_p11 = scmp.ne.s32.totalorder %s3322_s6, %s4274_s16  ;;  %p4282_p1 = scmp.lt.s32.totalorder %s4280_s20, %s4274_s16 }
  0x1a   : > { %3742 = vmatprep.subr.bf16.mxu0 %v4196_v2  ;;  %4140 = vmatprep.subr.bf16.mxu1 %v4196_v2  ;;  %v4221_v16 = vld [vmem:[%s4419_s8 + $0x98] sm:$0xff]   ;;  %v4222_v17 = vld [vmem:[%s4419_s8 + $0xa0] sm:$0xff]   ;;  %v4223_v21 = vld [vmem:[%s4419_s8 + $0xa8] sm:$0xff]  }
  0x1b   : > { %3786 = vmatprep.mubr.bf16.mxu1 %v4217_v8  ;;  %v4208_v22 = vld [vmem:[%s4419_s8 + $0x30] sm:$0xff]   ;;  %v4209_v26 = vld [vmem:[%s4419_s8 + $0x38] sm:$0xff]   ;;  %v4210_v28 = vld [vmem:[%s4419_s8 + $0x40] sm:$0xff]   ;;  %p4276_p12 = pnand %p4275_p11, %p4393_p5  ;;  %p4283_p2 = por %p4282_p1, %p4281_p0 }
  0x1c   : > { %v4224_v23 = vld [vmem:[%s4419_s8 + $0xb0] sm:$0xff]   ;;  %v4225_v27 = vld [vmem:[%s4419_s8 + $0xb8] sm:$0xff]   ;;  %v4226_v29 = vld [vmem:[%s4419_s8 + $0xc0] sm:$0xff]  }
  0x1d   : > { %3743 = vmatpush3.bf16.msra.mxu0 %v4196_v2  ;;  %4148 = vmatpush3.bf16.msra.mxu1 %v4196_v2  ;;  %v4238_v30 = vld [vmem:[%s5020_s1 + $0x58] sm:$0xff]   ;;  %v4239_v31 = vld [vmem:[%s5020_s1 + $0x50] sm:$0xff]   ;;  %v4211_v32 = vld [vmem:[%s4419_s8 + $0x48] sm:$0xff]   ;;  %p4277_p13 = pneg %p4276_p12 }
  0x1e   : > { %3744 = vmatprep.subr.bf16.mxu0 %v4197_v3  ;;  %4141 = vmatprep.subr.bf16.mxu1 %v4197_v3  ;;  %v4227_v33 = vld [vmem:[%s4419_s8 + $0xc8] sm:$0xff]   ;;  %v4212_v34 = vld [vmem:[%s4419_s8 + $0x50] sm:$0xff]   ;;  %v4213_v37 = vld [vmem:[%s4419_s8 + $0x58] sm:$0xff]  }
  0x1f   : > { %v4228_v35 = vld [vmem:[%s4419_s8 + $0xd0] sm:$0xff]   ;;  %v4240_v36 = vld [vmem:[%s5020_s1 + $0x48] sm:$0xff]   ;;  %v4229_v38 = vld [vmem:[%s4419_s8 + $0xd8] sm:$0xff]   ;;  %p4284_p3 = pnand %p4283_p2, %p4277_p13 }
  0x20   : > { %v4214_v39 = vld [vmem:[%s4419_s8 + $0x60] sm:$0xff]   ;;  %v4215_v41 = vld [vmem:[%s4419_s8 + $0x68] sm:$0xff]   ;;  %v4216_v43 = vld [vmem:[%s4419_s8 + $0x70] sm:$0xff]  }
  0x21   : > { %3745 = vmatpush3.bf16.msra.mxu0 %v4197_v3  ;;  %4149 = vmatpush3.bf16.msra.mxu1 %v4197_v3  ;;  %v4230_v40 = vld [vmem:[%s4419_s8 + $0xe0] sm:$0xff]   ;;  %v4231_v42 = vld [vmem:[%s4419_s8 + $0xe8] sm:$0xff]   ;;  %v4232_v44 = vld [vmem:[%s4419_s8 + $0xf0] sm:$0xff]  }
  0x22   : > { %3746 = vmatprep.subr.bf16.mxu0 %v4198_v5  ;;  %4142 = vmatprep.subr.bf16.mxu1 %v4198_v5  ;;  %v4218_v45 = vld [vmem:[%s4419_s8 + $0x78] sm:$0xff]   ;;  %v4241_v47 = vld [vmem:[%s5020_s1 + $0x40] sm:$0xff]   ;;  %v4243_v0 = vld [vmem:[%s5020_s1 + $0xb0] sm:$0xff]  }
  0x23   : > { %v4233_v46 = vld [vmem:[%s4419_s8 + $0xf8] sm:$0xff]   ;;  %v4497_v50 = vld [vmem:[%s5021_s2] ss:$0 sm:$0xff] }
  0x24   : > { %v4242_v63 = vld [vmem:[%s5020_s1 + $0xb8] sm:$0xff]  }
  0x25   : > { %3747 = vmatpush3.bf16.msra.mxu0 %v4198_v5  ;;  %4150 = vmatpush3.bf16.msra.mxu1 %v4198_v5 }
  0x26   : > { %3748 = vmatprep.subr.bf16.mxu0 %v4199_v6  ;;  %4143 = vmatprep.subr.bf16.mxu1 %v4199_v6 }
  0x29   : > { %3749 = vmatpush3.bf16.msra.mxu0 %v4199_v6  ;;  %4151 = vmatpush3.bf16.msra.mxu1 %v4199_v6 }
  0x2a   : > { %3750 = vmatprep.subr.bf16.mxu0 %v4200_v7  ;;  %4144 = vmatprep.subr.bf16.mxu1 %v4200_v7 }
  0x2d   : > { %3751 = vmatpush3.bf16.msra.mxu0 %v4200_v7  ;;  %4152 = vmatpush3.bf16.msra.mxu1 %v4200_v7 }
  0x2e   : > { %3752 = vmatprep.subr.bf16.mxu0 %v4201_v9  ;;  %4145 = vmatprep.subr.bf16.mxu1 %v4201_v9 }
  0x31   : > { %3753 = vmatpush3.bf16.msra.mxu0 %v4201_v9  ;;  %4153 = vmatpush3.bf16.msra.mxu1 %v4201_v9 }
  0x32   : > { %3818 = vmatprep.subr.bf16.mxu1 %v4234_v18  ;;  %3898 = vmatprep.subr.bf16.mxu0 %v4242_v63 }
  0x34   : > { %3755 = vmatmul.mubr.bf16.vlgmr.msra.gmra.mxu0 %v4203_v10  ;;  %3787 = vmatmul.mubr.bf16.vlgmr.msra.gmra.mxu1 %v4219_v12 }
  0x35   : > { %3758 = vmatprep.mubr.bf16.mxu0 %v4204_v11  ;;  %3790 = vmatprep.mubr.bf16.mxu1 %v4220_v13  ;;  %v4244_v11 = vld [vmem:[%s5020_s1 + $0xa8] sm:$0xff]  }
  0x36   : > { %3819 = vmatpush3.bf16.msra.mxu1 %v4234_v18  ;;  %3899 = vmatpush3.bf16.msra.mxu0 %v4242_v63 }
  0x37   : > { %3820 = vmatprep.subr.bf16.mxu1 %v4235_v19  ;;  %3900 = vmatprep.subr.bf16.mxu0 %v4243_v0 }
  0x3a   : > { %3821 = vmatpush3.bf16.msra.mxu1 %v4235_v19  ;;  %3901 = vmatpush3.bf16.msra.mxu0 %v4243_v0 }
  0x3b   : > { %3822 = vmatprep.subr.bf16.mxu1 %v4236_v24  ;;  %3902 = vmatprep.subr.bf16.mxu0 %v4244_v11 }
  0x3c   : > { %3759 = vmatmul.mubr.bf16.gmra.mxu0 %v4205_v14  ;;  %3791 = vmatmul.mubr.bf16.gmra.mxu1 %v4221_v16 }
  0x3d   : > { %3762 = vmatprep.mubr.bf16.mxu0 %v4206_v15  ;;  %3794 = vmatprep.mubr.bf16.mxu1 %v4222_v17 }
  0x3e   : > { %3823 = vmatpush3.bf16.msra.mxu1 %v4236_v24  ;;  %3903 = vmatpush3.bf16.msra.mxu0 %v4244_v11 }
  0x3f   : > { %3824 = vmatprep.subr.bf16.mxu1 %v4237_v25 }
  0x42   : > { %3825 = vmatpush3.bf16.msra.mxu1 %v4237_v25 }
  0x43   : > { %3826 = vmatprep.subr.bf16.mxu1 %v4238_v30 }
  0x44   : > { %3763 = vmatmul.mubr.bf16.gmra.mxu0 %v4207_v20  ;;  %3795 = vmatmul.mubr.bf16.gmra.mxu1 %v4223_v21 }
  0x45   : > { %3766 = vmatprep.mubr.bf16.mxu0 %v4208_v22  ;;  %3798 = vmatprep.mubr.bf16.mxu1 %v4224_v23  ;;  %v4245_v23 = vld [vmem:[%s5020_s1 + $0xa0] sm:$0xff]  }
  0x46   : > { %3827 = vmatpush3.bf16.msra.mxu1 %v4238_v30  ;;  %3904 = vmatprep.subr.bf16.mxu0 %v4245_v23 }
  0x47   : > { %3828 = vmatprep.subr.bf16.mxu1 %v4239_v31  ;;  %3905 = vmatpush3.bf16.msra.mxu0 %v4245_v23 }
  0x4a   : > { %3829 = vmatpush3.bf16.msra.mxu1 %v4239_v31 }
  0x4b   : > { %3830 = vmatprep.subr.bf16.mxu1 %v4240_v36 }
  0x4c   : > { %3767 = vmatmul.mubr.bf16.gmra.mxu0 %v4209_v26  ;;  %3799 = vmatmul.mubr.bf16.gmra.mxu1 %v4225_v27 }
  0x4d   : > { %3770 = vmatprep.mubr.bf16.mxu0 %v4210_v28  ;;  %3802 = vmatprep.mubr.bf16.mxu1 %v4226_v29 }
  0x4e   : > { %3831 = vmatpush3.bf16.msra.mxu1 %v4240_v36 }
  0x4f   : > { %3832 = vmatprep.subr.bf16.mxu1 %v4241_v47 }
  0x52   : > { %3833 = vmatpush3.bf16.msra.mxu1 %v4241_v47 }
  0x54   : > { %3771 = vmatmul.mubr.bf16.gmra.mxu0 %v4211_v32  ;;  %3803 = vmatmul.mubr.bf16.gmra.mxu1 %v4227_v33  ;;  %v4246_v33 = vld [vmem:[%s5020_s1 + $0x98] sm:$0xff]  }
  0x55   : > { %3774 = vmatprep.mubr.bf16.mxu0 %v4212_v34  ;;  %3806 = vmatprep.mubr.bf16.mxu1 %v4228_v35 }
  0x56   : > { %3906 = vmatprep.subr.bf16.mxu0 %v4246_v33 }
  0x57   : > { %3907 = vmatpush3.bf16.msra.mxu0 %v4246_v33 }
  0x5c   : > { %3775 = vmatmul.mubr.bf16.gmra.mxu0 %v4213_v37  ;;  %3807 = vmatmul.mubr.bf16.gmra.mxu1 %v4229_v38 }
  0x5d   : > { %3778 = vmatprep.mubr.bf16.mxu0 %v4214_v39  ;;  %3810 = vmatprep.mubr.bf16.mxu1 %v4230_v40 }
  0x64   : > { %3779 = vmatmul.mubr.bf16.gmra.mxu0 %v4215_v41  ;;  %3811 = vmatmul.mubr.bf16.gmra.mxu1 %v4231_v42 }
  0x65   : > { %3782 = vmatprep.mubr.bf16.mxu0 %v4216_v43  ;;  %3814 = vmatprep.mubr.bf16.mxu1 %v4232_v44 }
  0x6c   : > { %3783 = vmatmul.mubr.bf16.gmra.mxu0 %v4218_v45  ;;  %3815 = vmatmul.mubr.bf16.gmra.mxu1 %v4233_v46  ;;  %v4247_v45 = vld [vmem:[%s5020_s1 + $0x90] sm:$0xff]  }
  0x6d   : > { %3908 = vmatprep.subr.bf16.mxu0 %v4247_v45 }
  0x6e   : > { %3909 = vmatpush3.bf16.msra.mxu0 %v4247_v45 }
  0xf4   : > { %v3756_v48 = vpop.f32.mrf.mxu0  ;;  %v4492_v49 = vpop.f32.mrf.mxu1 }
  0xf5   : > { %v542_v54 = vadd.f32 %v3756_v48, %v4497_v50 }
  0xf6   : > { %v533_v51 = vpop.f32.mrf.mxu0  ;;  %v4499_v52 = vpop.f32.mrf.mxu1 }
  0xf7   : > { %v534_v53 = vadd.f32 %v4497_v50, %v533_v51  ;;  %v854_v1 = vmul.f32 0.2, %v542_v54  ;;  %vm790_vm2 = vcmp.ge.f32.partialorder %v542_v54, 0.0 }
  0xf8   : > { %v3757_v55 = vpop.f32.mrf.mxu0  ;;  %v4503_v56 = vpop.f32.mrf.mxu1 }
  0xf9   : > { %v545_v57 = vadd.f32 %v3757_v55, %v4497_v50  ;;  %v852_v58 = vmul.f32 0.2, %v534_v53  ;;  %vm788_vm1 = vcmp.ge.f32.partialorder %v534_v53, 0.0  ;;  %v918_v12 = vsel %vm790_vm2, %v542_v54, %v854_v1  ;;  %v4248_v1 = vld [vmem:[%s5020_s1 + $0x88] sm:$0xff]  }
  0xfa   : > { %v536_v59 = vpop.f32.mrf.mxu0  ;;  %v4506_v60 = vpop.f32.mrf.mxu1  ;;  %3910 = vmatprep.subr.bf16.mxu0 %v4248_v1 }
  0xfb   : > { %vm791_vm0 = vcmp.ge.f32.partialorder %v545_v57, 0.0  ;;  %v855_v61 = vmul.f32 0.2, %v545_v57  ;;  %v537_v62 = vadd.f32 %v4497_v50, %v536_v59  ;;  %v916_v9 = vsel %vm788_vm1, %v534_v53, %v852_v58  ;;  %3911 = vmatpush3.bf16.msra.mxu0 %v4248_v1 }
  0xfc   : > { %v3760_v2 = vpop.f32.mrf.mxu0  ;;  %v4515_v3 = vpop.f32.mrf.mxu1 }
  0xfd   : > { %vm789_vm3 = vcmp.ge.f32.partialorder %v537_v62, 0.0  ;;  %v853_v4 = vmul.f32 0.2, %v537_v62  ;;  %v919_v5 = vsel %vm791_vm0, %v545_v57, %v855_v61  ;;  %v558_v13 = vadd.f32 %v3760_v2, %v4497_v50 }
  0xfe   : > { %v549_v6 = vpop.f32.mrf.mxu0  ;;  %v4517_v7 = vpop.f32.mrf.mxu1  ;;  %v981_v17 = vpack.c.bf16 %v919_v5, %v918_v12 }
  0xff   : > { %v550_v8 = vadd.f32 %v4497_v50, %v549_v6  ;;  %v917_v10 = vsel %vm789_vm3, %v537_v62, %v853_v4  ;;  %v858_v24 = vmul.f32 0.2, %v558_v13  ;;  %vm794_vm6 = vcmp.ge.f32.partialorder %v558_v13, 0.0 }
 0x100   : > { %v3761_v14 = vpop.f32.mrf.mxu0  ;;  %v980_v15 = vpack.c.bf16 %v917_v10, %v916_v9  ;;  %v4524_v16 = vpop.f32.mrf.mxu1 }
 0x101   : > { %v561_v18 = vadd.f32 %v3761_v14, %v4497_v50  ;;  %v856_v20 = vmul.f32 0.2, %v550_v8  ;;  %vm792_vm5 = vcmp.ge.f32.partialorder %v550_v8, 0.0  ;;  %v922_v37 = vsel %vm794_vm6, %v558_v13, %v858_v24 }
 0x102   : > { %v552_v19 = vpop.f32.mrf.mxu0  ;;  %3834 = vmatprep.mubr.bf16.mxu1 %v980_v15  ;;  %v4531_v26 = vpop.f32.mrf.mxu1 }
 0x103   : > { %vm795_vm4 = vcmp.ge.f32.partialorder %v561_v18, 0.0  ;;  %v859_v21 = vmul.f32 0.2, %v561_v18  ;;  %v553_v22 = vadd.f32 %v4497_v50, %v552_v19  ;;  %3835 = vmatmul.mubr.bf16.vlgmr.msra.gmra.mxu1 %v981_v17  ;;  %v920_v31 = vsel %vm792_vm5, %v550_v8, %v856_v20 }
 0x104   : > { %v3764_v25 = vpop.f32.mrf.mxu0  ;;  %v4538_v38 = vpop.f32.mrf.mxu1 }
 0x105   : > { %vm793_vm7 = vcmp.ge.f32.partialorder %v553_v22, 0.0  ;;  %v857_v27 = vmul.f32 0.2, %v553_v22  ;;  %v923_v29 = vsel %vm795_vm4, %v561_v18, %v859_v21  ;;  %v574_v34 = vadd.f32 %v3764_v25, %v4497_v50 }
 0x106   : > { %v565_v28 = vpop.f32.mrf.mxu0  ;;  %v983_v40 = vpack.c.bf16 %v923_v29, %v922_v37  ;;  %v4545_v48 = vpop.f32.mrf.mxu1 }
 0x107   : > { %v566_v30 = vadd.f32 %v4497_v50, %v565_v28  ;;  %v921_v32 = vsel %vm793_vm7, %v553_v22, %v857_v27  ;;  %v862_v46 = vmul.f32 0.2, %v574_v34  ;;  %vm798_vm10 = vcmp.ge.f32.partialorder %v574_v34, 0.0 }
 0x108   : > { %v3765_v35 = vpop.f32.mrf.mxu0  ;;  %v982_v36 = vpack.c.bf16 %v921_v32, %v920_v31  ;;  %v4549_v0 = vpop.f32.mrf.mxu1 }
 0x109   : > { %v577_v39 = vadd.f32 %v3765_v35, %v4497_v50  ;;  %v860_v42 = vmul.f32 0.2, %v566_v30  ;;  %vm796_vm9 = vcmp.ge.f32.partialorder %v566_v30, 0.0  ;;  %v926_v63 = vsel %vm798_vm10, %v574_v34, %v862_v46 }
 0x10a   : > { %v568_v41 = vpop.f32.mrf.mxu0  ;;  %3838 = vmatprep.mubr.bf16.mxu1 %v982_v36  ;;  %v4556_v12 = vpop.f32.mrf.mxu1 }
 0x10b   : > { %vm799_vm8 = vcmp.ge.f32.partialorder %v577_v39, 0.0  ;;  %v863_v43 = vmul.f32 0.2, %v577_v39  ;;  %v569_v44 = vadd.f32 %v4497_v50, %v568_v41  ;;  %3839 = vmatmul.mubr.bf16.gmra.mxu1 %v983_v40  ;;  %v924_v57 = vsel %vm796_vm9, %v566_v30, %v860_v42 }
 0x10c   : > { %v3768_v47 = vpop.f32.mrf.mxu0  ;;  %v4560_v24 = vpop.f32.mrf.mxu1 }
 0x10d   : > { %vm797_vm11 = vcmp.ge.f32.partialorder %v569_v44, 0.0  ;;  %v861_v51 = vmul.f32 0.2, %v569_v44  ;;  %v927_v54 = vsel %vm799_vm8, %v577_v39, %v863_v43  ;;  %v590_v59 = vadd.f32 %v3768_v47, %v4497_v50 }
 0x10e   : > { %v581_v53 = vpop.f32.mrf.mxu0  ;;  %v985_v4 = vpack.c.bf16 %v927_v54, %v926_v63  ;;  %v4564_v34 = vpop.f32.mrf.mxu1 }
 0x10f   : > { %v582_v55 = vadd.f32 %v4497_v50, %v581_v53  ;;  %v925_v58 = vsel %vm797_vm11, %v569_v44, %v861_v51  ;;  %v866_v10 = vmul.f32 0.2, %v590_v59  ;;  %vm802_vm14 = vcmp.ge.f32.partialorder %v590_v59, 0.0 }
 0x110   : > { %v3769_v61 = vpop.f32.mrf.mxu0  ;;  %v984_v62 = vpack.c.bf16 %v925_v58, %v924_v57  ;;  %v4568_v46 = vpop.f32.mrf.mxu1 }
 0x111   : > { %v593_v2 = vadd.f32 %v3769_v61, %v4497_v50  ;;  %v864_v6 = vmul.f32 0.2, %v582_v55  ;;  %vm800_vm13 = vcmp.ge.f32.partialorder %v582_v55, 0.0  ;;  %v930_v23 = vsel %vm802_vm14, %v590_v59, %v866_v10 }
 0x112   : > { %v584_v5 = vpop.f32.mrf.mxu0  ;;  %3842 = vmatprep.mubr.bf16.mxu1 %v984_v62  ;;  %v4572_v61 = vpop.f32.mrf.mxu1 }
 0x113   : > { %vm803_vm12 = vcmp.ge.f32.partialorder %v593_v2, 0.0  ;;  %v867_v8 = vmul.f32 0.2, %v593_v2  ;;  %v585_v9 = vadd.f32 %v4497_v50, %v584_v5  ;;  %3843 = vmatmul.mubr.bf16.gmra.mxu1 %v985_v4  ;;  %v928_v18 = vsel %vm800_vm13, %v582_v55, %v864_v6 }
 0x114   : > { %v3772_v11 = vpop.f32.mrf.mxu0 }
 0x115   : > { %vm801_vm15 = vcmp.ge.f32.partialorder %v585_v9, 0.0  ;;  %v865_v13 = vmul.f32 0.2, %v585_v9  ;;  %v931_v15 = vsel %vm803_vm12, %v593_v2, %v867_v8  ;;  %v606_v20 = vadd.f32 %v3772_v11, %v4497_v50  ;;  %v4576_v11 = vpop.f32.mrf.mxu1 }
 0x116   : > { %v597_v14 = vpop.f32.mrf.mxu0  ;;  %v987_v27 = vpack.c.bf16 %v931_v15, %v930_v23 }
 0x117   : > { %v598_v17 = vadd.f32 %v4497_v50, %v597_v14  ;;  %v929_v19 = vsel %vm801_vm15, %v585_v9, %v865_v13  ;;  %v870_v32 = vmul.f32 0.2, %v606_v20  ;;  %vm806_vm2 = vcmp.ge.f32.partialorder %v606_v20, 0.0 }
 0x118   : > { %v3773_v21 = vpop.f32.mrf.mxu0  ;;  %v986_v22 = vpack.c.bf16 %v929_v19, %v928_v18 }
 0x119   : > { %v609_v25 = vadd.f32 %v3773_v21, %v4497_v50  ;;  %v868_v29 = vmul.f32 0.2, %v598_v17  ;;  %vm804_vm1 = vcmp.ge.f32.partialorder %v598_v17, 0.0  ;;  %v934_v45 = vsel %vm806_vm2, %v606_v20, %v870_v32 }
 0x11a   : > { %v600_v28 = vpop.f32.mrf.mxu0  ;;  %3846 = vmatprep.mubr.bf16.mxu1 %v986_v22  ;;  %v4580_v22 = vpop.f32.mrf.mxu1 }
 0x11b   : > { %vm807_vm0 = vcmp.ge.f32.partialorder %v609_v25, 0.0  ;;  %v871_v30 = vmul.f32 0.2, %v609_v25  ;;  %v601_v31 = vadd.f32 %v4497_v50, %v600_v28  ;;  %3847 = vmatmul.mubr.bf16.gmra.mxu1 %v987_v27  ;;  %v932_v40 = vsel %vm804_vm1, %v598_v17, %v868_v29 }
 0x11c   : > { %v3776_v33 = vpop.f32.mrf.mxu0  ;;  %v662_v27 = vadd.f32 %v4497_v50, %v4499_v52  ;;  %v665_v28 = vadd.f32 %v4497_v50, %v4506_v60 }
 0x11d   : > { %vm805_vm3 = vcmp.ge.f32.partialorder %v601_v31, 0.0  ;;  %v869_v35 = vmul.f32 0.2, %v601_v31  ;;  %v935_v37 = vsel %vm807_vm0, %v609_v25, %v871_v30  ;;  %v622_v42 = vadd.f32 %v3776_v33, %v4497_v50 }
 0x11e   : > { %v613_v36 = vpop.f32.mrf.mxu0  ;;  %v989_v51 = vpack.c.bf16 %v935_v37, %v934_v45  ;;  %vm820_vm12 = vcmp.ge.f32.partialorder %v662_v27, 0.0  ;;  %v884_v52 = vmul.f32 0.2, %v662_v27  ;;  %vm821_vm15 = vcmp.ge.f32.partialorder %v665_v28, 0.0 }
 0x11f   : > { %v614_v39 = vadd.f32 %v4497_v50, %v613_v36  ;;  %v933_v41 = vsel %vm805_vm3, %v601_v31, %v869_v35  ;;  %v874_v58 = vmul.f32 0.2, %v622_v42  ;;  %vm810_vm6 = vcmp.ge.f32.partialorder %v622_v42, 0.0 }
 0x120   : > { %v3777_v43 = vpop.f32.mrf.mxu0  ;;  %v988_v44 = vpack.c.bf16 %v933_v41, %v932_v40 }
 0x121   : > { %v625_v47 = vadd.f32 %v3777_v43, %v4497_v50  ;;  %v872_v54 = vmul.f32 0.2, %v614_v39  ;;  %vm808_vm5 = vcmp.ge.f32.partialorder %v614_v39, 0.0  ;;  %v938_v10 = vsel %vm810_vm6, %v622_v42, %v874_v58 }
 0x122   : > { %v616_v53 = vpop.f32.mrf.mxu0  ;;  %3850 = vmatprep.mubr.bf16.mxu1 %v988_v44  ;;  %v885_v43 = vmul.f32 0.2, %v665_v28 }
 0x123   : > { %vm811_vm4 = vcmp.ge.f32.partialorder %v625_v47, 0.0  ;;  %v875_v55 = vmul.f32 0.2, %v625_v47  ;;  %v617_v57 = vadd.f32 %v4497_v50, %v616_v53  ;;  %3851 = vmatmul.mubr.bf16.gmra.mxu1 %v989_v51  ;;  %v936_v4 = vsel %vm808_vm5, %v614_v39, %v872_v54  ;;  %v4588_v39 = vpop.f32.mrf.mxu1 }
 0x124   : > { %v3780_v59 = vpop.f32.mrf.mxu0  ;;  %v670_v53 = vadd.f32 %v4492_v49, %v4497_v50 }
 0x125   : > { %vm809_vm7 = vcmp.ge.f32.partialorder %v617_v57, 0.0  ;;  %v873_v62 = vmul.f32 0.2, %v617_v57  ;;  %v939_v1 = vsel %vm811_vm4, %v625_v47, %v875_v55  ;;  %v638_v6 = vadd.f32 %v3780_v59, %v4497_v50  ;;  %v4592_v51 = vpop.f32.mrf.mxu1 }
 0x126   : > { %v629_v63 = vpop.f32.mrf.mxu0  ;;  %v991_v14 = vpack.c.bf16 %v939_v1, %v938_v10  ;;  %v673_v55 = vadd.f32 %v4503_v56, %v4497_v50  ;;  %v948_v59 = vsel %vm820_vm12, %v662_v27, %v884_v52  ;;  %vm822_vm2 = vcmp.ge.f32.partialorder %v670_v53, 0.0 }
 0x127   : > { %v630_v2 = vadd.f32 %v4497_v50, %v629_v63  ;;  %v937_v5 = vsel %vm809_vm7, %v617_v57, %v873_v62  ;;  %v878_v20 = vmul.f32 0.2, %v638_v6  ;;  %vm814_vm10 = vcmp.ge.f32.partialorder %v638_v6, 0.0  ;;  %v4601_v62 = vpop.f32.mrf.mxu1 }
 0x128   : > { %v3781_v8 = vpop.f32.mrf.mxu0  ;;  %v990_v9 = vpack.c.bf16 %v937_v5, %v936_v4  ;;  %v678_v57 = vadd.f32 %v4497_v50, %v4517_v7  ;;  %v681_v63 = vadd.f32 %v4497_v50, %v4531_v26  ;;  %v949_v4 = vsel %vm821_vm15, %v665_v28, %v885_v43 }
 0x129   : > { %v641_v13 = vadd.f32 %v3781_v8, %v4497_v50  ;;  %v876_v17 = vmul.f32 0.2, %v630_v2  ;;  %vm812_vm9 = vcmp.ge.f32.partialorder %v630_v2, 0.0  ;;  %v942_v37 = vsel %vm814_vm10, %v638_v6, %v878_v20  ;;  %v4605_v10 = vpop.f32.mrf.mxu1 }
 0x12a   : > { %v632_v15 = vpop.f32.mrf.mxu0  ;;  %3854 = vmatprep.mubr.bf16.mxu1 %v990_v9  ;;  %v886_v8 = vmul.f32 0.2, %v670_v53  ;;  %v887_v9 = vmul.f32 0.2, %v673_v55  ;;  %v996_v56 = vpack.c.bf16 %v949_v4, %v948_v59  ;;  %vm823_vm3 = vcmp.ge.f32.partialorder %v673_v55, 0.0 }
 0x12b   : > { %vm815_vm8 = vcmp.ge.f32.partialorder %v641_v13, 0.0  ;;  %v879_v18 = vmul.f32 0.2, %v641_v13  ;;  %v633_v19 = vadd.f32 %v4497_v50, %v632_v15  ;;  %3855 = vmatmul.mubr.bf16.gmra.mxu1 %v991_v14  ;;  %v940_v31 = vsel %vm812_vm9, %v630_v2, %v876_v17 }
 0x12c   : > { %v3784_v21 = vpop.f32.mrf.mxu0  ;;  %v888_v7 = vmul.f32 0.2, %v678_v57  ;;  %vm824_vm4 = vcmp.ge.f32.partialorder %v678_v57, 0.0  ;;  %vm825_vm5 = vcmp.ge.f32.partialorder %v681_v63, 0.0  ;;  %v686_v26 = vadd.f32 %v4515_v3, %v4497_v50 }
 0x12d   : > { %vm813_vm11 = vcmp.ge.f32.partialorder %v633_v19, 0.0  ;;  %v877_v23 = vmul.f32 0.2, %v633_v19  ;;  %v943_v29 = vsel %vm815_vm8, %v641_v13, %v879_v18  ;;  %v654_v33 = vadd.f32 %v3784_v21, %v4497_v50  ;;  %v4611_v18 = vpop.f32.mrf.mxu1 }
 0x12e   : > { %v645_v25 = vpop.f32.mrf.mxu0  ;;  %v993_v41 = vpack.c.bf16 %v943_v29, %v942_v37  ;;  %v889_v13 = vmul.f32 0.2, %v681_v63  ;;  %v689_v14 = vadd.f32 %v4524_v16, %v4497_v50  ;;  %v950_v15 = vsel %vm822_vm2, %v670_v53, %v886_v8 }
 0x12f   : > { %v646_v30 = vadd.f32 %v4497_v50, %v645_v25  ;;  %v941_v32 = vsel %vm813_vm11, %v633_v19, %v877_v23  ;;  %v882_v47 = vmul.f32 0.2, %v654_v33  ;;  %vm818_vm0 = vcmp.ge.f32.partialorder %v654_v33, 0.0  ;;  %v744_v3 = vpop.f32.mrf.mxu1 }
 0x130   : > { %v3785_v35 = vpop.f32.mrf.mxu0  ;;  %v992_v36 = vpack.c.bf16 %v941_v32, %v940_v31  ;;  %v951_v17 = vsel %vm823_vm3, %v673_v55, %v887_v9  ;;  %v694_v19 = vadd.f32 %v4497_v50, %v4545_v48  ;;  %v697_v20 = vadd.f32 %v4497_v50, %v4556_v12 }
 0x131   : > { %v657_v40 = vadd.f32 %v3785_v35, %v4497_v50  ;;  %v880_v60 = vmul.f32 0.2, %v646_v30  ;;  %vm816_vm14 = vcmp.ge.f32.partialorder %v646_v30, 0.0  ;;  %v946_v5 = vsel %vm818_vm0, %v654_v33, %v882_v47  ;;  %v4621_v33 = vpop.f32.mrf.mxu1 }
 0x132   : > { %v648_v42 = vpop.f32.mrf.mxu0  ;;  %3858 = vmatprep.mubr.bf16.mxu1 %v992_v36  ;;  %v952_v21 = vsel %vm824_vm4, %v678_v57, %v888_v7  ;;  %v953_v23 = vsel %vm825_vm5, %v681_v63, %v889_v13  ;;  %v997_v25 = vpack.c.bf16 %v951_v17, %v950_v15  ;;  %v890_v27 = vmul.f32 0.2, %v686_v26 }
 0x133   : > { %vm819_vm13 = vcmp.ge.f32.partialorder %v657_v40, 0.0  ;;  %v883_v44 = vmul.f32 0.2, %v657_v40  ;;  %v649_v45 = vadd.f32 %v4497_v50, %v648_v42  ;;  %3859 = vmatmul.mubr.bf16.gmra.mxu1 %v993_v41  ;;  %v944_v1 = vsel %vm816_vm14, %v646_v30, %v880_v60 }
 0x134   : > { %v891_v28 = vmul.f32 0.2, %v689_v14  ;;  %v998_v29 = vpack.c.bf16 %v953_v23, %v952_v21  ;;  %vm826_vm6 = vcmp.ge.f32.partialorder %v686_v26, 0.0  ;;  %vm827_vm7 = vcmp.ge.f32.partialorder %v689_v14, 0.0 }
 0x135   : > { %vm817_vm1 = vcmp.ge.f32.partialorder %v649_v45, 0.0  ;;  %v881_v54 = vmul.f32 0.2, %v649_v45  ;;  %v947_v58 = vsel %vm819_vm13, %v657_v40, %v883_v44  ;;  %v892_v16 = vmul.f32 0.2, %v694_v19 }
 0x136   : > { %v995_v6 = vpack.c.bf16 %v947_v58, %v946_v5  ;;  %v893_v30 = vmul.f32 0.2, %v697_v20  ;;  %vm828_vm8 = vcmp.ge.f32.partialorder %v694_v19, 0.0  ;;  %vm829_vm9 = vcmp.ge.f32.partialorder %v697_v20, 0.0 }
 0x137   : > { %v945_v2 = vsel %vm817_vm1, %v649_v45, %v881_v54  ;;  %v702_v48 = vadd.f32 %v4538_v38, %v4497_v50  ;;  %v705_v12 = vadd.f32 %v4549_v0, %v4497_v50  ;;  %v954_v31 = vsel %vm826_vm6, %v686_v26, %v890_v27  ;;  %v757_v38 = vpop.f32.mrf.mxu1 }
 0x138   : > { %v994_v49 = vpack.c.bf16 %v945_v2, %v944_v1  ;;  %v955_v32 = vsel %vm827_vm7, %v689_v14, %v891_v28  ;;  %v710_v35 = vadd.f32 %v4497_v50, %v4564_v34  ;;  %v713_v36 = vadd.f32 %v4497_v50, %v4572_v61  ;;  %v4249_v34 = vld [vmem:[%s5020_s1 + $0x80] sm:$0xff]  }
 0x139   : > { %v956_v37 = vsel %vm828_vm8, %v694_v19, %v892_v16  ;;  %v957_v40 = vsel %vm829_vm9, %v697_v20, %v893_v30  ;;  %v999_v41 = vpack.c.bf16 %v955_v32, %v954_v31  ;;  %v894_v52 = vmul.f32 0.2, %v702_v48  ;;  %v4634_v53 = vpop.f32.mrf.mxu1  ;;  %3912 = vmatprep.subr.bf16.mxu0 %v4249_v34 }
 0x13a   : > { %3862 = vmatprep.mubr.bf16.mxu1 %v994_v49  ;;  %v895_v42 = vmul.f32 0.2, %v705_v12  ;;  %v1000_v43 = vpack.c.bf16 %v957_v40, %v956_v37  ;;  %vm830_vm10 = vcmp.ge.f32.partialorder %v702_v48, 0.0  ;;  %vm831_vm11 = vcmp.ge.f32.partialorder %v705_v12, 0.0  ;;  %3913 = vmatpush3.bf16.msra.mxu0 %v4249_v34 }
 0x13b   : > { %3863 = vmatmul.mubr.bf16.gmra.mxu1 %v995_v6  ;;  %v896_v0 = vmul.f32 0.2, %v710_v35  ;;  %v897_v60 = vmul.f32 0.2, %v713_v36  ;;  %vm832_vm12 = vcmp.ge.f32.partialorder %v710_v35, 0.0  ;;  %vm833_vm13 = vcmp.ge.f32.partialorder %v713_v36, 0.0  ;;  %v760_v2 = vpop.f32.mrf.mxu1 }
 0x13c   : > { %3866 = vmatprep.mubr.bf16.mxu1 %v996_v56  ;;  %v718_v61 = vadd.f32 %v4560_v24, %v4497_v50  ;;  %v721_v44 = vadd.f32 %v4568_v46, %v4497_v50  ;;  %v958_v45 = vsel %vm830_vm10, %v702_v48, %v894_v52  ;;  %v959_v47 = vsel %vm831_vm11, %v705_v12, %v895_v42 }
 0x13d   : > { %v726_v54 = vadd.f32 %v4497_v50, %v4580_v22  ;;  %v729_v55 = vadd.f32 %v4497_v50, %v4592_v51  ;;  %v960_v57 = vsel %vm832_vm12, %v710_v35, %v896_v0  ;;  %v961_v58 = vsel %vm833_vm13, %v713_v36, %v897_v60  ;;  %v3816_v9 = vpop.f32.mrf.mxu1 }
 0x13e   : > { %v1001_v59 = vpack.c.bf16 %v959_v47, %v958_v45  ;;  %v898_v63 = vmul.f32 0.2, %v718_v61  ;;  %v899_v24 = vmul.f32 0.2, %v721_v44  ;;  %v1002_v1 = vpack.c.bf16 %v961_v58, %v960_v57 }
 0x13f   : > { %vm834_vm14 = vcmp.ge.f32.partialorder %v718_v61, 0.0  ;;  %vm835_vm15 = vcmp.ge.f32.partialorder %v721_v44, 0.0  ;;  %v900_v46 = vmul.f32 0.2, %v726_v54  ;;  %v901_v4 = vmul.f32 0.2, %v729_v55 }
 0x140   : > { %vm836_vm0 = vcmp.ge.f32.partialorder %v726_v54, 0.0  ;;  %vm837_vm1 = vcmp.ge.f32.partialorder %v729_v55, 0.0  ;;  %v734_v22 = vadd.f32 %v4576_v11, %v4497_v50  ;;  %v742_v51 = vadd.f32 %v4497_v50, %v4605_v10  ;;  %v773_v11 = vpop.f32.mrf.mxu1 }
 0x141   : > { %v745_v49 = vadd.f32 %v4497_v50, %v744_v3  ;;  %v737_v5 = vadd.f32 %v4588_v39, %v4497_v50  ;;  %v962_v6 = vsel %vm834_vm14, %v718_v61, %v898_v63  ;;  %v963_v8 = vsel %vm835_vm15, %v721_v44, %v899_v24 }
 0x142   : > { %v964_v56 = vsel %vm836_vm0, %v726_v54, %v900_v46  ;;  %v965_v7 = vsel %vm837_vm1, %v729_v55, %v901_v4  ;;  %v902_v13 = vmul.f32 0.2, %v734_v22  ;;  %v1003_v26 = vpack.c.bf16 %v963_v8, %v962_v6  ;;  %v4673_v4 = vld [vmem:[%s5021_s2 + $0x1] ss:$0 sm:$0xff] }
 0x143   : > { %3867 = vmatmul.mubr.bf16.gmra.mxu1 %v997_v25  ;;  %v904_v14 = vmul.f32 0.2, %v742_v51  ;;  %v905_v15 = vmul.f32 0.2, %v745_v49  ;;  %v903_v17 = vmul.f32 0.2, %v737_v5  ;;  %v1004_v19 = vpack.c.bf16 %v965_v7, %v964_v56 }
 0x144   : > { %3870 = vmatprep.mubr.bf16.mxu1 %v998_v29  ;;  %vm840_vm2 = vcmp.ge.f32.partialorder %v742_v51, 0.0  ;;  %vm841_vm3 = vcmp.ge.f32.partialorder %v745_v49, 0.0  ;;  %vm838_vm4 = vcmp.ge.f32.partialorder %v734_v22, 0.0  ;;  %vm839_vm5 = vcmp.ge.f32.partialorder %v737_v5, 0.0  ;;  %v3817_v29 = vpop.f32.mrf.mxu1 }
 0x145   : > { %v750_v39 = vadd.f32 %v4601_v62, %v4497_v50  ;;  %v753_v10 = vadd.f32 %v4611_v18, %v4497_v50  ;;  %v758_v20 = vadd.f32 %v4497_v50, %v757_v38  ;;  %v761_v21 = vadd.f32 %v4497_v50, %v760_v2  ;;  %v4252_v2 = vld [vmem:[%s5020_s1 + $0xe8] sm:$0xff]  }
 0x146   : > { %v968_v23 = vsel %vm840_vm2, %v742_v51, %v904_v14  ;;  %v969_v25 = vsel %vm841_vm3, %v745_v49, %v905_v15  ;;  %v966_v27 = vsel %vm838_vm4, %v734_v22, %v902_v13  ;;  %v967_v28 = vsel %vm839_vm5, %v737_v5, %v903_v17  ;;  %v776_v18 = vpop.f32.mrf.mxu1  ;;  %v4253_v13 = vld [vmem:[%s5020_s1 + $0xe0] sm:$0xff]  }
 0x147   : > { %vm842_vm6 = vcmp.ge.f32.partialorder %v750_v39, 0.0  ;;  %v906_v3 = vmul.f32 0.2, %v750_v39  ;;  %v907_v16 = vmul.f32 0.2, %v753_v10  ;;  %v1006_v30 = vpack.c.bf16 %v969_v25, %v968_v23 }
 0x148   : > { %vm843_vm7 = vcmp.ge.f32.partialorder %v753_v10, 0.0  ;;  %v1005_v48 = vpack.c.bf16 %v967_v28, %v966_v27  ;;  %v908_v62 = vmul.f32 0.2, %v758_v20  ;;  %v909_v12 = vmul.f32 0.2, %v761_v21 }
 0x149   : > { %vm844_vm8 = vcmp.ge.f32.partialorder %v758_v20, 0.0  ;;  %vm845_vm9 = vcmp.ge.f32.partialorder %v761_v21, 0.0  ;;  %v766_v31 = vadd.f32 %v4621_v33, %v4497_v50  ;;  %v769_v32 = vadd.f32 %v4634_v53, %v4497_v50 }
 0x14a   : > { %v970_v35 = vsel %vm842_vm6, %v750_v39, %v906_v3  ;;  %v971_v36 = vsel %vm843_vm7, %v753_v10, %v907_v16  ;;  %v774_v37 = vadd.f32 %v4497_v50, %v773_v11  ;;  %v777_v40 = vadd.f32 %v4497_v50, %v776_v18 }
 0x14b   : > { %3871 = vmatmul.mubr.bf16.gmra.mxu1 %v999_v41  ;;  %v972_v41 = vsel %vm844_vm8, %v758_v20, %v908_v62  ;;  %v973_v52 = vsel %vm845_vm9, %v761_v21, %v909_v12  ;;  %v1007_v42 = vpack.c.bf16 %v971_v36, %v970_v35  ;;  %v911_v38 = vmul.f32 0.2, %v769_v32  ;;  %v4255_v21 = vld [vmem:[%s5020_s1 + $0xd0] sm:$0xff]   ;;  %v4256_v12 = vld [vmem:[%s5020_s1 + $0xc8] sm:$0xff]  }
 0x14c   : > { %3874 = vmatprep.mubr.bf16.mxu1 %v1000_v43  ;;  %v910_v43 = vmul.f32 0.2, %v766_v31  ;;  %v1008_v0 = vpack.c.bf16 %v973_v52, %v972_v41  ;;  %vm846_vm10 = vcmp.ge.f32.partialorder %v766_v31, 0.0  ;;  %vm847_vm11 = vcmp.ge.f32.partialorder %v769_v32, 0.0  ;;  %v4257_v52 = vld [vmem:[%s5020_s1 + $0xc0] sm:$0xff]  }
 0x14d   : > { %v912_v60 = vmul.f32 0.2, %v774_v37  ;;  %v913_v33 = vmul.f32 0.2, %v777_v40  ;;  %vm848_vm12 = vcmp.ge.f32.partialorder %v774_v37, 0.0  ;;  %vm849_vm13 = vcmp.ge.f32.partialorder %v777_v40, 0.0 }
 0x14e   : > { %v782_v34 = vadd.f32 %v3816_v9, %v4497_v50  ;;  %v785_v61 = vadd.f32 %v3817_v29, %v4497_v50  ;;  %v974_v44 = vsel %vm846_vm10, %v766_v31, %v910_v43  ;;  %v975_v45 = vsel %vm847_vm11, %v769_v32, %v911_v38  ;;  %v4250_v50 = vld [vmem:[%s5020_s1 + $0xf8] sm:$0xff]  }
 0x14f   : > { %v976_v47 = vsel %vm848_vm12, %v774_v37, %v912_v60  ;;  %v977_v53 = vsel %vm849_vm13, %v777_v40, %v913_v33  ;;  %v1009_v54 = vpack.c.bf16 %v975_v45, %v974_v44  ;;  %3978 = vmatprep.subr.bf16.mxu1 %v4250_v50 }
 0x150   : > { %v914_v55 = vmul.f32 0.2, %v782_v34  ;;  %v915_v57 = vmul.f32 0.2, %v785_v61  ;;  %v1010_v58 = vpack.c.bf16 %v977_v53, %v976_v47  ;;  %vm850_vm14 = vcmp.ge.f32.partialorder %v782_v34, 0.0  ;;  %3979 = vmatpush3.bf16.msra.mxu1 %v4250_v50 }
 0x151   : > { %vm851_vm15 = vcmp.ge.f32.partialorder %v785_v61, 0.0 }
 0x152   : > { %v979_v63 = vsel %vm851_vm15, %v785_v61, %v915_v57 }
 0x153   : > { %3875 = vmatmul.mubr.bf16.gmra.mxu1 %v1001_v59  ;;  %v978_v59 = vsel %vm850_vm14, %v782_v34, %v914_v55 }
 0x154   : > { %3878 = vmatprep.mubr.bf16.mxu1 %v1002_v1  ;;  %v1011_v24 = vpack.c.bf16 %v979_v63, %v978_v59  ;;  %v4251_v1 = vld [vmem:[%s5020_s1 + $0xf0] sm:$0xff]  }
 0x155   : > { %3980 = vmatprep.subr.bf16.mxu1 %v4251_v1 }
 0x156   : > { %3981 = vmatpush3.bf16.msra.mxu1 %v4251_v1 }
 0x157   : > { %3982 = vmatprep.subr.bf16.mxu1 %v4252_v2 }
 0x15a   : > { %3983 = vmatpush3.bf16.msra.mxu1 %v4252_v2 }
 0x15b   : > { %3879 = vmatmul.mubr.bf16.gmra.mxu1 %v1003_v26  ;;  %v4254_v26 = vld [vmem:[%s5020_s1 + $0xd8] sm:$0xff]   ;;  %3984 = vmatprep.subr.bf16.mxu1 %v4253_v13 }
 0x15c   : > { %3882 = vmatprep.mubr.bf16.mxu1 %v1004_v19 }
 0x15e   : > { %3985 = vmatpush3.bf16.msra.mxu1 %v4253_v13 }
 0x15f   : > { %3986 = vmatprep.subr.bf16.mxu1 %v4254_v26 }
 0x162   : > { %3987 = vmatpush3.bf16.msra.mxu1 %v4254_v26 }
 0x163   : > { %3883 = vmatmul.mubr.bf16.gmra.mxu1 %v1005_v48  ;;  %3988 = vmatprep.subr.bf16.mxu1 %v4255_v21 }
 0x164   : > { %3886 = vmatprep.mubr.bf16.mxu1 %v1006_v30 }
 0x166   : > { %3989 = vmatpush3.bf16.msra.mxu1 %v4255_v21 }
 0x167   : > { %3990 = vmatprep.subr.bf16.mxu1 %v4256_v12 }
 0x16a   : > { %3991 = vmatpush3.bf16.msra.mxu1 %v4256_v12 }
 0x16b   : > { %3887 = vmatmul.mubr.bf16.gmra.mxu1 %v1007_v42  ;;  %3992 = vmatprep.subr.bf16.mxu1 %v4257_v52 }
 0x16c   : > { %3890 = vmatprep.mubr.bf16.mxu1 %v1008_v0 }
 0x16e   : > { %3993 = vmatpush3.bf16.msra.mxu1 %v4257_v52 }
 0x173   : > { %3891 = vmatmul.mubr.bf16.gmra.mxu1 %v1009_v54 }
 0x174   : > { %3894 = vmatprep.mubr.bf16.mxu1 %v1010_v58 }
 0x17b   : > { %3895 = vmatmul.mubr.bf16.gmra.mxu1 %v1011_v24 }
 0x1c3   : > { %v3836_v46 = vpop.f32.mrf.mxu1 }
 0x1c4   : > { %v1128_v49 = vadd.f32 %v3836_v46, %v4673_v4 }
 0x1c5   : > { %v1119_v22 = vpop.f32.mrf.mxu1 }
 0x1c6   : > { %v1120_v51 = vadd.f32 %v4673_v4, %v1119_v22  ;;  %v1440_v14 = vmul.f32 0.2, %v1128_v49  ;;  %vm1376_vm2 = vcmp.ge.f32.partialorder %v1128_v49, 0.0 }
 0x1c7   : > { %v3837_v5 = vpop.f32.mrf.mxu1 }
 0x1c8   : > { %v1131_v6 = vadd.f32 %v3837_v5, %v4673_v4  ;;  %v1438_v8 = vmul.f32 0.2, %v1120_v51  ;;  %vm1374_vm1 = vcmp.ge.f32.partialorder %v1120_v51, 0.0  ;;  %v1504_v23 = vsel %vm1376_vm2, %v1128_v49, %v1440_v14 }
 0x1c9   : > { %v1122_v9 = vpop.f32.mrf.mxu1 }
 0x1ca   : > { %vm1377_vm0 = vcmp.ge.f32.partialorder %v1131_v6, 0.0  ;;  %v1441_v56 = vmul.f32 0.2, %v1131_v6  ;;  %v1123_v7 = vadd.f32 %v4673_v4, %v1122_v9  ;;  %v1502_v10 = vsel %vm1374_vm1, %v1120_v51, %v1438_v8 }
 0x1cb   : > { %v3840_v15 = vpop.f32.mrf.mxu1 }
 0x1cc   : > { %vm1375_vm3 = vcmp.ge.f32.partialorder %v1123_v7, 0.0  ;;  %v1439_v17 = vmul.f32 0.2, %v1123_v7  ;;  %v1505_v19 = vsel %vm1377_vm0, %v1131_v6, %v1441_v56  ;;  %v1144_v25 = vadd.f32 %v3840_v15, %v4673_v4 }
 0x1cd   : > { %v1135_v11 = vpop.f32.mrf.mxu1  ;;  %v1567_v29 = vpack.c.bf16 %v1505_v19, %v1504_v23 }
 0x1ce   : > { %v1136_v39 = vadd.f32 %v4673_v4, %v1135_v11  ;;  %v1503_v20 = vsel %vm1375_vm3, %v1123_v7, %v1439_v17  ;;  %v1444_v18 = vmul.f32 0.2, %v1144_v25  ;;  %vm1380_vm6 = vcmp.ge.f32.partialorder %v1144_v25, 0.0 }
 0x1cf   : > { %v3841_v27 = vpop.f32.mrf.mxu1  ;;  %v1566_v28 = vpack.c.bf16 %v1503_v20, %v1502_v10 }
 0x1d0   : > { %v1147_v3 = vadd.f32 %v3841_v27, %v4673_v4  ;;  %v1442_v30 = vmul.f32 0.2, %v1136_v39  ;;  %vm1378_vm5 = vcmp.ge.f32.partialorder %v1136_v39, 0.0  ;;  %v1508_v0 = vsel %vm1380_vm6, %v1144_v25, %v1444_v18 }
 0x1d1   : > { %v1138_v16 = vpop.f32.mrf.mxu1  ;;  %3914 = vmatprep.mubr.bf16.mxu0 %v1566_v28 }
 0x1d2   : > { %vm1381_vm4 = vcmp.ge.f32.partialorder %v1147_v3, 0.0  ;;  %v1445_v48 = vmul.f32 0.2, %v1147_v3  ;;  %v1139_v62 = vadd.f32 %v4673_v4, %v1138_v16  ;;  %3915 = vmatmul.mubr.bf16.vlgmr.msra.gmra.mxu0 %v1567_v29  ;;  %v1506_v40 = vsel %vm1378_vm5, %v1136_v39, %v1442_v30 }
 0x1d3   : > { %v3844_v31 = vpop.f32.mrf.mxu1 }
 0x1d4   : > { %vm1379_vm7 = vcmp.ge.f32.partialorder %v1139_v62, 0.0  ;;  %v1443_v32 = vmul.f32 0.2, %v1139_v62  ;;  %v1509_v36 = vsel %vm1381_vm4, %v1147_v3, %v1445_v48  ;;  %v1160_v42 = vadd.f32 %v3844_v31, %v4673_v4 }
 0x1d5   : > { %v1151_v35 = vpop.f32.mrf.mxu1  ;;  %v1569_v33 = vpack.c.bf16 %v1509_v36, %v1508_v0 }
 0x1d6   : > { %v1152_v37 = vadd.f32 %v4673_v4, %v1151_v35  ;;  %v1507_v41 = vsel %vm1379_vm7, %v1139_v62, %v1443_v32  ;;  %v1448_v47 = vmul.f32 0.2, %v1160_v42  ;;  %vm1384_vm10 = vcmp.ge.f32.partialorder %v1160_v42, 0.0 }
 0x1d7   : > { %v3845_v43 = vpop.f32.mrf.mxu1  ;;  %v1568_v38 = vpack.c.bf16 %v1507_v41, %v1506_v40 }
 0x1d8   : > { %v1163_v60 = vadd.f32 %v3845_v43, %v4673_v4  ;;  %v1446_v61 = vmul.f32 0.2, %v1152_v37  ;;  %vm1382_vm9 = vcmp.ge.f32.partialorder %v1152_v37, 0.0  ;;  %v1512_v2 = vsel %vm1384_vm10, %v1160_v42, %v1448_v47 }
 0x1d9   : > { %v1154_v34 = vpop.f32.mrf.mxu1  ;;  %3918 = vmatprep.mubr.bf16.mxu0 %v1568_v38 }
 0x1da   : > { %vm1385_vm8 = vcmp.ge.f32.partialorder %v1163_v60, 0.0  ;;  %v1449_v44 = vmul.f32 0.2, %v1163_v60  ;;  %v1155_v45 = vadd.f32 %v4673_v4, %v1154_v34  ;;  %3919 = vmatmul.mubr.bf16.gmra.mxu0 %v1569_v33  ;;  %v1510_v59 = vsel %vm1382_vm9, %v1152_v37, %v1446_v61 }
 0x1db   : > { %v3848_v53 = vpop.f32.mrf.mxu1 }
 0x1dc   : > { %vm1383_vm11 = vcmp.ge.f32.partialorder %v1155_v45, 0.0  ;;  %v1447_v54 = vmul.f32 0.2, %v1155_v45  ;;  %v1513_v57 = vsel %vm1385_vm8, %v1163_v60, %v1449_v44  ;;  %v1176_v24 = vadd.f32 %v3848_v53, %v4673_v4 }
 0x1dd   : > { %v1167_v55 = vpop.f32.mrf.mxu1  ;;  %v1571_v22 = vpack.c.bf16 %v1513_v57, %v1512_v2 }
 0x1de   : > { %v1168_v58 = vadd.f32 %v4673_v4, %v1167_v55  ;;  %v1511_v63 = vsel %vm1383_vm11, %v1155_v45, %v1447_v54  ;;  %v1452_v8 = vmul.f32 0.2, %v1176_v24  ;;  %vm1388_vm14 = vcmp.ge.f32.partialorder %v1176_v24, 0.0 }
 0x1df   : > { %v3849_v50 = vpop.f32.mrf.mxu1  ;;  %v1570_v1 = vpack.c.bf16 %v1511_v63, %v1510_v59 }
 0x1e0   : > { %v1179_v46 = vadd.f32 %v3849_v50, %v4673_v4  ;;  %v1450_v49 = vmul.f32 0.2, %v1168_v58  ;;  %vm1386_vm13 = vcmp.ge.f32.partialorder %v1168_v58, 0.0  ;;  %v1516_v39 = vsel %vm1388_vm14, %v1176_v24, %v1452_v8 }
 0x1e1   : > { %v1170_v51 = vpop.f32.mrf.mxu1  ;;  %3922 = vmatprep.mubr.bf16.mxu0 %v1570_v1 }
 0x1e2   : > { %vm1389_vm12 = vcmp.ge.f32.partialorder %v1179_v46, 0.0  ;;  %v1453_v5 = vmul.f32 0.2, %v1179_v46  ;;  %v1171_v6 = vadd.f32 %v4673_v4, %v1170_v51  ;;  %3923 = vmatmul.mubr.bf16.gmra.mxu0 %v1571_v22  ;;  %v1514_v14 = vsel %vm1386_vm13, %v1168_v58, %v1450_v49 }
 0x1e3   : > { %v3852_v9 = vpop.f32.mrf.mxu1 }
 0x1e4   : > { %vm1387_vm15 = vcmp.ge.f32.partialorder %v1171_v6, 0.0  ;;  %v1451_v56 = vmul.f32 0.2, %v1171_v6  ;;  %v1517_v13 = vsel %vm1389_vm12, %v1179_v46, %v1453_v5  ;;  %v1192_v17 = vadd.f32 %v3852_v9, %v4673_v4 }
 0x1e5   : > { %v1183_v7 = vpop.f32.mrf.mxu1  ;;  %v1573_v20 = vpack.c.bf16 %v1517_v13, %v1516_v39 }
 0x1e6   : > { %v1184_v26 = vadd.f32 %v4673_v4, %v1183_v7  ;;  %v1515_v15 = vsel %vm1387_vm15, %v1171_v6, %v1451_v56  ;;  %v1456_v28 = vmul.f32 0.2, %v1192_v17  ;;  %vm1392_vm2 = vcmp.ge.f32.partialorder %v1192_v17, 0.0 }
 0x1e7   : > { %v3853_v19 = vpop.f32.mrf.mxu1  ;;  %v1572_v11 = vpack.c.bf16 %v1515_v15, %v1514_v14 }
 0x1e8   : > { %v1195_v10 = vadd.f32 %v3853_v19, %v4673_v4  ;;  %v1454_v23 = vmul.f32 0.2, %v1184_v26  ;;  %vm1390_vm1 = vcmp.ge.f32.partialorder %v1184_v26, 0.0  ;;  %v1520_v35 = vsel %vm1392_vm2, %v1192_v17, %v1456_v28 }
 0x1e9   : > { %v1186_v21 = vpop.f32.mrf.mxu1  ;;  %3926 = vmatprep.mubr.bf16.mxu0 %v1572_v11 }
 0x1ea   : > { %vm1393_vm0 = vcmp.ge.f32.partialorder %v1195_v10, 0.0  ;;  %v1457_v25 = vmul.f32 0.2, %v1195_v10  ;;  %v1187_v27 = vadd.f32 %v4673_v4, %v1186_v21  ;;  %3927 = vmatmul.mubr.bf16.gmra.mxu0 %v1573_v20  ;;  %v1518_v62 = vsel %vm1390_vm1, %v1184_v26, %v1454_v23 }
 0x1eb   : > { %v3856_v29 = vpop.f32.mrf.mxu1 }
 0x1ec   : > { %vm1391_vm3 = vcmp.ge.f32.partialorder %v1187_v27, 0.0  ;;  %v1455_v3 = vmul.f32 0.2, %v1187_v27  ;;  %v1521_v30 = vsel %vm1393_vm0, %v1195_v10, %v1457_v25  ;;  %v1208_v18 = vadd.f32 %v3856_v29, %v4673_v4 }
 0x1ed   : > { %v1199_v16 = vpop.f32.mrf.mxu1  ;;  %v1575_v37 = vpack.c.bf16 %v1521_v30, %v1520_v35 }
 0x1ee   : > { %v1200_v48 = vadd.f32 %v4673_v4, %v1199_v16  ;;  %v1519_v12 = vsel %vm1391_vm3, %v1187_v27, %v1455_v3  ;;  %v1460_v43 = vmul.f32 0.2, %v1208_v18  ;;  %vm1396_vm6 = vcmp.ge.f32.partialorder %v1208_v18, 0.0 }
 0x1ef   : > { %v3857_v31 = vpop.f32.mrf.mxu1  ;;  %v1574_v32 = vpack.c.bf16 %v1519_v12, %v1518_v62 }
 0x1f0   : > { %v1211_v36 = vadd.f32 %v3857_v31, %v4673_v4  ;;  %v1458_v41 = vmul.f32 0.2, %v1200_v48  ;;  %vm1394_vm5 = vcmp.ge.f32.partialorder %v1200_v48, 0.0  ;;  %v1524_v54 = vsel %vm1396_vm6, %v1208_v18, %v1460_v43 }
 0x1f1   : > { %v1202_v40 = vpop.f32.mrf.mxu1  ;;  %3930 = vmatprep.mubr.bf16.mxu0 %v1574_v32 }
 0x1f2   : > { %vm1397_vm4 = vcmp.ge.f32.partialorder %v1211_v36, 0.0  ;;  %v1461_v52 = vmul.f32 0.2, %v1211_v36  ;;  %v1203_v42 = vadd.f32 %v4673_v4, %v1202_v40  ;;  %3931 = vmatmul.mubr.bf16.gmra.mxu0 %v1575_v37  ;;  %v1522_v61 = vsel %vm1394_vm5, %v1200_v48, %v1458_v41 }
 0x1f3   : > { %v3860_v38 = vpop.f32.mrf.mxu1 }
 0x1f4   : > { %vm1395_vm7 = vcmp.ge.f32.partialorder %v1203_v42, 0.0  ;;  %v1459_v0 = vmul.f32 0.2, %v1203_v42  ;;  %v1525_v33 = vsel %vm1397_vm4, %v1211_v36, %v1461_v52  ;;  %v1224_v45 = vadd.f32 %v3860_v38, %v4673_v4 }
 0x1f5   : > { %v1215_v60 = vpop.f32.mrf.mxu1  ;;  %v1577_v57 = vpack.c.bf16 %v1525_v33, %v1524_v54 }
 0x1f6   : > { %v1216_v34 = vadd.f32 %v4673_v4, %v1215_v60  ;;  %v1523_v44 = vsel %vm1395_vm7, %v1203_v42, %v1459_v0  ;;  %v1464_v50 = vmul.f32 0.2, %v1224_v45  ;;  %vm1400_vm10 = vcmp.ge.f32.partialorder %v1224_v45, 0.0 }
 0x1f7   : > { %v3861_v47 = vpop.f32.mrf.mxu1  ;;  %v1576_v53 = vpack.c.bf16 %v1523_v44, %v1522_v61 }
 0x1f8   : > { %v1227_v55 = vadd.f32 %v3861_v47, %v4673_v4  ;;  %v1462_v59 = vmul.f32 0.2, %v1216_v34  ;;  %vm1398_vm9 = vcmp.ge.f32.partialorder %v1216_v34, 0.0  ;;  %v1528_v56 = vsel %vm1400_vm10, %v1224_v45, %v1464_v50 }
 0x1f9   : > { %v1218_v58 = vpop.f32.mrf.mxu1  ;;  %3934 = vmatprep.mubr.bf16.mxu0 %v1576_v53 }
 0x1fa   : > { %vm1401_vm8 = vcmp.ge.f32.partialorder %v1227_v55, 0.0  ;;  %v1465_v63 = vmul.f32 0.2, %v1227_v55  ;;  %v1219_v24 = vadd.f32 %v4673_v4, %v1218_v58  ;;  %3935 = vmatmul.mubr.bf16.gmra.mxu0 %v1577_v57  ;;  %v1526_v49 = vsel %vm1398_vm9, %v1216_v34, %v1462_v59 }
 0x1fb   : > { %v3864_v1 = vpop.f32.mrf.mxu1 }
 0x1fc   : > { %vm1399_vm11 = vcmp.ge.f32.partialorder %v1219_v24, 0.0  ;;  %v1463_v2 = vmul.f32 0.2, %v1219_v24  ;;  %v1529_v22 = vsel %vm1401_vm8, %v1227_v55, %v1465_v63  ;;  %v1240_v6 = vadd.f32 %v3864_v1, %v4673_v4 }
 0x1fd   : > { %v1231_v46 = vpop.f32.mrf.mxu1  ;;  %v1579_v13 = vpack.c.bf16 %v1529_v22, %v1528_v56 }
 0x1fe   : > { %v1232_v51 = vadd.f32 %v4673_v4, %v1231_v46  ;;  %v1527_v5 = vsel %vm1399_vm11, %v1219_v24, %v1463_v2  ;;  %v1468_v19 = vmul.f32 0.2, %v1240_v6  ;;  %vm1404_vm14 = vcmp.ge.f32.partialorder %v1240_v6, 0.0 }
 0x1ff   : > { %v3865_v8 = vpop.f32.mrf.mxu1  ;;  %v1578_v9 = vpack.c.bf16 %v1527_v5, %v1526_v49 }
 0x200   : > { %v1243_v7 = vadd.f32 %v3865_v8, %v4673_v4  ;;  %v1466_v14 = vmul.f32 0.2, %v1232_v51  ;;  %vm1402_vm13 = vcmp.ge.f32.partialorder %v1232_v51, 0.0  ;;  %v1532_v3 = vsel %vm1404_vm14, %v1240_v6, %v1468_v19 }
 0x201   : > { %v1234_v26 = vpop.f32.mrf.mxu1  ;;  %3938 = vmatprep.mubr.bf16.mxu0 %v1578_v9 }
 0x202   : > { %vm1405_vm12 = vcmp.ge.f32.partialorder %v1243_v7, 0.0  ;;  %v1469_v15 = vmul.f32 0.2, %v1243_v7  ;;  %v1235_v17 = vadd.f32 %v4673_v4, %v1234_v26  ;;  %3939 = vmatmul.mubr.bf16.gmra.mxu0 %v1579_v13  ;;  %v1530_v23 = vsel %vm1402_vm13, %v1232_v51, %v1466_v14 }
 0x203   : > { %v3868_v11 = vpop.f32.mrf.mxu1 }
 0x204   : > { %vm1403_vm15 = vcmp.ge.f32.partialorder %v1235_v17, 0.0  ;;  %v1467_v39 = vmul.f32 0.2, %v1235_v17  ;;  %v1533_v20 = vsel %vm1405_vm12, %v1243_v7, %v1469_v15  ;;  %v1256_v27 = vadd.f32 %v3868_v11, %v4673_v4 }
 0x205   : > { %v1247_v10 = vpop.f32.mrf.mxu1  ;;  %v1581_v30 = vpack.c.bf16 %v1533_v20, %v1532_v3 }
 0x206   : > { %v1248_v21 = vadd.f32 %v4673_v4, %v1247_v10  ;;  %v1531_v25 = vsel %vm1403_vm15, %v1235_v17, %v1467_v39  ;;  %v1472_v31 = vmul.f32 0.2, %v1256_v27  ;;  %vm1408_vm2 = vcmp.ge.f32.partialorder %v1256_v27, 0.0 }
 0x207   : > { %v3869_v28 = vpop.f32.mrf.mxu1  ;;  %v1580_v29 = vpack.c.bf16 %v1531_v25, %v1530_v23 }
 0x208   : > { %v1259_v16 = vadd.f32 %v3869_v28, %v4673_v4  ;;  %v1470_v62 = vmul.f32 0.2, %v1248_v21  ;;  %vm1406_vm1 = vcmp.ge.f32.partialorder %v1248_v21, 0.0  ;;  %v1536_v0 = vsel %vm1408_vm2, %v1256_v27, %v1472_v31 }
 0x209   : > { %v1250_v48 = vpop.f32.mrf.mxu1  ;;  %3942 = vmatprep.mubr.bf16.mxu0 %v1580_v29 }
 0x20a   : > { %vm1409_vm0 = vcmp.ge.f32.partialorder %v1259_v16, 0.0  ;;  %v1473_v12 = vmul.f32 0.2, %v1259_v16  ;;  %v1251_v18 = vadd.f32 %v4673_v4, %v1250_v48  ;;  %3943 = vmatmul.mubr.bf16.gmra.mxu0 %v1581_v30  ;;  %v1534_v41 = vsel %vm1406_vm1, %v1248_v21, %v1470_v62 }
 0x20b   : > { %v3872_v32 = vpop.f32.mrf.mxu1 }
 0x20c   : > { %vm1407_vm3 = vcmp.ge.f32.partialorder %v1251_v18, 0.0  ;;  %v1471_v35 = vmul.f32 0.2, %v1251_v18  ;;  %v1537_v37 = vsel %vm1409_vm0, %v1259_v16, %v1473_v12  ;;  %v1272_v42 = vadd.f32 %v3872_v32, %v4673_v4 }
 0x20d   : > { %v1263_v36 = vpop.f32.mrf.mxu1  ;;  %v1583_v33 = vpack.c.bf16 %v1537_v37, %v1536_v0 }
 0x20e   : > { %v1264_v40 = vadd.f32 %v4673_v4, %v1263_v36  ;;  %v1535_v52 = vsel %vm1407_vm3, %v1251_v18, %v1471_v35  ;;  %v1476_v47 = vmul.f32 0.2, %v1272_v42  ;;  %vm1412_vm6 = vcmp.ge.f32.partialorder %v1272_v42, 0.0 }
 0x20f   : > { %v3873_v43 = vpop.f32.mrf.mxu1  ;;  %v1582_v38 = vpack.c.bf16 %v1535_v52, %v1534_v41 }
 0x210   : > { %v1275_v60 = vadd.f32 %v3873_v43, %v4673_v4  ;;  %v1474_v61 = vmul.f32 0.2, %v1264_v40  ;;  %vm1410_vm5 = vcmp.ge.f32.partialorder %v1264_v40, 0.0  ;;  %v1540_v2 = vsel %vm1412_vm6, %v1272_v42, %v1476_v47 }
 0x211   : > { %v1266_v34 = vpop.f32.mrf.mxu1  ;;  %3946 = vmatprep.mubr.bf16.mxu0 %v1582_v38 }
 0x212   : > { %vm1413_vm4 = vcmp.ge.f32.partialorder %v1275_v60, 0.0  ;;  %v1477_v44 = vmul.f32 0.2, %v1275_v60  ;;  %v1267_v45 = vadd.f32 %v4673_v4, %v1266_v34  ;;  %3947 = vmatmul.mubr.bf16.gmra.mxu0 %v1583_v33  ;;  %v1538_v59 = vsel %vm1410_vm5, %v1264_v40, %v1474_v61 }
 0x213   : > { %v3876_v53 = vpop.f32.mrf.mxu1 }
 0x214   : > { %vm1411_vm7 = vcmp.ge.f32.partialorder %v1267_v45, 0.0  ;;  %v1475_v54 = vmul.f32 0.2, %v1267_v45  ;;  %v1541_v57 = vsel %vm1413_vm4, %v1275_v60, %v1477_v44  ;;  %v1288_v24 = vadd.f32 %v3876_v53, %v4673_v4 }
 0x215   : > { %v1279_v55 = vpop.f32.mrf.mxu1  ;;  %v1585_v22 = vpack.c.bf16 %v1541_v57, %v1540_v2 }
 0x216   : > { %v1280_v58 = vadd.f32 %v4673_v4, %v1279_v55  ;;  %v1539_v63 = vsel %vm1411_vm7, %v1267_v45, %v1475_v54  ;;  %v1480_v8 = vmul.f32 0.2, %v1288_v24  ;;  %vm1416_vm10 = vcmp.ge.f32.partialorder %v1288_v24, 0.0 }
 0x217   : > { %v3877_v50 = vpop.f32.mrf.mxu1  ;;  %v1584_v1 = vpack.c.bf16 %v1539_v63, %v1538_v59 }
 0x218   : > { %v1291_v46 = vadd.f32 %v3877_v50, %v4673_v4  ;;  %v1478_v49 = vmul.f32 0.2, %v1280_v58  ;;  %vm1414_vm9 = vcmp.ge.f32.partialorder %v1280_v58, 0.0  ;;  %v1544_v39 = vsel %vm1416_vm10, %v1288_v24, %v1480_v8 }
 0x219   : > { %v1282_v51 = vpop.f32.mrf.mxu1  ;;  %3950 = vmatprep.mubr.bf16.mxu0 %v1584_v1 }
 0x21a   : > { %vm1417_vm8 = vcmp.ge.f32.partialorder %v1291_v46, 0.0  ;;  %v1481_v5 = vmul.f32 0.2, %v1291_v46  ;;  %v1283_v6 = vadd.f32 %v4673_v4, %v1282_v51  ;;  %3951 = vmatmul.mubr.bf16.gmra.mxu0 %v1585_v22  ;;  %v1542_v14 = vsel %vm1414_vm9, %v1280_v58, %v1478_v49 }
 0x21b   : > { %v3880_v9 = vpop.f32.mrf.mxu1 }
 0x21c   : > { %vm1415_vm11 = vcmp.ge.f32.partialorder %v1283_v6, 0.0  ;;  %v1479_v56 = vmul.f32 0.2, %v1283_v6  ;;  %v1545_v13 = vsel %vm1417_vm8, %v1291_v46, %v1481_v5  ;;  %v1304_v17 = vadd.f32 %v3880_v9, %v4673_v4 }
 0x21d   : > { %v1295_v7 = vpop.f32.mrf.mxu1  ;;  %v1587_v20 = vpack.c.bf16 %v1545_v13, %v1544_v39 }
 0x21e   : > { %v1296_v26 = vadd.f32 %v4673_v4, %v1295_v7  ;;  %v1543_v15 = vsel %vm1415_vm11, %v1283_v6, %v1479_v56  ;;  %v1484_v28 = vmul.f32 0.2, %v1304_v17  ;;  %vm1420_vm14 = vcmp.ge.f32.partialorder %v1304_v17, 0.0 }
 0x21f   : > { %v3881_v19 = vpop.f32.mrf.mxu1  ;;  %v1586_v11 = vpack.c.bf16 %v1543_v15, %v1542_v14 }
 0x220   : > { %v1307_v10 = vadd.f32 %v3881_v19, %v4673_v4  ;;  %v1482_v23 = vmul.f32 0.2, %v1296_v26  ;;  %vm1418_vm13 = vcmp.ge.f32.partialorder %v1296_v26, 0.0  ;;  %v1548_v35 = vsel %vm1420_vm14, %v1304_v17, %v1484_v28 }
 0x221   : > { %v1298_v21 = vpop.f32.mrf.mxu1  ;;  %3954 = vmatprep.mubr.bf16.mxu0 %v1586_v11 }
 0x222   : > { %vm1421_vm12 = vcmp.ge.f32.partialorder %v1307_v10, 0.0  ;;  %v1485_v25 = vmul.f32 0.2, %v1307_v10  ;;  %v1299_v27 = vadd.f32 %v4673_v4, %v1298_v21  ;;  %3955 = vmatmul.mubr.bf16.gmra.mxu0 %v1587_v20  ;;  %v1546_v62 = vsel %vm1418_vm13, %v1296_v26, %v1482_v23 }
 0x223   : > { %v3884_v29 = vpop.f32.mrf.mxu1 }
 0x224   : > { %vm1419_vm15 = vcmp.ge.f32.partialorder %v1299_v27, 0.0  ;;  %v1483_v3 = vmul.f32 0.2, %v1299_v27  ;;  %v1549_v30 = vsel %vm1421_vm12, %v1307_v10, %v1485_v25  ;;  %v1320_v18 = vadd.f32 %v3884_v29, %v4673_v4 }
 0x225   : > { %v1311_v16 = vpop.f32.mrf.mxu1  ;;  %v1589_v37 = vpack.c.bf16 %v1549_v30, %v1548_v35 }
 0x226   : > { %v1312_v48 = vadd.f32 %v4673_v4, %v1311_v16  ;;  %v1547_v12 = vsel %vm1419_vm15, %v1299_v27, %v1483_v3  ;;  %v1488_v43 = vmul.f32 0.2, %v1320_v18  ;;  %vm1424_vm2 = vcmp.ge.f32.partialorder %v1320_v18, 0.0 }
 0x227   : > { %v3885_v31 = vpop.f32.mrf.mxu1  ;;  %v1588_v32 = vpack.c.bf16 %v1547_v12, %v1546_v62 }
 0x228   : > { %v1323_v36 = vadd.f32 %v3885_v31, %v4673_v4  ;;  %v1486_v41 = vmul.f32 0.2, %v1312_v48  ;;  %vm1422_vm1 = vcmp.ge.f32.partialorder %v1312_v48, 0.0  ;;  %v1552_v54 = vsel %vm1424_vm2, %v1320_v18, %v1488_v43 }
 0x229   : > { %v1314_v40 = vpop.f32.mrf.mxu1  ;;  %3958 = vmatprep.mubr.bf16.mxu0 %v1588_v32 }
 0x22a   : > { %vm1425_vm0 = vcmp.ge.f32.partialorder %v1323_v36, 0.0  ;;  %v1489_v52 = vmul.f32 0.2, %v1323_v36  ;;  %v1315_v42 = vadd.f32 %v4673_v4, %v1314_v40  ;;  %3959 = vmatmul.mubr.bf16.gmra.mxu0 %v1589_v37  ;;  %v1550_v61 = vsel %vm1422_vm1, %v1312_v48, %v1486_v41 }
 0x22b   : > { %v3888_v38 = vpop.f32.mrf.mxu1 }
 0x22c   : > { %vm1423_vm3 = vcmp.ge.f32.partialorder %v1315_v42, 0.0  ;;  %v1487_v0 = vmul.f32 0.2, %v1315_v42  ;;  %v1553_v33 = vsel %vm1425_vm0, %v1323_v36, %v1489_v52  ;;  %v1336_v45 = vadd.f32 %v3888_v38, %v4673_v4  ;;  %v4763_v38 = vld [vmem:[%s5021_s2 + $0x2] ss:$0 sm:$0xff] }
 0x22d   : > { %v1327_v60 = vpop.f32.mrf.mxu1  ;;  %v1591_v57 = vpack.c.bf16 %v1553_v33, %v1552_v54 }
 0x22e   : > { %v1328_v34 = vadd.f32 %v4673_v4, %v1327_v60  ;;  %v1551_v44 = vsel %vm1423_vm3, %v1315_v42, %v1487_v0  ;;  %v1492_v50 = vmul.f32 0.2, %v1336_v45  ;;  %vm1428_vm6 = vcmp.ge.f32.partialorder %v1336_v45, 0.0  ;;  %v4258_v42 = vld [vmem:[%s5020_s1 + $0x138] sm:$0xff]   ;;  %v4260_v60 = vld [vmem:[%s5020_s1 + $0x128] sm:$0xff]  }
 0x22f   : > { %v3889_v47 = vpop.f32.mrf.mxu1  ;;  %v1590_v53 = vpack.c.bf16 %v1551_v44, %v1550_v61  ;;  %4058 = vmatprep.subr.bf16.mxu0 %v4258_v42 }
 0x230   : > { %v1339_v55 = vadd.f32 %v3889_v47, %v4673_v4  ;;  %v1490_v59 = vmul.f32 0.2, %v1328_v34  ;;  %vm1426_vm5 = vcmp.ge.f32.partialorder %v1328_v34, 0.0  ;;  %v1556_v56 = vsel %vm1428_vm6, %v1336_v45, %v1492_v50  ;;  %4059 = vmatpush3.bf16.msra.mxu0 %v4258_v42 }
 0x231   : > { %v1330_v58 = vpop.f32.mrf.mxu1  ;;  %3962 = vmatprep.mubr.bf16.mxu0 %v1590_v53 }
 0x232   : > { %vm1429_vm4 = vcmp.ge.f32.partialorder %v1339_v55, 0.0  ;;  %v1493_v63 = vmul.f32 0.2, %v1339_v55  ;;  %v1331_v24 = vadd.f32 %v4673_v4, %v1330_v58  ;;  %3963 = vmatmul.mubr.bf16.gmra.mxu0 %v1591_v57  ;;  %v1554_v5 = vsel %vm1426_vm5, %v1328_v34, %v1490_v59  ;;  %v4262_v57 = vld [vmem:[%s5020_s1 + $0x118] sm:$0xff]  }
 0x233   : > { %v3892_v1 = vpop.f32.mrf.mxu1 }
 0x234   : > { %vm1427_vm7 = vcmp.ge.f32.partialorder %v1331_v24, 0.0  ;;  %v1491_v2 = vmul.f32 0.2, %v1331_v24  ;;  %v1352_v46 = vadd.f32 %v3892_v1, %v4673_v4  ;;  %v1557_v51 = vsel %vm1429_vm4, %v1339_v55, %v1493_v63  ;;  %v4261_v55 = vld [vmem:[%s5020_s1 + $0x120] sm:$0xff]  }
 0x235   : > { %v1343_v22 = vpop.f32.mrf.mxu1  ;;  %v1593_v26 = vpack.c.bf16 %v1557_v51, %v1556_v56 }
 0x236   : > { %v1344_v49 = vadd.f32 %v4673_v4, %v1343_v22  ;;  %v1555_v6 = vsel %vm1427_vm7, %v1331_v24, %v1491_v2  ;;  %v1496_v14 = vmul.f32 0.2, %v1352_v46  ;;  %vm1432_vm9 = vcmp.ge.f32.partialorder %v1352_v46, 0.0  ;;  %v4263_v22 = vld [vmem:[%s5020_s1 + $0x110] sm:$0xff]  }
 0x237   : > { %v3893_v8 = vpop.f32.mrf.mxu1  ;;  %v1592_v9 = vpack.c.bf16 %v1555_v6, %v1554_v5 }
 0x238   : > { %v1494_v7 = vmul.f32 0.2, %v1344_v49  ;;  %v1355_v13 = vadd.f32 %v3893_v8, %v4673_v4  ;;  %vm1430_vm8 = vcmp.ge.f32.partialorder %v1344_v49, 0.0  ;;  %v1560_v23 = vsel %vm1432_vm9, %v1352_v46, %v1496_v14  ;;  %v4264_v14 = vld [vmem:[%s5020_s1 + $0x108] sm:$0xff]  }
 0x239   : > { %v1346_v15 = vpop.f32.mrf.mxu1  ;;  %3966 = vmatprep.mubr.bf16.mxu0 %v1592_v9 }
 0x23a   : > { %vm1433_vm10 = vcmp.ge.f32.partialorder %v1355_v13, 0.0  ;;  %v1497_v17 = vmul.f32 0.2, %v1355_v13  ;;  %v1347_v19 = vadd.f32 %v4673_v4, %v1346_v15  ;;  %3967 = vmatmul.mubr.bf16.gmra.mxu0 %v1593_v26  ;;  %v1558_v20 = vsel %vm1430_vm8, %v1344_v49, %v1494_v7 }
 0x23b   : > { %v3896_v11 = vpop.f32.mrf.mxu1 }
 0x23c   : > { %vm1431_vm11 = vcmp.ge.f32.partialorder %v1347_v19, 0.0  ;;  %v1495_v39 = vmul.f32 0.2, %v1347_v19  ;;  %v1368_v10 = vadd.f32 %v3896_v11, %v4673_v4  ;;  %v1561_v25 = vsel %vm1433_vm10, %v1355_v13, %v1497_v17 }
 0x23d   : > { %v1359_v21 = vpop.f32.mrf.mxu1  ;;  %v1595_v62 = vpack.c.bf16 %v1561_v25, %v1560_v23  ;;  %v4265_v23 = vld [vmem:[%s5020_s1 + $0x100] sm:$0xff]  }
 0x23e   : > { %v1360_v27 = vadd.f32 %v4673_v4, %v1359_v21  ;;  %v1559_v28 = vsel %vm1431_vm11, %v1347_v19, %v1495_v39  ;;  %v1500_v29 = vmul.f32 0.2, %v1368_v10  ;;  %vm1436_vm12 = vcmp.ge.f32.partialorder %v1368_v10, 0.0 }
 0x23f   : > { %v3897_v3 = vpop.f32.mrf.mxu1  ;;  %v1594_v16 = vpack.c.bf16 %v1559_v28, %v1558_v20 }
 0x240   : > { %v1498_v30 = vmul.f32 0.2, %v1360_v27  ;;  %v1371_v48 = vadd.f32 %v3897_v3, %v4673_v4  ;;  %vm1434_vm13 = vcmp.ge.f32.partialorder %v1360_v27, 0.0  ;;  %v1564_v32 = vsel %vm1436_vm12, %v1368_v10, %v1500_v29 }
 0x241   : > { %v1362_v12 = vpop.f32.mrf.mxu1  ;;  %3970 = vmatprep.mubr.bf16.mxu0 %v1594_v16 }
 0x242   : > { %vm1437_vm14 = vcmp.ge.f32.partialorder %v1371_v48, 0.0  ;;  %v1501_v18 = vmul.f32 0.2, %v1371_v48  ;;  %v1363_v31 = vadd.f32 %v4673_v4, %v1362_v12  ;;  %3971 = vmatmul.mubr.bf16.gmra.mxu0 %v1595_v62  ;;  %v1562_v36 = vsel %vm1434_vm13, %v1360_v27, %v1498_v30  ;;  %v4259_v4 = vld [vmem:[%s5020_s1 + $0x130] sm:$0xff]  }
 0x243   : > { %4060 = vmatprep.subr.bf16.mxu0 %v4259_v4 }
 0x244   : > { %vm1435_vm15 = vcmp.ge.f32.partialorder %v1363_v31, 0.0  ;;  %v1499_v35 = vmul.f32 0.2, %v1363_v31  ;;  %v1565_v37 = vsel %vm1437_vm14, %v1371_v48, %v1501_v18  ;;  %4061 = vmatpush3.bf16.msra.mxu0 %v4259_v4 }
 0x245   : > { %v1597_v41 = vpack.c.bf16 %v1565_v37, %v1564_v32  ;;  %4062 = vmatprep.subr.bf16.mxu0 %v4260_v60 }
 0x246   : > { %v1563_v40 = vsel %vm1435_vm15, %v1363_v31, %v1499_v35 }
 0x247   : > { %v1596_v52 = vpack.c.bf16 %v1563_v40, %v1562_v36 }
 0x248   : > { %4063 = vmatpush3.bf16.msra.mxu0 %v4260_v60 }
 0x249   : > { %3974 = vmatprep.mubr.bf16.mxu0 %v1596_v52  ;;  %4064 = vmatprep.subr.bf16.mxu0 %v4261_v55 }
 0x24a   : > { %3975 = vmatmul.mubr.bf16.gmra.mxu0 %v1597_v41 }
 0x24c   : > { %4065 = vmatpush3.bf16.msra.mxu0 %v4261_v55 }
 0x24d   : > { %4066 = vmatprep.subr.bf16.mxu0 %v4262_v57 }
 0x250   : > { %4067 = vmatpush3.bf16.msra.mxu0 %v4262_v57 }
 0x251   : > { %4068 = vmatprep.subr.bf16.mxu0 %v4263_v22 }
 0x254   : > { %4069 = vmatpush3.bf16.msra.mxu0 %v4263_v22 }
 0x255   : > { %4070 = vmatprep.subr.bf16.mxu0 %v4264_v14 }
 0x258   : > { %4071 = vmatpush3.bf16.msra.mxu0 %v4264_v14 }
 0x259   : > { %4072 = vmatprep.subr.bf16.mxu0 %v4265_v23 }
 0x25c   : > { %4073 = vmatpush3.bf16.msra.mxu0 %v4265_v23 }
 0x292   : > { %v3916_v43 = vpop.f32.mrf.mxu0 }
 0x293   : > { %v1714_v34 = vadd.f32 %v3916_v43, %v4763_v38 }
 0x294   : > { %v1705_v0 = vpop.f32.mrf.mxu0 }
 0x295   : > { %v1706_v33 = vadd.f32 %v4763_v38, %v1705_v0  ;;  %v2026_v58 = vmul.f32 0.2, %v1714_v34  ;;  %vm1962_vm2 = vcmp.ge.f32.partialorder %v1714_v34, 0.0 }
 0x296   : > { %v3917_v61 = vpop.f32.mrf.mxu0 }
 0x297   : > { %v1717_v44 = vadd.f32 %v3917_v61, %v4763_v38  ;;  %v2024_v45 = vmul.f32 0.2, %v1706_v33  ;;  %vm1960_vm1 = vcmp.ge.f32.partialorder %v1706_v33, 0.0  ;;  %v2090_v51 = vsel %vm1962_vm2, %v1714_v34, %v2026_v58 }
 0x298   : > { %v1708_v47 = vpop.f32.mrf.mxu0 }
 0x299   : > { %vm1963_vm0 = vcmp.ge.f32.partialorder %v1717_v44, 0.0  ;;  %v2027_v53 = vmul.f32 0.2, %v1717_v44  ;;  %v1709_v54 = vadd.f32 %v4763_v38, %v1708_v47  ;;  %v2088_v2 = vsel %vm1960_vm1, %v1706_v33, %v2024_v45 }
 0x29a   : > { %v3920_v59 = vpop.f32.mrf.mxu0 }
 0x29b   : > { %vm1961_vm3 = vcmp.ge.f32.partialorder %v1709_v54, 0.0  ;;  %v2025_v63 = vmul.f32 0.2, %v1709_v54  ;;  %v2091_v24 = vsel %vm1963_vm0, %v1717_v44, %v2027_v53  ;;  %v1730_v49 = vadd.f32 %v3920_v59, %v4763_v38 }
 0x29c   : > { %v1721_v50 = vpop.f32.mrf.mxu0  ;;  %v2153_v8 = vpack.c.bf16 %v2091_v24, %v2090_v51 }
 0x29d   : > { %v1722_v1 = vadd.f32 %v4763_v38, %v1721_v50  ;;  %v2089_v46 = vsel %vm1961_vm3, %v1709_v54, %v2025_v63  ;;  %v2030_v15 = vmul.f32 0.2, %v1730_v49  ;;  %vm1966_vm6 = vcmp.ge.f32.partialorder %v1730_v49, 0.0 }
 0x29e   : > { %v3921_v5 = vpop.f32.mrf.mxu0  ;;  %v2152_v6 = vpack.c.bf16 %v2089_v46, %v2088_v2 }
 0x29f   : > { %v1733_v9 = vadd.f32 %v3921_v5, %v4763_v38  ;;  %v2028_v7 = vmul.f32 0.2, %v1722_v1  ;;  %vm1964_vm5 = vcmp.ge.f32.partialorder %v1722_v1, 0.0  ;;  %v2094_v29 = vsel %vm1966_vm6, %v1730_v49, %v2030_v15 }
 0x2a0   : > { %v1724_v56 = vpop.f32.mrf.mxu0  ;;  %3994 = vmatprep.mubr.bf16.mxu1 %v2152_v6 }
 0x2a1   : > { %vm1967_vm4 = vcmp.ge.f32.partialorder %v1733_v9, 0.0  ;;  %v2031_v13 = vmul.f32 0.2, %v1733_v9  ;;  %v1725_v26 = vadd.f32 %v4763_v38, %v1724_v56  ;;  %3995 = vmatmul.mubr.bf16.vlgmr.msra.gmra.mxu1 %v2153_v8  ;;  %v2092_v20 = vsel %vm1964_vm5, %v1722_v1, %v2028_v7 }
 0x2a2   : > { %v3924_v17 = vpop.f32.mrf.mxu0 }
 0x2a3   : > { %vm1965_vm7 = vcmp.ge.f32.partialorder %v1725_v26, 0.0  ;;  %v2029_v19 = vmul.f32 0.2, %v1725_v26  ;;  %v2095_v39 = vsel %vm1967_vm4, %v1733_v9, %v2031_v13  ;;  %v1746_v25 = vadd.f32 %v3924_v17, %v4763_v38 }
 0x2a4   : > { %v1737_v11 = vpop.f32.mrf.mxu0  ;;  %v2155_v16 = vpack.c.bf16 %v2095_v39, %v2094_v29 }
 0x2a5   : > { %v1738_v10 = vadd.f32 %v4763_v38, %v1737_v11  ;;  %v2093_v21 = vsel %vm1965_vm7, %v1725_v26, %v2029_v19  ;;  %v2034_v18 = vmul.f32 0.2, %v1746_v25  ;;  %vm1970_vm10 = vcmp.ge.f32.partialorder %v1746_v25, 0.0 }
 0x2a6   : > { %v3925_v27 = vpop.f32.mrf.mxu0  ;;  %v2154_v28 = vpack.c.bf16 %v2093_v21, %v2092_v20 }
 0x2a7   : > { %v1749_v3 = vadd.f32 %v3925_v27, %v4763_v38  ;;  %v2032_v48 = vmul.f32 0.2, %v1738_v10  ;;  %vm1968_vm9 = vcmp.ge.f32.partialorder %v1738_v10, 0.0  ;;  %v2098_v43 = vsel %vm1970_vm10, %v1746_v25, %v2034_v18 }
 0x2a8   : > { %v1740_v30 = vpop.f32.mrf.mxu0  ;;  %3998 = vmatprep.mubr.bf16.mxu1 %v2154_v28 }
 0x2a9   : > { %vm1971_vm8 = vcmp.ge.f32.partialorder %v1749_v3, 0.0  ;;  %v2035_v62 = vmul.f32 0.2, %v1749_v3  ;;  %v1741_v12 = vadd.f32 %v4763_v38, %v1740_v30  ;;  %3999 = vmatmul.mubr.bf16.gmra.mxu1 %v2155_v16  ;;  %v2096_v40 = vsel %vm1968_vm9, %v1738_v10, %v2032_v48 }
 0x2aa   : > { %v3928_v31 = vpop.f32.mrf.mxu0 }
 0x2ab   : > { %vm1969_vm11 = vcmp.ge.f32.partialorder %v1741_v12, 0.0  ;;  %v2033_v32 = vmul.f32 0.2, %v1741_v12  ;;  %v2099_v36 = vsel %vm1971_vm8, %v1749_v3, %v2035_v62  ;;  %v1762_v52 = vadd.f32 %v3928_v31, %v4763_v38 }
 0x2ac   : > { %v1753_v35 = vpop.f32.mrf.mxu0  ;;  %v2157_v60 = vpack.c.bf16 %v2099_v36, %v2098_v43 }
 0x2ad   : > { %v1754_v37 = vadd.f32 %v4763_v38, %v1753_v35  ;;  %v2097_v41 = vsel %vm1969_vm11, %v1741_v12, %v2033_v32  ;;  %v2038_v45 = vmul.f32 0.2, %v1762_v52  ;;  %vm1974_vm14 = vcmp.ge.f32.partialorder %v1762_v52, 0.0 }
 0x2ae   : > { %v3929_v42 = vpop.f32.mrf.mxu0  ;;  %v2156_v4 = vpack.c.bf16 %v2097_v41, %v2096_v40 }
 0x2af   : > { %v1765_v0 = vadd.f32 %v3929_v42, %v4763_v38  ;;  %v2036_v34 = vmul.f32 0.2, %v1754_v37  ;;  %vm1972_vm13 = vcmp.ge.f32.partialorder %v1754_v37, 0.0  ;;  %v2102_v1 = vsel %vm1974_vm14, %v1762_v52, %v2038_v45 }
 0x2b0   : > { %v1756_v33 = vpop.f32.mrf.mxu0  ;;  %4002 = vmatprep.mubr.bf16.mxu1 %v2156_v4 }
 0x2b1   : > { %vm1975_vm12 = vcmp.ge.f32.partialorder %v1765_v0, 0.0  ;;  %v2039_v61 = vmul.f32 0.2, %v1765_v0  ;;  %v1757_v44 = vadd.f32 %v4763_v38, %v1756_v33  ;;  %4003 = vmatmul.mubr.bf16.gmra.mxu1 %v2157_v60  ;;  %v2100_v58 = vsel %vm1972_vm13, %v1754_v37, %v2036_v34 }
 0x2b2   : > { %v3932_v47 = vpop.f32.mrf.mxu0 }
 0x2b3   : > { %vm1973_vm15 = vcmp.ge.f32.partialorder %v1757_v44, 0.0  ;;  %v2037_v53 = vmul.f32 0.2, %v1757_v44  ;;  %v2103_v55 = vsel %vm1975_vm12, %v1765_v0, %v2039_v61  ;;  %v1778_v63 = vadd.f32 %v3932_v47, %v4763_v38 }
 0x2b4   : > { %v1769_v54 = vpop.f32.mrf.mxu0  ;;  %v2159_v46 = vpack.c.bf16 %v2103_v55, %v2102_v1 }
 0x2b5   : > { %v1770_v57 = vadd.f32 %v4763_v38, %v1769_v54  ;;  %v2101_v59 = vsel %vm1973_vm15, %v1757_v44, %v2037_v53  ;;  %v2042_v6 = vmul.f32 0.2, %v1778_v63  ;;  %vm1978_vm2 = vcmp.ge.f32.partialorder %v1778_v63, 0.0 }
 0x2b6   : > { %v3933_v24 = vpop.f32.mrf.mxu0  ;;  %v2158_v50 = vpack.c.bf16 %v2101_v59, %v2100_v58 }
 0x2b7   : > { %v1781_v2 = vadd.f32 %v3933_v24, %v4763_v38  ;;  %v2040_v51 = vmul.f32 0.2, %v1770_v57  ;;  %vm1976_vm1 = vcmp.ge.f32.partialorder %v1770_v57, 0.0  ;;  %v2106_v15 = vsel %vm1978_vm2, %v1778_v63, %v2042_v6 }
 0x2b8   : > { %v1772_v22 = vpop.f32.mrf.mxu0  ;;  %4006 = vmatprep.mubr.bf16.mxu1 %v2158_v50 }
 0x2b9   : > { %vm1979_vm0 = vcmp.ge.f32.partialorder %v1781_v2, 0.0  ;;  %v2043_v49 = vmul.f32 0.2, %v1781_v2  ;;  %v1773_v5 = vadd.f32 %v4763_v38, %v1772_v22  ;;  %4007 = vmatmul.mubr.bf16.gmra.mxu1 %v2159_v46  ;;  %v2104_v26 = vsel %vm1976_vm1, %v1770_v57, %v2040_v51 }
 0x2ba   : > { %v3936_v8 = vpop.f32.mrf.mxu0 }
 0x2bb   : > { %vm1977_vm3 = vcmp.ge.f32.partialorder %v1773_v5, 0.0  ;;  %v2041_v9 = vmul.f32 0.2, %v1773_v5  ;;  %v2107_v56 = vsel %vm1979_vm0, %v1781_v2, %v2043_v49  ;;  %v1794_v17 = vadd.f32 %v3936_v8, %v4763_v38 }
 0x2bc   : > { %v1785_v7 = vpop.f32.mrf.mxu0  ;;  %v2161_v39 = vpack.c.bf16 %v2107_v56, %v2106_v15 }
 0x2bd   : > { %v1786_v13 = vadd.f32 %v4763_v38, %v1785_v7  ;;  %v2105_v14 = vsel %vm1977_vm3, %v1773_v5, %v2041_v9  ;;  %v2046_v27 = vmul.f32 0.2, %v1794_v17  ;;  %vm1982_vm6 = vcmp.ge.f32.partialorder %v1794_v17, 0.0 }
 0x2be   : > { %v3937_v19 = vpop.f32.mrf.mxu0  ;;  %v2160_v11 = vpack.c.bf16 %v2105_v14, %v2104_v26 }
 0x2bf   : > { %v1797_v10 = vadd.f32 %v3937_v19, %v4763_v38  ;;  %v2044_v21 = vmul.f32 0.2, %v1786_v13  ;;  %vm1980_vm5 = vcmp.ge.f32.partialorder %v1786_v13, 0.0  ;;  %v2110_v12 = vsel %vm1982_vm6, %v1794_v17, %v2046_v27 }
 0x2c0   : > { %v1788_v20 = vpop.f32.mrf.mxu0  ;;  %4010 = vmatprep.mubr.bf16.mxu1 %v2160_v11 }
 0x2c1   : > { %vm1983_vm4 = vcmp.ge.f32.partialorder %v1797_v10, 0.0  ;;  %v2047_v23 = vmul.f32 0.2, %v1797_v10  ;;  %v1789_v25 = vadd.f32 %v4763_v38, %v1788_v20  ;;  %4011 = vmatmul.mubr.bf16.gmra.mxu1 %v2161_v39  ;;  %v2108_v48 = vsel %vm1980_vm5, %v1786_v13, %v2044_v21 }
 0x2c2   : > { %v3940_v28 = vpop.f32.mrf.mxu0 }
 0x2c3   : > { %vm1981_vm7 = vcmp.ge.f32.partialorder %v1789_v25, 0.0  ;;  %v2045_v29 = vmul.f32 0.2, %v1789_v25  ;;  %v2111_v3 = vsel %vm1983_vm4, %v1797_v10, %v2047_v23  ;;  %v1810_v18 = vadd.f32 %v3940_v28, %v4763_v38 }
 0x2c4   : > { %v1801_v16 = vpop.f32.mrf.mxu0  ;;  %v2163_v35 = vpack.c.bf16 %v2111_v3, %v2110_v12 }
 0x2c5   : > { %v1802_v30 = vadd.f32 %v4763_v38, %v1801_v16  ;;  %v2109_v62 = vsel %vm1981_vm7, %v1789_v25, %v2045_v29  ;;  %v2050_v42 = vmul.f32 0.2, %v1810_v18  ;;  %vm1986_vm10 = vcmp.ge.f32.partialorder %v1810_v18, 0.0 }
 0x2c6   : > { %v3941_v31 = vpop.f32.mrf.mxu0  ;;  %v2162_v32 = vpack.c.bf16 %v2109_v62, %v2108_v48 }
 0x2c7   : > { %v1813_v36 = vadd.f32 %v3941_v31, %v4763_v38  ;;  %v2048_v40 = vmul.f32 0.2, %v1802_v30  ;;  %vm1984_vm9 = vcmp.ge.f32.partialorder %v1802_v30, 0.0  ;;  %v2114_v44 = vsel %vm1986_vm10, %v1810_v18, %v2050_v42 }
 0x2c8   : > { %v1804_v37 = vpop.f32.mrf.mxu0  ;;  %4014 = vmatprep.mubr.bf16.mxu1 %v2162_v32 }
 0x2c9   : > { %vm1987_vm8 = vcmp.ge.f32.partialorder %v1813_v36, 0.0  ;;  %v2051_v41 = vmul.f32 0.2, %v1813_v36  ;;  %v1805_v52 = vadd.f32 %v4763_v38, %v1804_v37  ;;  %4015 = vmatmul.mubr.bf16.gmra.mxu1 %v2163_v35  ;;  %v2112_v34 = vsel %vm1984_vm9, %v1802_v30, %v2048_v40 }
 0x2ca   : > { %v3944_v4 = vpop.f32.mrf.mxu0 }
 0x2cb   : > { %vm1985_vm11 = vcmp.ge.f32.partialorder %v1805_v52, 0.0  ;;  %v2049_v43 = vmul.f32 0.2, %v1805_v52  ;;  %v2115_v0 = vsel %vm1987_vm8, %v1813_v36, %v2051_v41  ;;  %v1826_v45 = vadd.f32 %v3944_v4, %v4763_v38 }
 0x2cc   : > { %v1817_v60 = vpop.f32.mrf.mxu0  ;;  %v2165_v54 = vpack.c.bf16 %v2115_v0, %v2114_v44 }
 0x2cd   : > { %v1818_v33 = vadd.f32 %v4763_v38, %v1817_v60  ;;  %v2113_v61 = vsel %vm1985_vm11, %v1805_v52, %v2049_v43  ;;  %v2054_v24 = vmul.f32 0.2, %v1826_v45  ;;  %vm1990_vm14 = vcmp.ge.f32.partialorder %v1826_v45, 0.0 }
 0x2ce   : > { %v3945_v47 = vpop.f32.mrf.mxu0  ;;  %v2164_v53 = vpack.c.bf16 %v2113_v61, %v2112_v34 }
 0x2cf   : > { %v1829_v55 = vadd.f32 %v3945_v47, %v4763_v38  ;;  %v2052_v58 = vmul.f32 0.2, %v1818_v33  ;;  %vm1988_vm13 = vcmp.ge.f32.partialorder %v1818_v33, 0.0  ;;  %v2118_v5 = vsel %vm1990_vm14, %v1826_v45, %v2054_v24 }
 0x2d0   : > { %v1820_v57 = vpop.f32.mrf.mxu0  ;;  %4018 = vmatprep.mubr.bf16.mxu1 %v2164_v53 }
 0x2d1   : > { %vm1991_vm12 = vcmp.ge.f32.partialorder %v1829_v55, 0.0  ;;  %v2055_v59 = vmul.f32 0.2, %v1829_v55  ;;  %v1821_v63 = vadd.f32 %v4763_v38, %v1820_v57  ;;  %4019 = vmatmul.mubr.bf16.gmra.mxu1 %v2165_v54  ;;  %v2116_v51 = vsel %vm1988_vm13, %v1818_v33, %v2052_v58 }
 0x2d2   : > { %v3948_v50 = vpop.f32.mrf.mxu0 }
 0x2d3   : > { %vm1989_vm15 = vcmp.ge.f32.partialorder %v1821_v63, 0.0  ;;  %v2053_v1 = vmul.f32 0.2, %v1821_v63  ;;  %v2119_v2 = vsel %vm1991_vm12, %v1829_v55, %v2055_v59  ;;  %v1842_v6 = vadd.f32 %v3948_v50, %v4763_v38 }
 0x2d4   : > { %v1833_v46 = vpop.f32.mrf.mxu0  ;;  %v2167_v56 = vpack.c.bf16 %v2119_v2, %v2118_v5 }
 0x2d5   : > { %v1834_v22 = vadd.f32 %v4763_v38, %v1833_v46  ;;  %v2117_v49 = vsel %vm1989_vm15, %v1821_v63, %v2053_v1  ;;  %v2058_v17 = vmul.f32 0.2, %v1842_v6  ;;  %vm1994_vm2 = vcmp.ge.f32.partialorder %v1842_v6, 0.0 }
 0x2d6   : > { %v3949_v8 = vpop.f32.mrf.mxu0  ;;  %v2166_v9 = vpack.c.bf16 %v2117_v49, %v2116_v51 }
 0x2d7   : > { %v1845_v7 = vadd.f32 %v3949_v8, %v4763_v38  ;;  %v2056_v26 = vmul.f32 0.2, %v1834_v22  ;;  %vm1992_vm1 = vcmp.ge.f32.partialorder %v1834_v22, 0.0  ;;  %v2122_v25 = vsel %vm1994_vm2, %v1842_v6, %v2058_v17 }
 0x2d8   : > { %v1836_v13 = vpop.f32.mrf.mxu0  ;;  %4022 = vmatprep.mubr.bf16.mxu1 %v2166_v9 }
 0x2d9   : > { %vm1995_vm0 = vcmp.ge.f32.partialorder %v1845_v7, 0.0  ;;  %v2059_v14 = vmul.f32 0.2, %v1845_v7  ;;  %v1837_v15 = vadd.f32 %v4763_v38, %v1836_v13  ;;  %4023 = vmatmul.mubr.bf16.gmra.mxu1 %v2167_v56  ;;  %v2120_v21 = vsel %vm1992_vm1, %v1834_v22, %v2056_v26 }
 0x2da   : > { %v3952_v19 = vpop.f32.mrf.mxu0 }
 0x2db   : > { %vm1993_vm3 = vcmp.ge.f32.partialorder %v1837_v15, 0.0  ;;  %v2057_v11 = vmul.f32 0.2, %v1837_v15  ;;  %v2123_v39 = vsel %vm1995_vm0, %v1845_v7, %v2059_v14  ;;  %v1858_v27 = vadd.f32 %v3952_v19, %v4763_v38 }
 0x2dc   : > { %v1849_v10 = vpop.f32.mrf.mxu0  ;;  %v2169_v3 = vpack.c.bf16 %v2123_v39, %v2122_v25 }
 0x2dd   : > { %v1850_v20 = vadd.f32 %v4763_v38, %v1849_v10  ;;  %v2121_v23 = vsel %vm1993_vm3, %v1837_v15, %v2057_v11  ;;  %v2062_v18 = vmul.f32 0.2, %v1858_v27  ;;  %vm1998_vm6 = vcmp.ge.f32.partialorder %v1858_v27, 0.0 }
 0x2de   : > { %v3953_v28 = vpop.f32.mrf.mxu0  ;;  %v2168_v29 = vpack.c.bf16 %v2121_v23, %v2120_v21 }
 0x2df   : > { %v1861_v16 = vadd.f32 %v3953_v28, %v4763_v38  ;;  %v2060_v48 = vmul.f32 0.2, %v1850_v20  ;;  %vm1996_vm5 = vcmp.ge.f32.partialorder %v1850_v20, 0.0  ;;  %v2126_v52 = vsel %vm1998_vm6, %v1858_v27, %v2062_v18 }
 0x2e0   : > { %v1852_v30 = vpop.f32.mrf.mxu0  ;;  %4026 = vmatprep.mubr.bf16.mxu1 %v2168_v29 }
 0x2e1   : > { %vm1999_vm4 = vcmp.ge.f32.partialorder %v1861_v16, 0.0  ;;  %v2063_v62 = vmul.f32 0.2, %v1861_v16  ;;  %v1853_v12 = vadd.f32 %v4763_v38, %v1852_v30  ;;  %4027 = vmatmul.mubr.bf16.gmra.mxu1 %v2169_v3  ;;  %v2124_v40 = vsel %vm1996_vm5, %v1850_v20, %v2060_v48 }
 0x2e2   : > { %v3956_v31 = vpop.f32.mrf.mxu0 }
 0x2e3   : > { %vm1997_vm7 = vcmp.ge.f32.partialorder %v1853_v12, 0.0  ;;  %v2061_v32 = vmul.f32 0.2, %v1853_v12  ;;  %v2127_v35 = vsel %vm1999_vm4, %v1861_v16, %v2063_v62  ;;  %v1874_v42 = vadd.f32 %v3956_v31, %v4763_v38 }
 0x2e4   : > { %v1865_v36 = vpop.f32.mrf.mxu0  ;;  %v2171_v0 = vpack.c.bf16 %v2127_v35, %v2126_v52 }
 0x2e5   : > { %v1866_v37 = vadd.f32 %v4763_v38, %v1865_v36  ;;  %v2125_v41 = vsel %vm1997_vm7, %v1853_v12, %v2061_v32  ;;  %v2066_v45 = vmul.f32 0.2, %v1874_v42  ;;  %vm2002_vm10 = vcmp.ge.f32.partialorder %v1874_v42, 0.0 }
 0x2e6   : > { %v3957_v4 = vpop.f32.mrf.mxu0  ;;  %v2170_v43 = vpack.c.bf16 %v2125_v41, %v2124_v40 }
 0x2e7   : > { %v1877_v60 = vadd.f32 %v3957_v4, %v4763_v38  ;;  %v2064_v34 = vmul.f32 0.2, %v1866_v37  ;;  %vm2000_vm9 = vcmp.ge.f32.partialorder %v1866_v37, 0.0  ;;  %v2130_v63 = vsel %vm2002_vm10, %v1874_v42, %v2066_v45 }
 0x2e8   : > { %v1868_v33 = vpop.f32.mrf.mxu0  ;;  %4030 = vmatprep.mubr.bf16.mxu1 %v2170_v43 }
 0x2e9   : > { %vm2003_vm8 = vcmp.ge.f32.partialorder %v1877_v60, 0.0  ;;  %v2067_v61 = vmul.f32 0.2, %v1877_v60  ;;  %v1869_v44 = vadd.f32 %v4763_v38, %v1868_v33  ;;  %4031 = vmatmul.mubr.bf16.gmra.mxu1 %v2171_v0  ;;  %v2128_v58 = vsel %vm2000_vm9, %v1866_v37, %v2064_v34 }
 0x2ea   : > { %v3960_v47 = vpop.f32.mrf.mxu0 }
 0x2eb   : > { %vm2001_vm11 = vcmp.ge.f32.partialorder %v1869_v44, 0.0  ;;  %v2065_v53 = vmul.f32 0.2, %v1869_v44  ;;  %v2131_v54 = vsel %vm2003_vm8, %v1877_v60, %v2067_v61  ;;  %v1890_v24 = vadd.f32 %v3960_v47, %v4763_v38 }
 0x2ec   : > { %v1881_v55 = vpop.f32.mrf.mxu0  ;;  %v2173_v2 = vpack.c.bf16 %v2131_v54, %v2130_v63 }
 0x2ed   : > { %v1882_v57 = vadd.f32 %v4763_v38, %v1881_v55  ;;  %v2129_v59 = vsel %vm2001_vm11, %v1869_v44, %v2065_v53  ;;  %v2070_v6 = vmul.f32 0.2, %v1890_v24  ;;  %vm2006_vm14 = vcmp.ge.f32.partialorder %v1890_v24, 0.0 }
 0x2ee   : > { %v3961_v50 = vpop.f32.mrf.mxu0  ;;  %v2172_v1 = vpack.c.bf16 %v2129_v59, %v2128_v58 }
 0x2ef   : > { %v1893_v46 = vadd.f32 %v3961_v50, %v4763_v38  ;;  %v2068_v51 = vmul.f32 0.2, %v1882_v57  ;;  %vm2004_vm13 = vcmp.ge.f32.partialorder %v1882_v57, 0.0  ;;  %v2134_v15 = vsel %vm2006_vm14, %v1890_v24, %v2070_v6 }
 0x2f0   : > { %v1884_v22 = vpop.f32.mrf.mxu0  ;;  %4034 = vmatprep.mubr.bf16.mxu1 %v2172_v1 }
 0x2f1   : > { %vm2007_vm12 = vcmp.ge.f32.partialorder %v1893_v46, 0.0  ;;  %v2071_v49 = vmul.f32 0.2, %v1893_v46  ;;  %v1885_v5 = vadd.f32 %v4763_v38, %v1884_v22  ;;  %4035 = vmatmul.mubr.bf16.gmra.mxu1 %v2173_v2  ;;  %v2132_v26 = vsel %vm2004_vm13, %v1882_v57, %v2068_v51 }
 0x2f2   : > { %v3964_v8 = vpop.f32.mrf.mxu0 }
 0x2f3   : > { %vm2005_vm15 = vcmp.ge.f32.partialorder %v1885_v5, 0.0  ;;  %v2069_v9 = vmul.f32 0.2, %v1885_v5  ;;  %v2135_v56 = vsel %vm2007_vm12, %v1893_v46, %v2071_v49  ;;  %v1906_v17 = vadd.f32 %v3964_v8, %v4763_v38 }
 0x2f4   : > { %v1897_v7 = vpop.f32.mrf.mxu0  ;;  %v2175_v39 = vpack.c.bf16 %v2135_v56, %v2134_v15 }
 0x2f5   : > { %v1898_v13 = vadd.f32 %v4763_v38, %v1897_v7  ;;  %v2133_v14 = vsel %vm2005_vm15, %v1885_v5, %v2069_v9  ;;  %v2074_v27 = vmul.f32 0.2, %v1906_v17  ;;  %vm2010_vm2 = vcmp.ge.f32.partialorder %v1906_v17, 0.0 }
 0x2f6   : > { %v3965_v19 = vpop.f32.mrf.mxu0  ;;  %v2174_v11 = vpack.c.bf16 %v2133_v14, %v2132_v26 }
 0x2f7   : > { %v1909_v10 = vadd.f32 %v3965_v19, %v4763_v38  ;;  %v2072_v21 = vmul.f32 0.2, %v1898_v13  ;;  %vm2008_vm1 = vcmp.ge.f32.partialorder %v1898_v13, 0.0  ;;  %v2138_v12 = vsel %vm2010_vm2, %v1906_v17, %v2074_v27  ;;  %v4850_v27 = vld [vmem:[%s5021_s2 + $0x3] ss:$0 sm:$0xff] }
 0x2f8   : > { %v1900_v20 = vpop.f32.mrf.mxu0  ;;  %4038 = vmatprep.mubr.bf16.mxu1 %v2174_v11 }
 0x2f9   : > { %vm2011_vm0 = vcmp.ge.f32.partialorder %v1909_v10, 0.0  ;;  %v2075_v23 = vmul.f32 0.2, %v1909_v10  ;;  %v1901_v25 = vadd.f32 %v4763_v38, %v1900_v20  ;;  %4039 = vmatmul.mubr.bf16.gmra.mxu1 %v2175_v39  ;;  %v2136_v48 = vsel %vm2008_vm1, %v1898_v13, %v2072_v21 }
 0x2fa   : > { %v3968_v28 = vpop.f32.mrf.mxu0 }
 0x2fb   : > { %vm2009_vm3 = vcmp.ge.f32.partialorder %v1901_v25, 0.0  ;;  %v2073_v29 = vmul.f32 0.2, %v1901_v25  ;;  %v2139_v3 = vsel %vm2011_vm0, %v1909_v10, %v2075_v23  ;;  %v1922_v18 = vadd.f32 %v3968_v28, %v4763_v38 }
 0x2fc   : > { %v1913_v16 = vpop.f32.mrf.mxu0  ;;  %v2177_v35 = vpack.c.bf16 %v2139_v3, %v2138_v12 }
 0x2fd   : > { %v1914_v30 = vadd.f32 %v4763_v38, %v1913_v16  ;;  %v2137_v62 = vsel %vm2009_vm3, %v1901_v25, %v2073_v29  ;;  %v2078_v42 = vmul.f32 0.2, %v1922_v18  ;;  %vm2014_vm6 = vcmp.ge.f32.partialorder %v1922_v18, 0.0 }
 0x2fe   : > { %v3969_v31 = vpop.f32.mrf.mxu0  ;;  %v2176_v32 = vpack.c.bf16 %v2137_v62, %v2136_v48 }
 0x2ff   : > { %v1925_v36 = vadd.f32 %v3969_v31, %v4763_v38  ;;  %v2076_v40 = vmul.f32 0.2, %v1914_v30  ;;  %vm2012_vm5 = vcmp.ge.f32.partialorder %v1914_v30, 0.0  ;;  %v2142_v44 = vsel %vm2014_vm6, %v1922_v18, %v2078_v42 }
 0x300   : > { %v1916_v37 = vpop.f32.mrf.mxu0  ;;  %4042 = vmatprep.mubr.bf16.mxu1 %v2176_v32 }
 0x301   : > { %vm2015_vm4 = vcmp.ge.f32.partialorder %v1925_v36, 0.0  ;;  %v2079_v41 = vmul.f32 0.2, %v1925_v36  ;;  %v1917_v52 = vadd.f32 %v4763_v38, %v1916_v37  ;;  %4043 = vmatmul.mubr.bf16.gmra.mxu1 %v2177_v35  ;;  %v2140_v34 = vsel %vm2012_vm5, %v1914_v30, %v2076_v40 }
 0x302   : > { %v3972_v4 = vpop.f32.mrf.mxu0 }
 0x303   : > { %vm2013_vm7 = vcmp.ge.f32.partialorder %v1917_v52, 0.0  ;;  %v2077_v43 = vmul.f32 0.2, %v1917_v52  ;;  %v2143_v0 = vsel %vm2015_vm4, %v1925_v36, %v2079_v41  ;;  %v1938_v45 = vadd.f32 %v3972_v4, %v4763_v38 }
 0x304   : > { %v1929_v60 = vpop.f32.mrf.mxu0  ;;  %v2179_v54 = vpack.c.bf16 %v2143_v0, %v2142_v44 }
 0x305   : > { %v1930_v33 = vadd.f32 %v4763_v38, %v1929_v60  ;;  %v2141_v61 = vsel %vm2013_vm7, %v1917_v52, %v2077_v43  ;;  %v2082_v24 = vmul.f32 0.2, %v1938_v45  ;;  %vm2018_vm10 = vcmp.ge.f32.partialorder %v1938_v45, 0.0 }
 0x306   : > { %v3973_v47 = vpop.f32.mrf.mxu0  ;;  %v2178_v53 = vpack.c.bf16 %v2141_v61, %v2140_v34 }
 0x307   : > { %v1941_v55 = vadd.f32 %v3973_v47, %v4763_v38  ;;  %v2080_v58 = vmul.f32 0.2, %v1930_v33  ;;  %vm2016_vm9 = vcmp.ge.f32.partialorder %v1930_v33, 0.0  ;;  %v2146_v6 = vsel %vm2018_vm10, %v1938_v45, %v2082_v24 }
 0x308   : > { %v1932_v57 = vpop.f32.mrf.mxu0  ;;  %4046 = vmatprep.mubr.bf16.mxu1 %v2178_v53 }
 0x309   : > { %vm2019_vm8 = vcmp.ge.f32.partialorder %v1941_v55, 0.0  ;;  %v2083_v59 = vmul.f32 0.2, %v1941_v55  ;;  %v1933_v63 = vadd.f32 %v4763_v38, %v1932_v57  ;;  %4047 = vmatmul.mubr.bf16.gmra.mxu1 %v2179_v54  ;;  %v2144_v49 = vsel %vm2016_vm9, %v1930_v33, %v2080_v58 }
 0x30a   : > { %v3976_v50 = vpop.f32.mrf.mxu0 }
 0x30b   : > { %vm2017_vm11 = vcmp.ge.f32.partialorder %v1933_v63, 0.0  ;;  %v2081_v1 = vmul.f32 0.2, %v1933_v63  ;;  %v2147_v2 = vsel %vm2019_vm8, %v1941_v55, %v2083_v59  ;;  %v1954_v46 = vadd.f32 %v3976_v50, %v4763_v38 }
 0x30c   : > { %v1945_v22 = vpop.f32.mrf.mxu0  ;;  %v2181_v56 = vpack.c.bf16 %v2147_v2, %v2146_v6 }
 0x30d   : > { %v1946_v51 = vadd.f32 %v4763_v38, %v1945_v22  ;;  %v2145_v5 = vsel %vm2017_vm11, %v1933_v63, %v2081_v1  ;;  %vm2022_vm12 = vcmp.ge.f32.partialorder %v1954_v46, 0.0  ;;  %v2086_v13 = vmul.f32 0.2, %v1954_v46 }
 0x30e   : > { %v3977_v8 = vpop.f32.mrf.mxu0  ;;  %v2180_v9 = vpack.c.bf16 %v2145_v5, %v2144_v49 }
 0x30f   : > { %v1957_v7 = vadd.f32 %v3977_v8, %v4763_v38  ;;  %v2084_v14 = vmul.f32 0.2, %v1946_v51  ;;  %vm2020_vm14 = vcmp.ge.f32.partialorder %v1946_v51, 0.0  ;;  %v2150_v11 = vsel %vm2022_vm12, %v1954_v46, %v2086_v13 }
 0x310   : > { %v1948_v26 = vpop.f32.mrf.mxu0  ;;  %4050 = vmatprep.mubr.bf16.mxu1 %v2180_v9 }
 0x311   : > { %vm2023_vm13 = vcmp.ge.f32.partialorder %v1957_v7, 0.0  ;;  %v2087_v15 = vmul.f32 0.2, %v1957_v7  ;;  %v1949_v17 = vadd.f32 %v4763_v38, %v1948_v26  ;;  %4051 = vmatmul.mubr.bf16.gmra.mxu1 %v2181_v56  ;;  %v2148_v10 = vsel %vm2020_vm14, %v1946_v51, %v2084_v14 }
 0x313   : > { %vm2021_vm15 = vcmp.ge.f32.partialorder %v1949_v17, 0.0  ;;  %v2085_v19 = vmul.f32 0.2, %v1949_v17  ;;  %v2151_v39 = vsel %vm2023_vm13, %v1957_v7, %v2087_v15 }
 0x314   : > { %v2183_v23 = vpack.c.bf16 %v2151_v39, %v2150_v11 }
 0x315   : > { %v2149_v20 = vsel %vm2021_vm15, %v1949_v17, %v2085_v19 }
 0x316   : > { %v2182_v21 = vpack.c.bf16 %v2149_v20, %v2148_v10 }
 0x318   : > { %4054 = vmatprep.mubr.bf16.mxu1 %v2182_v21 }
 0x319   : > { %4055 = vmatmul.mubr.bf16.gmra.mxu1 %v2183_v23 }
 0x361   : > { %v3996_v25 = vpop.f32.mrf.mxu1 }
 0x362   : > { %v2300_v29 = vadd.f32 %v3996_v25, %v4850_v27 }
 0x363   : > { %v2291_v28 = vpop.f32.mrf.mxu1 }
 0x364   : > { %v2292_v38 = vadd.f32 %v4850_v27, %v2291_v28  ;;  %v2612_v18 = vmul.f32 0.2, %v2300_v29  ;;  %vm2548_vm2 = vcmp.ge.f32.partialorder %v2300_v29, 0.0 }
 0x365   : > { %v3997_v3 = vpop.f32.mrf.mxu1 }
 0x366   : > { %v2303_v16 = vadd.f32 %v3997_v3, %v4850_v27  ;;  %v2610_v48 = vmul.f32 0.2, %v2292_v38  ;;  %vm2546_vm1 = vcmp.ge.f32.partialorder %v2292_v38, 0.0  ;;  %v2676_v52 = vsel %vm2548_vm2, %v2300_v29, %v2612_v18 }
 0x367   : > { %v2294_v30 = vpop.f32.mrf.mxu1 }
 0x368   : > { %vm2549_vm0 = vcmp.ge.f32.partialorder %v2303_v16, 0.0  ;;  %v2613_v62 = vmul.f32 0.2, %v2303_v16  ;;  %v2295_v12 = vadd.f32 %v4850_v27, %v2294_v30  ;;  %v2674_v40 = vsel %vm2546_vm1, %v2292_v38, %v2610_v48 }
 0x369   : > { %v4000_v31 = vpop.f32.mrf.mxu1 }
 0x36a   : > { %vm2547_vm3 = vcmp.ge.f32.partialorder %v2295_v12, 0.0  ;;  %v2611_v32 = vmul.f32 0.2, %v2295_v12  ;;  %v2677_v35 = vsel %vm2549_vm0, %v2303_v16, %v2613_v62  ;;  %v2316_v42 = vadd.f32 %v4000_v31, %v4850_v27 }
 0x36b   : > { %v2307_v36 = vpop.f32.mrf.mxu1  ;;  %v2739_v0 = vpack.c.bf16 %v2677_v35, %v2676_v52 }
 0x36c   : > { %v2308_v37 = vadd.f32 %v4850_v27, %v2307_v36  ;;  %v2675_v41 = vsel %vm2547_vm3, %v2295_v12, %v2611_v32  ;;  %v2616_v45 = vmul.f32 0.2, %v2316_v42  ;;  %vm2552_vm6 = vcmp.ge.f32.partialorder %v2316_v42, 0.0 }
 0x36d   : > { %v4001_v4 = vpop.f32.mrf.mxu1  ;;  %v2738_v43 = vpack.c.bf16 %v2675_v41, %v2674_v40 }
 0x36e   : > { %v2319_v60 = vadd.f32 %v4001_v4, %v4850_v27  ;;  %v2614_v34 = vmul.f32 0.2, %v2308_v37  ;;  %vm2550_vm5 = vcmp.ge.f32.partialorder %v2308_v37, 0.0  ;;  %v2680_v1 = vsel %vm2552_vm6, %v2316_v42, %v2616_v45 }
 0x36f   : > { %v2310_v33 = vpop.f32.mrf.mxu1  ;;  %4074 = vmatprep.mubr.bf16.mxu0 %v2738_v43 }
 0x370   : > { %vm2553_vm4 = vcmp.ge.f32.partialorder %v2319_v60, 0.0  ;;  %v2617_v61 = vmul.f32 0.2, %v2319_v60  ;;  %v2311_v44 = vadd.f32 %v4850_v27, %v2310_v33  ;;  %4075 = vmatmul.mubr.bf16.vlgmr.msra.gmra.mxu0 %v2739_v0  ;;  %v2678_v58 = vsel %vm2550_vm5, %v2308_v37, %v2614_v34 }
 0x371   : > { %v4004_v47 = vpop.f32.mrf.mxu1 }
 0x372   : > { %vm2551_vm7 = vcmp.ge.f32.partialorder %v2311_v44, 0.0  ;;  %v2615_v53 = vmul.f32 0.2, %v2311_v44  ;;  %v2681_v55 = vsel %vm2553_vm4, %v2319_v60, %v2617_v61  ;;  %v2332_v63 = vadd.f32 %v4004_v47, %v4850_v27 }
 0x373   : > { %v2323_v54 = vpop.f32.mrf.mxu1  ;;  %v2741_v46 = vpack.c.bf16 %v2681_v55, %v2680_v1 }
 0x374   : > { %v2324_v57 = vadd.f32 %v4850_v27, %v2323_v54  ;;  %v2679_v59 = vsel %vm2551_vm7, %v2311_v44, %v2615_v53  ;;  %v2620_v6 = vmul.f32 0.2, %v2332_v63  ;;  %vm2556_vm10 = vcmp.ge.f32.partialorder %v2332_v63, 0.0 }
 0x375   : > { %v4005_v24 = vpop.f32.mrf.mxu1  ;;  %v2740_v50 = vpack.c.bf16 %v2679_v59, %v2678_v58 }
 0x376   : > { %v2335_v2 = vadd.f32 %v4005_v24, %v4850_v27  ;;  %v2618_v51 = vmul.f32 0.2, %v2324_v57  ;;  %vm2554_vm9 = vcmp.ge.f32.partialorder %v2324_v57, 0.0  ;;  %v2684_v11 = vsel %vm2556_vm10, %v2332_v63, %v2620_v6 }
 0x377   : > { %v2326_v22 = vpop.f32.mrf.mxu1  ;;  %4078 = vmatprep.mubr.bf16.mxu0 %v2740_v50 }
 0x378   : > { %vm2557_vm8 = vcmp.ge.f32.partialorder %v2335_v2, 0.0  ;;  %v2621_v49 = vmul.f32 0.2, %v2335_v2  ;;  %v2327_v5 = vadd.f32 %v4850_v27, %v2326_v22  ;;  %4079 = vmatmul.mubr.bf16.gmra.mxu0 %v2741_v46  ;;  %v2682_v26 = vsel %vm2554_vm9, %v2324_v57, %v2618_v51 }
 0x379   : > { %v4008_v8 = vpop.f32.mrf.mxu1 }
 0x37a   : > { %vm2555_vm11 = vcmp.ge.f32.partialorder %v2327_v5, 0.0  ;;  %v2619_v9 = vmul.f32 0.2, %v2327_v5  ;;  %v2685_v7 = vsel %vm2557_vm8, %v2335_v2, %v2621_v49  ;;  %v2348_v15 = vadd.f32 %v4008_v8, %v4850_v27 }
 0x37b   : > { %v2339_v56 = vpop.f32.mrf.mxu1  ;;  %v2743_v10 = vpack.c.bf16 %v2685_v7, %v2684_v11 }
 0x37c   : > { %v2340_v13 = vadd.f32 %v4850_v27, %v2339_v56  ;;  %v2683_v14 = vsel %vm2555_vm11, %v2327_v5, %v2619_v9  ;;  %v2624_v28 = vmul.f32 0.2, %v2348_v15  ;;  %vm2560_vm14 = vcmp.ge.f32.partialorder %v2348_v15, 0.0 }
 0x37d   : > { %v4009_v17 = vpop.f32.mrf.mxu1  ;;  %v2742_v19 = vpack.c.bf16 %v2683_v14, %v2682_v26 }
 0x37e   : > { %v2351_v39 = vadd.f32 %v4009_v17, %v4850_v27  ;;  %v2622_v21 = vmul.f32 0.2, %v2340_v13  ;;  %vm2558_vm13 = vcmp.ge.f32.partialorder %v2340_v13, 0.0  ;;  %v2688_v32 = vsel %vm2560_vm14, %v2348_v15, %v2624_v28 }
 0x37f   : > { %v2342_v20 = vpop.f32.mrf.mxu1  ;;  %4082 = vmatprep.mubr.bf16.mxu0 %v2742_v19 }
 0x380   : > { %vm2561_vm12 = vcmp.ge.f32.partialorder %v2351_v39, 0.0  ;;  %v2625_v23 = vmul.f32 0.2, %v2351_v39  ;;  %v2343_v25 = vadd.f32 %v4850_v27, %v2342_v20  ;;  %4083 = vmatmul.mubr.bf16.gmra.mxu0 %v2743_v10  ;;  %v2686_v48 = vsel %vm2558_vm13, %v2340_v13, %v2622_v21 }
 0x381   : > { %v4012_v38 = vpop.f32.mrf.mxu1 }
 0x382   : > { %vm2559_vm15 = vcmp.ge.f32.partialorder %v2343_v25, 0.0  ;;  %v2623_v29 = vmul.f32 0.2, %v2343_v25  ;;  %v2689_v16 = vsel %vm2561_vm12, %v2351_v39, %v2625_v23  ;;  %v2364_v12 = vadd.f32 %v4012_v38, %v4850_v27 }
 0x383   : > { %v2355_v3 = vpop.f32.mrf.mxu1  ;;  %v2745_v36 = vpack.c.bf16 %v2689_v16, %v2688_v32 }
 0x384   : > { %v2356_v30 = vadd.f32 %v4850_v27, %v2355_v3  ;;  %v2687_v62 = vsel %vm2559_vm15, %v2343_v25, %v2623_v29  ;;  %v2628_v42 = vmul.f32 0.2, %v2364_v12  ;;  %vm2564_vm2 = vcmp.ge.f32.partialorder %v2364_v12, 0.0 }
 0x385   : > { %v4013_v18 = vpop.f32.mrf.mxu1  ;;  %v2744_v31 = vpack.c.bf16 %v2687_v62, %v2686_v48 }
 0x386   : > { %v2367_v35 = vadd.f32 %v4013_v18, %v4850_v27  ;;  %v2626_v40 = vmul.f32 0.2, %v2356_v30  ;;  %vm2562_vm1 = vcmp.ge.f32.partialorder %v2356_v30, 0.0  ;;  %v2692_v44 = vsel %vm2564_vm2, %v2364_v12, %v2628_v42 }
 0x387   : > { %v2358_v37 = vpop.f32.mrf.mxu1  ;;  %4086 = vmatprep.mubr.bf16.mxu0 %v2744_v31 }
 0x388   : > { %vm2565_vm0 = vcmp.ge.f32.partialorder %v2367_v35, 0.0  ;;  %v2629_v41 = vmul.f32 0.2, %v2367_v35  ;;  %v2359_v52 = vadd.f32 %v4850_v27, %v2358_v37  ;;  %4087 = vmatmul.mubr.bf16.gmra.mxu0 %v2745_v36  ;;  %v2690_v34 = vsel %vm2562_vm1, %v2356_v30, %v2626_v40 }
 0x389   : > { %v4016_v4 = vpop.f32.mrf.mxu1 }
 0x38a   : > { %vm2563_vm3 = vcmp.ge.f32.partialorder %v2359_v52, 0.0  ;;  %v2627_v43 = vmul.f32 0.2, %v2359_v52  ;;  %v2693_v0 = vsel %vm2565_vm0, %v2367_v35, %v2629_v41  ;;  %v2380_v45 = vadd.f32 %v4016_v4, %v4850_v27 }
 0x38b   : > { %v2371_v60 = vpop.f32.mrf.mxu1  ;;  %v2747_v54 = vpack.c.bf16 %v2693_v0, %v2692_v44 }
 0x38c   : > { %v2372_v33 = vadd.f32 %v4850_v27, %v2371_v60  ;;  %v2691_v61 = vsel %vm2563_vm3, %v2359_v52, %v2627_v43  ;;  %v2632_v24 = vmul.f32 0.2, %v2380_v45  ;;  %vm2568_vm6 = vcmp.ge.f32.partialorder %v2380_v45, 0.0 }
 0x38d   : > { %v4017_v47 = vpop.f32.mrf.mxu1  ;;  %v2746_v53 = vpack.c.bf16 %v2691_v61, %v2690_v34 }
 0x38e   : > { %v2383_v55 = vadd.f32 %v4017_v47, %v4850_v27  ;;  %v2630_v58 = vmul.f32 0.2, %v2372_v33  ;;  %vm2566_vm5 = vcmp.ge.f32.partialorder %v2372_v33, 0.0  ;;  %v2696_v5 = vsel %vm2568_vm6, %v2380_v45, %v2632_v24 }
 0x38f   : > { %v2374_v57 = vpop.f32.mrf.mxu1  ;;  %4090 = vmatprep.mubr.bf16.mxu0 %v2746_v53 }
 0x390   : > { %vm2569_vm4 = vcmp.ge.f32.partialorder %v2383_v55, 0.0  ;;  %v2633_v59 = vmul.f32 0.2, %v2383_v55  ;;  %v2375_v63 = vadd.f32 %v4850_v27, %v2374_v57  ;;  %4091 = vmatmul.mubr.bf16.gmra.mxu0 %v2747_v54  ;;  %v2694_v51 = vsel %vm2566_vm5, %v2372_v33, %v2630_v58 }
 0x391   : > { %v4020_v50 = vpop.f32.mrf.mxu1 }
 0x392   : > { %vm2567_vm7 = vcmp.ge.f32.partialorder %v2375_v63, 0.0  ;;  %v2631_v1 = vmul.f32 0.2, %v2375_v63  ;;  %v2697_v2 = vsel %vm2569_vm4, %v2383_v55, %v2633_v59  ;;  %v2396_v6 = vadd.f32 %v4020_v50, %v4850_v27 }
 0x393   : > { %v2387_v46 = vpop.f32.mrf.mxu1  ;;  %v2749_v56 = vpack.c.bf16 %v2697_v2, %v2696_v5 }
 0x394   : > { %v2388_v22 = vadd.f32 %v4850_v27, %v2387_v46  ;;  %v2695_v49 = vsel %vm2567_vm7, %v2375_v63, %v2631_v1  ;;  %v2636_v17 = vmul.f32 0.2, %v2396_v6  ;;  %vm2572_vm10 = vcmp.ge.f32.partialorder %v2396_v6, 0.0 }
 0x395   : > { %v4021_v8 = vpop.f32.mrf.mxu1  ;;  %v2748_v9 = vpack.c.bf16 %v2695_v49, %v2694_v51 }
 0x396   : > { %v2399_v7 = vadd.f32 %v4021_v8, %v4850_v27  ;;  %v2634_v26 = vmul.f32 0.2, %v2388_v22  ;;  %vm2570_vm9 = vcmp.ge.f32.partialorder %v2388_v22, 0.0  ;;  %v2700_v25 = vsel %vm2572_vm10, %v2396_v6, %v2636_v17 }
 0x397   : > { %v2390_v13 = vpop.f32.mrf.mxu1  ;;  %4094 = vmatprep.mubr.bf16.mxu0 %v2748_v9 }
 0x398   : > { %vm2573_vm8 = vcmp.ge.f32.partialorder %v2399_v7, 0.0  ;;  %v2637_v14 = vmul.f32 0.2, %v2399_v7  ;;  %v2391_v15 = vadd.f32 %v4850_v27, %v2390_v13  ;;  %4095 = vmatmul.mubr.bf16.gmra.mxu0 %v2749_v56  ;;  %v2698_v21 = vsel %vm2570_vm9, %v2388_v22, %v2634_v26 }
 0x399   : > { %v4024_v19 = vpop.f32.mrf.mxu1 }
 0x39a   : > { %vm2571_vm11 = vcmp.ge.f32.partialorder %v2391_v15, 0.0  ;;  %v2635_v11 = vmul.f32 0.2, %v2391_v15  ;;  %v2701_v39 = vsel %vm2573_vm8, %v2399_v7, %v2637_v14  ;;  %v2412_v28 = vadd.f32 %v4024_v19, %v4850_v27 }
 0x39b   : > { %v2403_v10 = vpop.f32.mrf.mxu1  ;;  %v2751_v3 = vpack.c.bf16 %v2701_v39, %v2700_v25 }
 0x39c   : > { %v2404_v20 = vadd.f32 %v4850_v27, %v2403_v10  ;;  %v2699_v23 = vsel %vm2571_vm11, %v2391_v15, %v2635_v11  ;;  %v2640_v18 = vmul.f32 0.2, %v2412_v28  ;;  %vm2576_vm14 = vcmp.ge.f32.partialorder %v2412_v28, 0.0 }
 0x39d   : > { %v4025_v38 = vpop.f32.mrf.mxu1  ;;  %v2750_v29 = vpack.c.bf16 %v2699_v23, %v2698_v21 }
 0x39e   : > { %v2415_v16 = vadd.f32 %v4025_v38, %v4850_v27  ;;  %v2638_v48 = vmul.f32 0.2, %v2404_v20  ;;  %vm2574_vm13 = vcmp.ge.f32.partialorder %v2404_v20, 0.0  ;;  %v2704_v52 = vsel %vm2576_vm14, %v2412_v28, %v2640_v18 }
 0x39f   : > { %v2406_v30 = vpop.f32.mrf.mxu1  ;;  %4098 = vmatprep.mubr.bf16.mxu0 %v2750_v29 }
 0x3a0   : > { %vm2577_vm12 = vcmp.ge.f32.partialorder %v2415_v16, 0.0  ;;  %v2641_v62 = vmul.f32 0.2, %v2415_v16  ;;  %v2407_v12 = vadd.f32 %v4850_v27, %v2406_v30  ;;  %4099 = vmatmul.mubr.bf16.gmra.mxu0 %v2751_v3  ;;  %v2702_v40 = vsel %vm2574_vm13, %v2404_v20, %v2638_v48 }
 0x3a1   : > { %v4028_v31 = vpop.f32.mrf.mxu1 }
 0x3a2   : > { %vm2575_vm15 = vcmp.ge.f32.partialorder %v2407_v12, 0.0  ;;  %v2639_v32 = vmul.f32 0.2, %v2407_v12  ;;  %v2705_v35 = vsel %vm2577_vm12, %v2415_v16, %v2641_v62  ;;  %v2428_v42 = vadd.f32 %v4028_v31, %v4850_v27 }
 0x3a3   : > { %v2419_v36 = vpop.f32.mrf.mxu1  ;;  %v2753_v0 = vpack.c.bf16 %v2705_v35, %v2704_v52 }
 0x3a4   : > { %v2420_v37 = vadd.f32 %v4850_v27, %v2419_v36  ;;  %v2703_v41 = vsel %vm2575_vm15, %v2407_v12, %v2639_v32  ;;  %v2644_v45 = vmul.f32 0.2, %v2428_v42  ;;  %vm2580_vm2 = vcmp.ge.f32.partialorder %v2428_v42, 0.0 }
 0x3a5   : > { %v4029_v4 = vpop.f32.mrf.mxu1  ;;  %v2752_v43 = vpack.c.bf16 %v2703_v41, %v2702_v40 }
 0x3a6   : > { %v2431_v60 = vadd.f32 %v4029_v4, %v4850_v27  ;;  %v2642_v34 = vmul.f32 0.2, %v2420_v37  ;;  %vm2578_vm1 = vcmp.ge.f32.partialorder %v2420_v37, 0.0  ;;  %v2708_v63 = vsel %vm2580_vm2, %v2428_v42, %v2644_v45 }
 0x3a7   : > { %v2422_v33 = vpop.f32.mrf.mxu1  ;;  %4102 = vmatprep.mubr.bf16.mxu0 %v2752_v43 }
 0x3a8   : > { %vm2581_vm0 = vcmp.ge.f32.partialorder %v2431_v60, 0.0  ;;  %v2645_v61 = vmul.f32 0.2, %v2431_v60  ;;  %v2423_v44 = vadd.f32 %v4850_v27, %v2422_v33  ;;  %4103 = vmatmul.mubr.bf16.gmra.mxu0 %v2753_v0  ;;  %v2706_v58 = vsel %vm2578_vm1, %v2420_v37, %v2642_v34 }
 0x3a9   : > { %v4032_v47 = vpop.f32.mrf.mxu1 }
 0x3aa   : > { %vm2579_vm3 = vcmp.ge.f32.partialorder %v2423_v44, 0.0  ;;  %v2643_v53 = vmul.f32 0.2, %v2423_v44  ;;  %v2709_v54 = vsel %vm2581_vm0, %v2431_v60, %v2645_v61  ;;  %v2444_v24 = vadd.f32 %v4032_v47, %v4850_v27 }
 0x3ab   : > { %v2435_v55 = vpop.f32.mrf.mxu1  ;;  %v2755_v2 = vpack.c.bf16 %v2709_v54, %v2708_v63 }
 0x3ac   : > { %v2436_v57 = vadd.f32 %v4850_v27, %v2435_v55  ;;  %v2707_v59 = vsel %vm2579_vm3, %v2423_v44, %v2643_v53  ;;  %v2648_v6 = vmul.f32 0.2, %v2444_v24  ;;  %vm2584_vm6 = vcmp.ge.f32.partialorder %v2444_v24, 0.0 }
 0x3ad   : > { %v4033_v50 = vpop.f32.mrf.mxu1  ;;  %v2754_v1 = vpack.c.bf16 %v2707_v59, %v2706_v58 }
 0x3ae   : > { %v2447_v46 = vadd.f32 %v4033_v50, %v4850_v27  ;;  %v2646_v51 = vmul.f32 0.2, %v2436_v57  ;;  %vm2582_vm5 = vcmp.ge.f32.partialorder %v2436_v57, 0.0  ;;  %v2712_v15 = vsel %vm2584_vm6, %v2444_v24, %v2648_v6 }
 0x3af   : > { %v2438_v22 = vpop.f32.mrf.mxu1  ;;  %4106 = vmatprep.mubr.bf16.mxu0 %v2754_v1 }
 0x3b0   : > { %vm2585_vm4 = vcmp.ge.f32.partialorder %v2447_v46, 0.0  ;;  %v2649_v49 = vmul.f32 0.2, %v2447_v46  ;;  %v2439_v5 = vadd.f32 %v4850_v27, %v2438_v22  ;;  %4107 = vmatmul.mubr.bf16.gmra.mxu0 %v2755_v2  ;;  %v2710_v26 = vsel %vm2582_vm5, %v2436_v57, %v2646_v51 }
 0x3b1   : > { %v4036_v8 = vpop.f32.mrf.mxu1 }
 0x3b2   : > { %vm2583_vm7 = vcmp.ge.f32.partialorder %v2439_v5, 0.0  ;;  %v2647_v9 = vmul.f32 0.2, %v2439_v5  ;;  %v2713_v56 = vsel %vm2585_vm4, %v2447_v46, %v2649_v49  ;;  %v2460_v17 = vadd.f32 %v4036_v8, %v4850_v27 }
 0x3b3   : > { %v2451_v7 = vpop.f32.mrf.mxu1  ;;  %v2757_v39 = vpack.c.bf16 %v2713_v56, %v2712_v15 }
 0x3b4   : > { %v2452_v13 = vadd.f32 %v4850_v27, %v2451_v7  ;;  %v2711_v14 = vsel %vm2583_vm7, %v2439_v5, %v2647_v9  ;;  %v2652_v28 = vmul.f32 0.2, %v2460_v17  ;;  %vm2588_vm10 = vcmp.ge.f32.partialorder %v2460_v17, 0.0 }
 0x3b5   : > { %v4037_v19 = vpop.f32.mrf.mxu1  ;;  %v2756_v11 = vpack.c.bf16 %v2711_v14, %v2710_v26 }
 0x3b6   : > { %v2463_v10 = vadd.f32 %v4037_v19, %v4850_v27  ;;  %v2650_v21 = vmul.f32 0.2, %v2452_v13  ;;  %vm2586_vm9 = vcmp.ge.f32.partialorder %v2452_v13, 0.0  ;;  %v2716_v12 = vsel %vm2588_vm10, %v2460_v17, %v2652_v28 }
 0x3b7   : > { %v2454_v20 = vpop.f32.mrf.mxu1  ;;  %4110 = vmatprep.mubr.bf16.mxu0 %v2756_v11 }
 0x3b8   : > { %vm2589_vm8 = vcmp.ge.f32.partialorder %v2463_v10, 0.0  ;;  %v2653_v23 = vmul.f32 0.2, %v2463_v10  ;;  %v2455_v25 = vadd.f32 %v4850_v27, %v2454_v20  ;;  %4111 = vmatmul.mubr.bf16.gmra.mxu0 %v2757_v39  ;;  %v2714_v48 = vsel %vm2586_vm9, %v2452_v13, %v2650_v21 }
 0x3b9   : > { %v4040_v38 = vpop.f32.mrf.mxu1 }
 0x3ba   : > { %vm2587_vm11 = vcmp.ge.f32.partialorder %v2455_v25, 0.0  ;;  %v2651_v29 = vmul.f32 0.2, %v2455_v25  ;;  %v2717_v3 = vsel %vm2589_vm8, %v2463_v10, %v2653_v23  ;;  %v2476_v18 = vadd.f32 %v4040_v38, %v4850_v27 }
 0x3bb   : > { %v2467_v16 = vpop.f32.mrf.mxu1  ;;  %v2759_v35 = vpack.c.bf16 %v2717_v3, %v2716_v12 }
 0x3bc   : > { %v2468_v30 = vadd.f32 %v4850_v27, %v2467_v16  ;;  %v2715_v62 = vsel %vm2587_vm11, %v2455_v25, %v2651_v29  ;;  %v2656_v42 = vmul.f32 0.2, %v2476_v18  ;;  %vm2592_vm14 = vcmp.ge.f32.partialorder %v2476_v18, 0.0 }
 0x3bd   : > { %v4041_v31 = vpop.f32.mrf.mxu1  ;;  %v2758_v32 = vpack.c.bf16 %v2715_v62, %v2714_v48 }
 0x3be   : > { %v2479_v36 = vadd.f32 %v4041_v31, %v4850_v27  ;;  %v2654_v40 = vmul.f32 0.2, %v2468_v30  ;;  %vm2590_vm13 = vcmp.ge.f32.partialorder %v2468_v30, 0.0  ;;  %v2720_v44 = vsel %vm2592_vm14, %v2476_v18, %v2656_v42 }
 0x3bf   : > { %v2470_v37 = vpop.f32.mrf.mxu1  ;;  %4114 = vmatprep.mubr.bf16.mxu0 %v2758_v32 }
 0x3c0   : > { %vm2593_vm12 = vcmp.ge.f32.partialorder %v2479_v36, 0.0  ;;  %v2657_v41 = vmul.f32 0.2, %v2479_v36  ;;  %v2471_v52 = vadd.f32 %v4850_v27, %v2470_v37  ;;  %4115 = vmatmul.mubr.bf16.gmra.mxu0 %v2759_v35  ;;  %v2718_v34 = vsel %vm2590_vm13, %v2468_v30, %v2654_v40 }
 0x3c1   : > { %v4044_v4 = vpop.f32.mrf.mxu1 }
 0x3c2   : > { %vm2591_vm15 = vcmp.ge.f32.partialorder %v2471_v52, 0.0  ;;  %v2655_v43 = vmul.f32 0.2, %v2471_v52  ;;  %v2721_v0 = vsel %vm2593_vm12, %v2479_v36, %v2657_v41  ;;  %v2492_v45 = vadd.f32 %v4044_v4, %v4850_v27 }
 0x3c3   : > { %v2483_v60 = vpop.f32.mrf.mxu1  ;;  %v2761_v54 = vpack.c.bf16 %v2721_v0, %v2720_v44 }
 0x3c4   : > { %v2484_v33 = vadd.f32 %v4850_v27, %v2483_v60  ;;  %v2719_v61 = vsel %vm2591_vm15, %v2471_v52, %v2655_v43  ;;  %v2660_v24 = vmul.f32 0.2, %v2492_v45  ;;  %vm2596_vm2 = vcmp.ge.f32.partialorder %v2492_v45, 0.0 }
 0x3c5   : > { %v4045_v47 = vpop.f32.mrf.mxu1  ;;  %v2760_v53 = vpack.c.bf16 %v2719_v61, %v2718_v34 }
 0x3c6   : > { %v2495_v55 = vadd.f32 %v4045_v47, %v4850_v27  ;;  %v2658_v58 = vmul.f32 0.2, %v2484_v33  ;;  %vm2594_vm1 = vcmp.ge.f32.partialorder %v2484_v33, 0.0  ;;  %v2724_v5 = vsel %vm2596_vm2, %v2492_v45, %v2660_v24  ;;  %v4919_v24 = vld [vmem:[%s5021_s2 + $0x4] ss:$0 sm:$0xff] }
 0x3c7   : > { %v2486_v57 = vpop.f32.mrf.mxu1  ;;  %4118 = vmatprep.mubr.bf16.mxu0 %v2760_v53 }
 0x3c8   : > { %vm2597_vm0 = vcmp.ge.f32.partialorder %v2495_v55, 0.0  ;;  %v2661_v59 = vmul.f32 0.2, %v2495_v55  ;;  %v2487_v63 = vadd.f32 %v4850_v27, %v2486_v57  ;;  %4119 = vmatmul.mubr.bf16.gmra.mxu0 %v2761_v54  ;;  %v2722_v51 = vsel %vm2594_vm1, %v2484_v33, %v2658_v58 }
 0x3c9   : > { %v4048_v50 = vpop.f32.mrf.mxu1 }
 0x3ca   : > { %vm2595_vm3 = vcmp.ge.f32.partialorder %v2487_v63, 0.0  ;;  %v2659_v1 = vmul.f32 0.2, %v2487_v63  ;;  %v2725_v2 = vsel %vm2597_vm0, %v2495_v55, %v2661_v59  ;;  %v2508_v6 = vadd.f32 %v4048_v50, %v4850_v27 }
 0x3cb   : > { %v2499_v46 = vpop.f32.mrf.mxu1  ;;  %v2763_v56 = vpack.c.bf16 %v2725_v2, %v2724_v5 }
 0x3cc   : > { %v2500_v22 = vadd.f32 %v4850_v27, %v2499_v46  ;;  %v2723_v49 = vsel %vm2595_vm3, %v2487_v63, %v2659_v1  ;;  %v2664_v17 = vmul.f32 0.2, %v2508_v6  ;;  %vm2600_vm6 = vcmp.ge.f32.partialorder %v2508_v6, 0.0 }
 0x3cd   : > { %v4049_v8 = vpop.f32.mrf.mxu1  ;;  %v2762_v9 = vpack.c.bf16 %v2723_v49, %v2722_v51 }
 0x3ce   : > { %v2511_v7 = vadd.f32 %v4049_v8, %v4850_v27  ;;  %v2662_v26 = vmul.f32 0.2, %v2500_v22  ;;  %vm2598_vm5 = vcmp.ge.f32.partialorder %v2500_v22, 0.0  ;;  %v2728_v25 = vsel %vm2600_vm6, %v2508_v6, %v2664_v17 }
 0x3cf   : > { %v2502_v13 = vpop.f32.mrf.mxu1  ;;  %4122 = vmatprep.mubr.bf16.mxu0 %v2762_v9 }
 0x3d0   : > { %vm2601_vm4 = vcmp.ge.f32.partialorder %v2511_v7, 0.0  ;;  %v2665_v14 = vmul.f32 0.2, %v2511_v7  ;;  %v2503_v15 = vadd.f32 %v4850_v27, %v2502_v13  ;;  %4123 = vmatmul.mubr.bf16.gmra.mxu0 %v2763_v56  ;;  %v2726_v21 = vsel %vm2598_vm5, %v2500_v22, %v2662_v26 }
 0x3d1   : > { %v4052_v19 = vpop.f32.mrf.mxu1 }
 0x3d2   : > { %vm2599_vm7 = vcmp.ge.f32.partialorder %v2503_v15, 0.0  ;;  %v2663_v11 = vmul.f32 0.2, %v2503_v15  ;;  %v2729_v39 = vsel %vm2601_vm4, %v2511_v7, %v2665_v14  ;;  %v2524_v28 = vadd.f32 %v4052_v19, %v4850_v27 }
 0x3d3   : > { %v2515_v10 = vpop.f32.mrf.mxu1  ;;  %v2765_v3 = vpack.c.bf16 %v2729_v39, %v2728_v25 }
 0x3d4   : > { %v2516_v20 = vadd.f32 %v4850_v27, %v2515_v10  ;;  %v2727_v23 = vsel %vm2599_vm7, %v2503_v15, %v2663_v11  ;;  %v2668_v18 = vmul.f32 0.2, %v2524_v28  ;;  %vm2604_vm10 = vcmp.ge.f32.partialorder %v2524_v28, 0.0 }
 0x3d5   : > { %v4053_v38 = vpop.f32.mrf.mxu1  ;;  %v2764_v29 = vpack.c.bf16 %v2727_v23, %v2726_v21 }
 0x3d6   : > { %v2527_v16 = vadd.f32 %v4053_v38, %v4850_v27  ;;  %v2666_v48 = vmul.f32 0.2, %v2516_v20  ;;  %vm2602_vm9 = vcmp.ge.f32.partialorder %v2516_v20, 0.0  ;;  %v2732_v52 = vsel %vm2604_vm10, %v2524_v28, %v2668_v18 }
 0x3d7   : > { %v2518_v30 = vpop.f32.mrf.mxu1  ;;  %4126 = vmatprep.mubr.bf16.mxu0 %v2764_v29 }
 0x3d8   : > { %vm2605_vm8 = vcmp.ge.f32.partialorder %v2527_v16, 0.0  ;;  %v2669_v62 = vmul.f32 0.2, %v2527_v16  ;;  %v2519_v12 = vadd.f32 %v4850_v27, %v2518_v30  ;;  %4127 = vmatmul.mubr.bf16.gmra.mxu0 %v2765_v3  ;;  %v2730_v40 = vsel %vm2602_vm9, %v2516_v20, %v2666_v48 }
 0x3d9   : > { %v4056_v31 = vpop.f32.mrf.mxu1 }
 0x3da   : > { %vm2603_vm11 = vcmp.ge.f32.partialorder %v2519_v12, 0.0  ;;  %v2667_v32 = vmul.f32 0.2, %v2519_v12  ;;  %v2733_v35 = vsel %vm2605_vm8, %v2527_v16, %v2669_v62  ;;  %v2540_v42 = vadd.f32 %v4056_v31, %v4850_v27 }
 0x3db   : > { %v2531_v36 = vpop.f32.mrf.mxu1  ;;  %v2767_v0 = vpack.c.bf16 %v2733_v35, %v2732_v52 }
 0x3dc   : > { %v2532_v37 = vadd.f32 %v4850_v27, %v2531_v36  ;;  %v2731_v41 = vsel %vm2603_vm11, %v2519_v12, %v2667_v32  ;;  %v2672_v45 = vmul.f32 0.2, %v2540_v42  ;;  %vm2608_vm14 = vcmp.ge.f32.partialorder %v2540_v42, 0.0 }
 0x3dd   : > { %v4057_v4 = vpop.f32.mrf.mxu1  ;;  %v2766_v43 = vpack.c.bf16 %v2731_v41, %v2730_v40 }
 0x3de   : > { %v2543_v60 = vadd.f32 %v4057_v4, %v4850_v27  ;;  %v2670_v34 = vmul.f32 0.2, %v2532_v37  ;;  %vm2606_vm13 = vcmp.ge.f32.partialorder %v2532_v37, 0.0  ;;  %v2736_v57 = vsel %vm2608_vm14, %v2540_v42, %v2672_v45 }
 0x3df   : > { %v2534_v33 = vpop.f32.mrf.mxu1  ;;  %4130 = vmatprep.mubr.bf16.mxu0 %v2766_v43 }
 0x3e0   : > { %vm2609_vm12 = vcmp.ge.f32.partialorder %v2543_v60, 0.0  ;;  %v2673_v61 = vmul.f32 0.2, %v2543_v60  ;;  %v2535_v44 = vadd.f32 %v4850_v27, %v2534_v33  ;;  %4131 = vmatmul.mubr.bf16.gmra.mxu0 %v2767_v0  ;;  %v2734_v54 = vsel %vm2606_vm13, %v2532_v37, %v2670_v34 }
 0x3e2   : > { %vm2607_vm15 = vcmp.ge.f32.partialorder %v2535_v44, 0.0  ;;  %v2671_v47 = vmul.f32 0.2, %v2535_v44  ;;  %v2737_v53 = vsel %vm2609_vm12, %v2543_v60, %v2673_v61 }
 0x3e3   : > { %v2769_v59 = vpack.c.bf16 %v2737_v53, %v2736_v57 }
 0x3e4   : > { %v2735_v55 = vsel %vm2607_vm15, %v2535_v44, %v2671_v47 }
 0x3e5   : > { %v2768_v58 = vpack.c.bf16 %v2735_v55, %v2734_v54 }
 0x3e7   : > { %4134 = vmatprep.mubr.bf16.mxu0 %v2768_v58 }
 0x3e8   : > { %4135 = vmatmul.mubr.bf16.gmra.mxu0 %v2769_v59 }
 0x430   : > { %v4076_v63 = vpop.f32.mrf.mxu0 }
 0x431   : > { %v2886_v49 = vadd.f32 %v4076_v63, %v4919_v24 }
 0x432   : > { %v2877_v27 = vpop.f32.mrf.mxu0 }
 0x433   : > { %v2878_v50 = vadd.f32 %v4919_v24, %v2877_v27 }
 0x434   : > { %v4077_v1 = vpop.f32.mrf.mxu0 }
 0x435   : > { %3132 = vxpose.xlu0.b32.start [1/16] (narrow) %v2878_v50, 8  ;;  %v2889_v8 = vadd.f32 %v4077_v1, %v4919_v24 }
 0x436   : > { %v2880_v2 = vpop.f32.mrf.mxu0 }
 0x437   : > { %v2881_v46 = vadd.f32 %v4919_v24, %v2880_v2 }
 0x438   : > { %v4080_v22 = vpop.f32.mrf.mxu0 }
 0x439   : > { %3133 = vxpose.xlu0.b32.cont [2/16] (narrow) %v2881_v46, 8  ;;  %v2902_v19 = vadd.f32 %v4080_v22, %v4919_v24 }
 0x43a   : > { %v2893_v51 = vpop.f32.mrf.mxu0 }
 0x43b   : > { %v2894_v7 = vadd.f32 %v4919_v24, %v2893_v51 }
 0x43c   : > { %v4081_v5 = vpop.f32.mrf.mxu0 }
 0x43d   : > { %3134 = vxpose.xlu0.b32.cont [3/16] (narrow) %v2886_v49, 8  ;;  %v2905_v10 = vadd.f32 %v4081_v5, %v4919_v24 }
 0x43e   : > { %v2896_v6 = vpop.f32.mrf.mxu0 }
 0x43f   : > { %v2897_v14 = vadd.f32 %v4919_v24, %v2896_v6 }
 0x440   : > { %v4084_v9 = vpop.f32.mrf.mxu0 }
 0x441   : > { %3135 = vxpose.xlu0.b32.cont [4/16] (narrow) %v2889_v8, 8  ;;  %v2918_v48 = vadd.f32 %v4084_v9, %v4919_v24 }
 0x442   : > { %v2909_v56 = vpop.f32.mrf.mxu0 }
 0x443   : > { %v2910_v23 = vadd.f32 %v4919_v24, %v2909_v56 }
 0x444   : > { %v4085_v13 = vpop.f32.mrf.mxu0 }
 0x445   : > { %3136 = vxpose.xlu0.b32.cont [5/16] (narrow) %v2894_v7, 8  ;;  %v2921_v31 = vadd.f32 %v4085_v13, %v4919_v24 }
 0x446   : > { %v2912_v26 = vpop.f32.mrf.mxu0 }
 0x447   : > { %v2913_v29 = vadd.f32 %v4919_v24, %v2912_v26 }
 0x448   : > { %v4088_v15 = vpop.f32.mrf.mxu0 }
 0x449   : > { %3137 = vxpose.xlu0.b32.cont [6/16] (narrow) %v2897_v14, 8  ;;  %v2934_v60 = vadd.f32 %v4088_v15, %v4919_v24 }
 0x44a   : > { %v2925_v17 = vpop.f32.mrf.mxu0 }
 0x44b   : > { %v2926_v37 = vadd.f32 %v4919_v24, %v2925_v17 }
 0x44c   : > { %v4089_v11 = vpop.f32.mrf.mxu0 }
 0x44d   : > { %3138 = vxpose.xlu0.b32.cont [7/16] (narrow) %v2902_v19, 8  ;;  %v2937_v44 = vadd.f32 %v4089_v11, %v4919_v24 }
 0x44e   : > { %v2928_v39 = vpop.f32.mrf.mxu0 }
 0x44f   : > { %v2929_v42 = vadd.f32 %v4919_v24, %v2928_v39 }
 0x450   : > { %v4092_v20 = vpop.f32.mrf.mxu0 }
 0x451   : > { %3139 = vxpose.xlu0.b32.cont [8/16] (narrow) %v2905_v10, 8  ;;  %v2950_v62 = vadd.f32 %v4092_v20, %v4919_v24 }
 0x452   : > { %v2941_v21 = vpop.f32.mrf.mxu0 }
 0x453   : > { %v2942_v25 = vadd.f32 %v4919_v24, %v2941_v21 }
 0x454   : > { %v4093_v28 = vpop.f32.mrf.mxu0 }
 0x455   : > { %3164 = vxpose.xlu1.b32.start [1/16] (narrow) %v2942_v25, 8  ;;  %3140 = vxpose.xlu0.b32.cont [9/16] (narrow) %v2910_v23, 8  ;;  %v2953_v32 = vadd.f32 %v4093_v28, %v4919_v24 }
 0x456   : > { %v2944_v38 = vpop.f32.mrf.mxu0 }
 0x457   : > { %v2945_v3 = vadd.f32 %v4919_v24, %v2944_v38 }
 0x458   : > { %v4096_v16 = vpop.f32.mrf.mxu0 }
 0x459   : > { %3165 = vxpose.xlu1.b32.cont [2/16] (narrow) %v2945_v3, 8  ;;  %3141 = vxpose.xlu0.b32.cont [10/16] (narrow) %v2913_v29, 8  ;;  %v2966_v33 = vadd.f32 %v4096_v16, %v4919_v24 }
 0x45a   : > { %v2957_v30 = vpop.f32.mrf.mxu0 }
 0x45b   : > { %v2958_v40 = vadd.f32 %v4919_v24, %v2957_v30 }
 0x45c   : > { %v4097_v12 = vpop.f32.mrf.mxu0 }
 0x45d   : > { %3166 = vxpose.xlu1.b32.cont [3/16] (narrow) %v2950_v62, 8  ;;  %3142 = vxpose.xlu0.b32.cont [11/16] (narrow) %v2918_v48, 8  ;;  %v2969_v45 = vadd.f32 %v4097_v12, %v4919_v24 }
 0x45e   : > { %v2960_v18 = vpop.f32.mrf.mxu0 }
 0x45f   : > { %v2961_v4 = vadd.f32 %v4919_v24, %v2960_v18 }
 0x460   : > { %v4100_v35 = vpop.f32.mrf.mxu0 }
 0x461   : > { %3167 = vxpose.xlu1.b32.cont [4/16] (narrow) %v2953_v32, 8  ;;  %3143 = vxpose.xlu0.b32.cont [12/16] (narrow) %v2921_v31, 8  ;;  %v2982_v1 = vadd.f32 %v4100_v35, %v4919_v24 }
 0x462   : > { %v2973_v36 = vpop.f32.mrf.mxu0 }
 0x463   : > { %v2974_v54 = vadd.f32 %v4919_v24, %v2973_v36 }
 0x464   : > { %v4101_v41 = vpop.f32.mrf.mxu0 }
 0x465   : > { %3168 = vxpose.xlu1.b32.cont [5/16] (narrow) %v2958_v40, 8  ;;  %3144 = vxpose.xlu0.b32.cont [13/16] (narrow) %v2926_v37, 8  ;;  %v2985_v51 = vadd.f32 %v4101_v41, %v4919_v24 }
 0x466   : > { %v2976_v52 = vpop.f32.mrf.mxu0 }
 0x467   : > { %v2977_v59 = vadd.f32 %v4919_v24, %v2976_v52 }
 0x468   : > { %v4104_v43 = vpop.f32.mrf.mxu0 }
 0x469   : > { %3169 = vxpose.xlu1.b32.cont [6/16] (narrow) %v2961_v4, 8  ;;  %3145 = vxpose.xlu0.b32.cont [14/16] (narrow) %v2929_v42, 8  ;;  %v2998_v17 = vadd.f32 %v4104_v43, %v4919_v24 }
 0x46a   : > { %v2989_v0 = vpop.f32.mrf.mxu0 }
 0x46b   : > { %v2990_v8 = vadd.f32 %v4919_v24, %v2989_v0 }
 0x46c   : > { %v4105_v34 = vpop.f32.mrf.mxu0 }
 0x46d   : > { %3170 = vxpose.xlu1.b32.cont [7/16] (narrow) %v2966_v33, 8  ;;  %3146 = vxpose.xlu0.b32.cont [15/16] (narrow) %v2934_v60, 8  ;;  %v3001_v10 = vadd.f32 %v4105_v34, %v4919_v24 }
 0x46e   : > { %v2992_v61 = vpop.f32.mrf.mxu0 }
 0x46f   : > { %v2993_v13 = vadd.f32 %v4919_v24, %v2992_v61 }
 0x470   : > { %v4108_v47 = vpop.f32.mrf.mxu0 }
 0x471   : > { %3171 = vxpose.xlu1.b32.cont [8/16] (narrow) %v2969_v45, 8  ;;  %3147 = vxpose.xlu0.b32.end [16/16] (narrow) %v2937_v44, 8  ;;  %v3014_v2 = vadd.f32 %v4108_v47, %v4919_v24 }
 0x472   : > { %v3005_v53 = vpop.f32.mrf.mxu0 }
 0x473   : > { %v3006_v55 = vadd.f32 %v4919_v24, %v3005_v53 }
 0x474   : > { %v4109_v57 = vpop.f32.mrf.mxu0 }
 0x475   : > { %3172 = vxpose.xlu1.b32.cont [9/16] (narrow) %v2974_v54, 8  ;;  %3196 = vxpose.xlu0.b32.start [1/16] (narrow) %v3006_v55, 8  ;;  %v3017_v49 = vadd.f32 %v4109_v57, %v4919_v24 }
 0x476   : > { %v3008_v58 = vpop.f32.mrf.mxu0 }
 0x477   : > { %v3009_v63 = vadd.f32 %v4919_v24, %v3008_v58 }
 0x478   : > { %v4112_v27 = vpop.f32.mrf.mxu0 }
 0x479   : > { %3173 = vxpose.xlu1.b32.cont [10/16] (narrow) %v2977_v59, 8  ;;  %3197 = vxpose.xlu0.b32.cont [2/16] (narrow) %v3009_v63, 8  ;;  %v3030_v19 = vadd.f32 %v4112_v27, %v4919_v24 }
 0x47a   : > { %v3021_v50 = vpop.f32.mrf.mxu0 }
 0x47b   : > { %v3022_v9 = vadd.f32 %v4919_v24, %v3021_v50 }
 0x47c   : > { %v4113_v46 = vpop.f32.mrf.mxu0 }
 0x47d   : > { %3174 = vxpose.xlu1.b32.cont [11/16] (narrow) %v2982_v1, 8  ;;  %3198 = vxpose.xlu0.b32.cont [3/16] (narrow) %v3014_v2, 8  ;;  %v3033_v20 = vadd.f32 %v4113_v46, %v4919_v24 }
 0x47e   : > { %v3024_v22 = vpop.f32.mrf.mxu0 }
 0x47f   : > { %v3025_v26 = vadd.f32 %v4919_v24, %v3024_v22 }
 0x480   : > { %v4116_v5 = vpop.f32.mrf.mxu0 }
 0x481   : > { %3175 = vxpose.xlu1.b32.cont [12/16] (narrow) %v2985_v51, 8  ;;  %3199 = vxpose.xlu0.b32.cont [4/16] (narrow) %v3017_v49, 8  ;;  %v3046_v48 = vadd.f32 %v4116_v5, %v4919_v24 }
 0x482   : > { %v3037_v6 = vpop.f32.mrf.mxu0 }
 0x483   : > { %v3038_v25 = vadd.f32 %v4919_v24, %v3037_v6 }
 0x484   : > { %v4117_v56 = vpop.f32.mrf.mxu0 }
 0x485   : > { %3176 = vxpose.xlu1.b32.cont [13/16] (narrow) %v2990_v8, 8  ;;  %3200 = vxpose.xlu0.b32.cont [5/16] (narrow) %v3022_v9, 8  ;;  %v3049_v18 = vadd.f32 %v4117_v56, %v4919_v24  ;;  %v4336_v8 = vmov 1966171168   ;;  %v3281_v56 = vlaneseq }
 0x486   : > { %v3040_v7 = vpop.f32.mrf.mxu0  ;;  %v3279_v9 = vunpack.c.l.s4 %v4336_v8 }
 0x487   : > { %v3041_v3 = vadd.f32 %v4919_v24, %v3040_v7  ;;  %vm3303_vm0 = vcmp.lt.s32.totalorder %v3281_v56, 512 }
 0x488   : > { %v4120_v14 = vpop.f32.mrf.mxu0 }
 0x489   : > { %3177 = vxpose.xlu1.b32.cont [14/16] (narrow) %v2993_v13, 8  ;;  %3201 = vxpose.xlu0.b32.cont [6/16] (narrow) %v3025_v26, 8  ;;  %v3062_v42 = vadd.f32 %v4120_v14, %v4919_v24  ;;  %v3280_v26 = vunpack.c.0.s8 %v3279_v9  ;;  %v3282_v14 = vshrl.u32 %v3281_v56, 7 }
 0x48a   : > { %v3053_v15 = vpop.f32.mrf.mxu0 }
 0x48b   : > { %v3054_v35 = vadd.f32 %v4919_v24, %v3053_v15 }
 0x48c   : > { %v4121_v11 = vpop.f32.mrf.mxu0 }
 0x48d   : > { %3178 = vxpose.xlu1.b32.cont [15/16] (narrow) %v2998_v17, 8  ;;  %3202 = vxpose.xlu0.b32.cont [7/16] (narrow) %v3030_v19, 8  ;;  %v3065_v0 = vadd.f32 %v4121_v11, %v4919_v24 }
 0x48e   : > { %v3056_v39 = vpop.f32.mrf.mxu0 }
 0x48f   : > { %v3057_v40 = vadd.f32 %v4919_v24, %v3056_v39 }
 0x490   : > { %v4124_v21 = vpop.f32.mrf.mxu0 }
 0x491   : > { %3179 = vxpose.xlu1.b32.end [16/16] (narrow) %v3001_v10, 8  ;;  %3203 = vxpose.xlu0.b32.cont [8/16] (narrow) %v3033_v20, 8  ;;  %v3078_v62 = vadd.f32 %v4124_v21, %v4919_v24  ;;  %v3283_v10 = vsub.s32 %v3280_v26, %v3282_v14 }
 0x492   : > { %v3069_v23 = vpop.f32.mrf.mxu0 }
 0x493   : > { %v3070_v28 = vadd.f32 %v4919_v24, %v3069_v23 }
 0x494   : > { %v4125_v38 = vpop.f32.mrf.mxu0 }
 0x495   : > { %3228 = vxpose.xlu1.b32.start [1/16] (narrow) %v3070_v28, 8  ;;  %3204 = vxpose.xlu0.b32.cont [9/16] (narrow) %v3038_v25, 8  ;;  %v3081_v31 = vadd.f32 %v4125_v38, %v4919_v24 }
 0x496   : > { %v3072_v29 = vpop.f32.mrf.mxu0 }
 0x497   : > { %v3073_v16 = vadd.f32 %v4919_v24, %v3072_v29 }
 0x498   : > { %v4128_v30 = vpop.f32.mrf.mxu0 }
 0x499   : > { %3229 = vxpose.xlu1.b32.cont [2/16] (narrow) %v3073_v16, 8  ;;  %3205 = vxpose.xlu0.b32.cont [10/16] (narrow) %v3041_v3, 8  ;;  %v3094_v4 = vadd.f32 %v4128_v30, %v4919_v24 }
 0x49a   : > { %v3085_v12 = vpop.f32.mrf.mxu0 }
 0x49b   : > { %v3086_v36 = vadd.f32 %v4919_v24, %v3085_v12 }
 0x49c   : > { %v4129_v32 = vpop.f32.mrf.mxu0 }
 0x49d   : > { %3230 = vxpose.xlu1.b32.cont [3/16] (narrow) %v3078_v62, 8  ;;  %3206 = vxpose.xlu0.b32.cont [11/16] (narrow) %v3046_v48, 8  ;;  %v3097_v60 = vadd.f32 %v4129_v32, %v4919_v24 }
 0x49e   : > { %v3088_v37 = vpop.f32.mrf.mxu0 }
 0x49f   : > { %v3089_v41 = vadd.f32 %v4919_v24, %v3088_v37 }
 0x4a0   : > { %v4132_v52 = vpop.f32.mrf.mxu0 }
 0x4a1   : > { %3231 = vxpose.xlu1.b32.cont [4/16] (narrow) %v3081_v31, 8  ;;  %3207 = vxpose.xlu0.b32.cont [12/16] (narrow) %v3049_v18, 8  ;;  %v3110_v47 = vadd.f32 %v4132_v52, %v4919_v24 }
 0x4a2   : > { %v3101_v43 = vpop.f32.mrf.mxu0 }
 0x4a3   : > { %v3102_v34 = vadd.f32 %v4919_v24, %v3101_v43 }
 0x4a4   : > { %v4133_v33 = vpop.f32.mrf.mxu0 }
 0x4a5   : > { %3232 = vxpose.xlu1.b32.cont [5/16] (narrow) %v3086_v36, 8  ;;  %3208 = vxpose.xlu0.b32.cont [13/16] (narrow) %v3054_v35, 8  ;;  %v3113_v54 = vadd.f32 %v4133_v33, %v4919_v24 }
 0x4a6   : > { %v3104_v61 = vpop.f32.mrf.mxu0 }
 0x4a7   : > { %v3105_v44 = vadd.f32 %v4919_v24, %v3104_v61 }
 0x4a8   : > { %v4136_v45 = vpop.f32.mrf.mxu0 }
 0x4a9   : > { %3233 = vxpose.xlu1.b32.cont [6/16] (narrow) %v3089_v41, 8  ;;  %3209 = vxpose.xlu0.b32.cont [14/16] (narrow) %v3057_v40, 8  ;;  %v3126_v63 = vadd.f32 %v4136_v45, %v4919_v24 }
 0x4aa   : > { %v3117_v53 = vpop.f32.mrf.mxu0 }
 0x4ab   : > { %v3118_v57 = vadd.f32 %v4919_v24, %v3117_v53 }
 0x4ac   : > { %v4137_v55 = vpop.f32.mrf.mxu0 }
 0x4ad   : > { %3234 = vxpose.xlu1.b32.cont [7/16] (narrow) %v3094_v4, 8  ;;  %3210 = vxpose.xlu0.b32.cont [15/16] (narrow) %v3062_v42, 8  ;;  %v3129_v27 = vadd.f32 %v4137_v55, %v4919_v24 }
 0x4ae   : > { %v3120_v58 = vpop.f32.mrf.mxu0 }
 0x4af   : > { %v3121_v59 = vadd.f32 %v4919_v24, %v3120_v58 }
 0x4b1   : > { %3235 = vxpose.xlu1.b32.cont [8/16] (narrow) %v3097_v60, 8  ;;  %3211 = vxpose.xlu0.b32.end [16/16] (narrow) %v3065_v0, 8  ;;  %v3148_v50 = vpop.trf.xlu0 }
 0x4b2   : > { %4266 = vtanh.f32 %v3148_v50 }
 0x4b5   : > { %3236 = vxpose.xlu1.b32.cont [9/16] (narrow) %v3102_v34, 8 }
 0x4b9   : > { %3237 = vxpose.xlu1.b32.cont [10/16] (narrow) %v3105_v44, 8 }
 0x4bd   : > { %3238 = vxpose.xlu1.b32.cont [11/16] (narrow) %v3110_v47, 8 }
 0x4bf   : > { %v4267_v22 = vpop.eup %4266 }
 0x4c0   : > { %v3264_v6 = vmul.f32 0.99, %v4267_v22 }
 0x4c1   : > { %3239 = vxpose.xlu1.b32.cont [12/16] (narrow) %v3113_v54, 8 }
 0x4c2   : > { %v3268_v13 = vadd.f32 1.0, %v3264_v6 }
 0x4c5   : > { %3240 = vxpose.xlu1.b32.cont [13/16] (narrow) %v3118_v57, 8 }
 0x4c9   : > { %3241 = vxpose.xlu1.b32.cont [14/16] (narrow) %v3121_v59, 8 }
 0x4cd   : > { %3242 = vxpose.xlu1.b32.cont [15/16] (narrow) %v3126_v63, 8 }
 0x4d1   : > { %3243 = vxpose.xlu1.b32.end [16/16] (narrow) %v3129_v27, 8  ;;  %v3180_v1 = vpop.trf.xlu1 }
 0x4d2   : > { %4268 = vtanh.f32 %v3180_v1 }
 0x4df   : > { %v4269_v51 = vpop.eup %4268 }
 0x4e0   : > { %v3265_v5 = vmul.f32 0.99, %v4269_v51 }
 0x4e2   : > { %v3269_v24 = vadd.f32 1.0, %v3265_v5 }
 0x4e4   : > { %v3276_v11 = vcombine.low %v3268_v13, %v3269_v24 }
 0x4e6   : > { %v3284_v23 = vrot.slane %v3276_v11, %v3283_v10 }
 0x4f1   : > { %v3212_v2 = vpop.trf.xlu0 }
 0x4f2   : > { %4270 = vtanh.f32 %v3212_v2 }
 0x4ff   : > { %v4271_v49 = vpop.eup %4270 }
 0x500   : > { %v3266_v7 = vmul.f32 0.99, %v4271_v49 }
 0x502   : > { %v3270_v19 = vadd.f32 1.0, %v3266_v7 }
 0x511   : > { %v3244_v46 = vpop.trf.xlu1 }
 0x512   : > { %4272 = vtanh.f32 %v3244_v46 }
 0x51f   : > { %v4273_v15 = vpop.eup %4272 }
 0x520   : > { %v3267_v17 = vmul.f32 0.99, %v4273_v15 }
 0x522   : > { %v3271_v39 = vadd.f32 1.0, %v3267_v17 }
 0x524   : > { %v3277_v20 = vcombine.low %v3270_v19, %v3271_v39 }
 0x526   : > { %v3291_v21 = vrot.slane %v3277_v20, %v3283_v10 }
 0x528   : > { %v3292_v25 = vcombine.low %v3284_v23, %v3291_v21 }
 0x52a   : > { %v3299_v28 = vrot.slane %v3292_v25, %v3283_v10 }
 0x52c   : > { %3305 = vst.msk [vmem:[%s164_s5] sm:$0xf] %vm3303_vm0, %v3299_v28 }
 0x52d   : > { %4287 = shalt.err (!%p4284_p3)
}
 0x52e   : > { %s4288_s24 = scalar_lea.hbm %s3319_s10, 64  ;;  %s4292_s27 = scalar_lea.hbm %s5022_s3, 128 }
 0x52f   : > { %p4289_p4 = scmp.ne.s32.totalorder %s3319_s10, %s4288_s24  ;;  %p4293_p9 = scmp.lt.s32.totalorder %s3319_s10, %s5022_s3 }
 0x530   : > { %p4294_p10 = scmp.lt.s32.totalorder %s4292_s27, %s4288_s24 }
 0x531   : > { %p4290_p7 = pnand %p4289_p4, %p4393_p5 }
 0x532   : > { %p4295_p11 = por %p4294_p10, %p4293_p9 }
 0x533   : > { %p4291_p8 = pneg %p4290_p7 }
 0x535   : > { %p4296_p12 = pnand %p4295_p11, %p4291_p8 }
 0x537   : > { %4299 = shalt.err (!%p4296_p12)
}
 0x538   : > { %4154 = dma.vmem_to_hbm [thread:$0]  (%p4393_p5), %s3322_s6, 64, %s3319_s10, %s3307_s11  }
 0x539 PF: > { %p4160_p13 = scmp.ge.s32.totalorder %s4334_s15, 2  ;;  %s3333_s29 = sand.u32 1, %s4322_s12  }
 0x53a   : > { %s3334_s30 = scalar_lea.sflag [#allocation3], %s3333_s29 }
 0x53b   : > { %p4157_p0 = pnand %p4160_p13, %p4397_p6 }
 0x53d   : > { %p4158_p1 = pneg %p4157_p0 }
 0x53f   : > { %4317 = dma.done.wait (%p4158_p1), %s3334_s30, 64  }
 0x540   : > { %4319 = vsyncadd (%p4158_p1), %s3334_s30, 4294967232  ;;  %p13_p2 = scmp.ge.s32.totalorder %s4381_s18, 4   ;;  %s5025_s12 = smov %s4326_s13 }
 0x541   : > { %s5026_s13 = smov %s4330_s14  ;;  %s5027_s14 = smov %s4391_s21 }
 0x542   : > { %s5028_s15 = smov %s4381_s18  ;;  %15 = sbr.rel (!%p13_p2) target bundleno = 3 (0x3), region = 75 }
 0x547   :  { %3339 = vsyncpa [#allocation3], 1 }
 0x548   :  { %3341 = vsyncpa [#allocation3 + $0x1], 1 }

</bundles_post_ra>
